<compile_context>
chip_gen: v7x
topology: tpu7x:2x2x1
jax: 0.10.0
libtpu: 0.0.40
codegen_flags: <defaults>
</compile_context>

<pallas_src>
import jax
import jax.numpy as jnp
import numpy as np
from jax.experimental import pallas as pl
from jax.experimental.pallas import tpu as pltpu


# ----------------------------------------------------------------------------
# The single fused Pallas kernel
# ----------------------------------------------------------------------------
def fused_forward_kernel(alpha_ref,                      # SMEM (3,) f32 PReLU alphas
                         p1x_ref,                        # (288, 9)   f32  im2col(x)
                         w1_ref, b1_ref,                 # (9, 64)    f32, (1, 64)  f32
                         w2_ref, b2_ref,                 # (64, 128)  bf16, (1, 128) f32
                         w3_ref, b3_ref,                 # (1152,256) bf16, (1, 256) f32
                         fw1_hbm, fb1_ref,               # HBM (1024,512) bf16, (1,512) f32
                         fw2_hbm, fb2_ref,               # HBM (512,256)  bf16, (1,256) f32
                         fw3_hbm, fb3_ref,               # HBM (256,128)  bf16, (1,128) f32
                         fw4_ref, fb4_ref,               # (128,128) f32, (1,128) f32 (padded)
                         out_ref,                        # (8, 128) f32
                         fw1_vmem, fw2_vmem, fw3_vmem,   # VMEM scratch for FC weights
                         dma_sem):                       # DMA sems (3,)
    f32, bf16 = jnp.float32, jnp.bfloat16

    # --- Kick off FC-weight DMAs now; they overlap conv1..conv3 compute. ------
    cp_fw1 = pltpu.make_async_copy(fw1_hbm, fw1_vmem, dma_sem.at[0])
    cp_fw2 = pltpu.make_async_copy(fw2_hbm, fw2_vmem, dma_sem.at[1])
    cp_fw3 = pltpu.make_async_copy(fw3_hbm, fw3_vmem, dma_sem.at[2])
    cp_fw1.start()
    cp_fw2.start()
    cp_fw3.start()

    a1 = alpha_ref[0]
    a2 = alpha_ref[1]
    a3 = alpha_ref[2]

    def prelu(z, a):
        return jnp.where(z > 0, z, a * z)

    def silu(z):
        return z * jax.nn.sigmoid(z)

    # ---- Block 1: Conv2d(1,64,3) + BN + PReLU as one im2col matmul -----------
    # rows: (h, w, b) with b padded to 8; lanes: 9 taps.
    y1 = jnp.dot(p1x_ref[...], w1_ref[...], preferred_element_type=f32)    # (288, 64)
    y1 = prelu(y1 + b1_ref[...], a1)
    y1 = y1.reshape(6, 6, 8, 64)                                           # (H, W, B, C)

    # ---- AvgPool2d(2, stride=1): leading-dim slices only ---------------------
    p1 = 0.25 * (y1[:-1, :-1] + y1[1:, :-1] + y1[:-1, 1:] + y1[1:, 1:])    # (5,5,8,64)
    p1 = p1.reshape(200, 64).astype(bf16)                                  # cast ONCE

    # ---- Block 2: Conv2d(64,128,1) + BN + PReLU — one (200,64)x(64,128) dot --
    z2 = jnp.dot(p1, w2_ref[...], preferred_element_type=f32)              # (200, 128)
    y2 = prelu(z2 + b2_ref[...], a2).reshape(5, 5, 8, 128)

    # ---- AvgPool2d(2, stride=1) ----------------------------------------------
    p2 = 0.25 * (y2[:-1, :-1] + y2[1:, :-1] + y2[:-1, 1:] + y2[1:, 1:])    # (4,4,8,128)
    p2 = p2.astype(bf16)                                                   # cast ONCE

    # ---- Block 3: Conv2d(128,256,3) + BN + PReLU via K-concatenation ---------
    # One (32, 1152) x (1152, 256) dot: rows = 4 output positions x 8 batch rows,
    # K = 9 taps * 128 channels.
    rows = []
    for ho in range(2):
        for wo in range(2):
            taps = [p2[ho + i, wo + j] for i in range(3) for j in range(3)]  # 9x(8,128)
            rows.append(jnp.concatenate(taps, axis=-1))                      # (8, 1152)
    patches3 = jnp.concatenate(rows, axis=0)                                 # (32, 1152)
    z3 = jnp.dot(patches3, w3_ref[...], preferred_element_type=f32)          # (32, 256)
    feat = prelu(z3 + b3_ref[...], a3)                                       # (32, 256)

    # Re-pack the 4 position blocks along the lane axis -> (8, 1024); fc1's rows
    # were permuted at prep time to match this (= PyTorch NCHW flatten order).
    feat = jnp.concatenate([feat[p * 8:(p + 1) * 8] for p in range(4)],
                           axis=-1).astype(bf16)                             # (8, 1024)

    # ---- FC stack: wait for the overlapped weight DMAs, then 4 dense dots ----
    cp_fw1.wait()
    cp_fw2.wait()
    cp_fw3.wait()

    h1 = silu(jnp.dot(feat, fw1_vmem[...], preferred_element_type=f32)
              + fb1_ref[...])                                                # (8, 512)
    h2 = silu(jnp.dot(h1.astype(bf16), fw2_vmem[...],
                      preferred_element_type=f32) + fb2_ref[...])            # (8, 256)
    h3 = silu(jnp.dot(h2.astype(bf16), fw3_vmem[...],
                      preferred_element_type=f32) + fb3_ref[...])            # (8, 128)
    # Final layer stays f32 end-to-end (negligible cost, tighter output accuracy).
    out_ref[...] = jnp.dot(h3, fw4_ref[...],
                           preferred_element_type=f32) + fb4_ref[...]        # (8, 128)


# ----------------------------------------------------------------------------
# Wrapper: parameter folding / layout plumbing (free) + single pallas_call
# ----------------------------------------------------------------------------
def conv_model2bn_forward(x_nchw, p):
    f32, bf16 = jnp.float32, jnp.bfloat16
    B = x_nchw.shape[0]
    assert B <= 8, "batch is padded onto the 8 sublanes"

    # ---- im2col for conv1: rows = (h, w, b_padded), lanes = 9 taps -----------
    x_hwb = jnp.transpose(x_nchw[:, 0], (1, 2, 0))                 # (8, 8, B)
    x_hwb = jnp.pad(x_hwb, ((0, 0), (0, 0), (0, 8 - B)))           # (8, 8, 8)
    taps = [x_hwb[i:i + 6, j:j + 6, :] for i in range(3) for j in range(3)]
    p1x = jnp.stack(taps, axis=-1).reshape(288, 9).astype(f32)     # (288, 9)

    def fold_bn(conv_b, g, beta, m, v, eps=1e-5):
        s = g / jnp.sqrt(v + eps)                                  # per-out-channel scale
        return s, ((conv_b - m) * s + beta).reshape(1, -1)

    s1, b1 = fold_bn(p["c1_b"], p["bn1_g"], p["bn1_b"], p["bn1_m"], p["bn1_v"])
    s2, b2 = fold_bn(p["c2_b"], p["bn2_g"], p["bn2_b"], p["bn2_m"], p["bn2_v"])
    s3, b3 = fold_bn(p["c3_b"], p["bn3_g"], p["bn3_b"], p["bn3_m"], p["bn3_v"])

    # Conv weights with BN scale folded in, laid out for the kernel's dots.
    w1m = jnp.transpose(p["c1_w"][:, 0] * s1[:, None, None], (1, 2, 0)).reshape(9, 64)
    w2m = (p["c2_w"][:, :, 0, 0] * s2[:, None]).T.astype(bf16)                  # (64, 128)
    w3m = jnp.transpose(p["c3_w"] * s3[:, None, None, None],
                        (2, 3, 1, 0)).reshape(1152, 256).astype(bf16)           # (9*128, 256)

    # fc1 rows regrouped to position-major order p*256 + c (PyTorch flatten is c*4 + p).
    fw1 = jnp.transpose(p["fc1_w"].T.reshape(256, 4, 512),
                        (1, 0, 2)).reshape(1024, 512).astype(bf16)
    fb1 = p["fc1_b"].reshape(1, -1)
    fw2 = p["fc2_w"].T.astype(bf16)
    fb2 = p["fc2_b"].reshape(1, -1)
    fw3 = p["fc3_w"].T.astype(bf16)
    fb3 = p["fc3_b"].reshape(1, -1)
    # fc4 stays f32, padded to a lane-dense N=128 output; wrapper slices back to 4.
    fw4 = jnp.zeros((128, 128), f32).at[:, :4].set(p["fc4_w"].T)
    fb4 = jnp.zeros((1, 128), f32).at[:, :4].set(p["fc4_b"].reshape(1, -1))

    alphas = jnp.stack([p["a1"], p["a2"], p["a3"]]).astype(f32)    # SMEM scalars

    vmem = pl.BlockSpec(memory_space=pltpu.MemorySpace.VMEM)
    smem = pl.BlockSpec(memory_space=pltpu.MemorySpace.SMEM)
    anyspace = pl.BlockSpec(memory_space=pl.ANY)                   # stay in HBM, DMA manually

    out = pl.pallas_call(
        fused_forward_kernel,
        out_shape=jax.ShapeDtypeStruct((8, 128), jnp.float32),
        in_specs=[smem,                       # alphas
                  vmem, vmem, vmem,           # p1x, w1, b1
                  vmem, vmem,                 # w2, b2
                  vmem, vmem,                 # w3, b3
                  anyspace, vmem,             # fw1 (HBM), fb1
                  anyspace, vmem,             # fw2 (HBM), fb2
                  anyspace, vmem,             # fw3 (HBM), fb3
                  vmem, vmem],                # fw4, fb4
        out_specs=vmem,
        scratch_shapes=[pltpu.VMEM((1024, 512), jnp.bfloat16),
                        pltpu.VMEM((512, 256), jnp.bfloat16),
                        pltpu.VMEM((256, 128), jnp.bfloat16),
                        pltpu.SemaphoreType.DMA((3,))],
        cost_estimate=pl.CostEstimate(flops=34_000_000, transcendentals=7_168,
                                      bytes_accessed=2_400_000),
    )(alphas, p1x, w1m.astype(f32), b1, w2m, b2, w3m, b3,
      fw1, fb1, fw2, fb2, fw3, fb3, fw4, fb4)

    return out[:B, :4]


# ----------------------------------------------------------------------------
# Pure-JAX reference mirroring the PyTorch module (inference-mode BN, f32)
# ----------------------------------------------------------------------------
def reference_forward(x_nchw, p):
    def conv2d(x, w, b):
        y = jax.lax.conv_general_dilated(
            x, w, (1, 1), "VALID", dimension_numbers=("NCHW", "OIHW", "NCHW"))
        return y + b.reshape(1, -1, 1, 1)

    def bn(x, g, bt, m, v, eps=1e-5):
        return ((x - m.reshape(1, -1, 1, 1))
                / jnp.sqrt(v.reshape(1, -1, 1, 1) + eps)
                * g.reshape(1, -1, 1, 1) + bt.reshape(1, -1, 1, 1))

    def prelu(x, a):
        return jnp.where(x > 0, x, a * x)

    def avgpool(x):  # NCHW, kernel 2, stride 1
        return 0.25 * (x[:, :, :-1, :-1] + x[:, :, 1:, :-1]
                       + x[:, :, :-1, 1:] + x[:, :, 1:, 1:])

    def silu(x):
        return x * jax.nn.sigmoid(x)

    y = prelu(bn(conv2d(x_nchw, p["c1_w"], p["c1_b"]),
                 p["bn1_g"], p["bn1_b"], p["bn1_m"], p["bn1_v"]), p["a1"])
    y = avgpool(y)
    y = prelu(bn(conv2d(y, p["c2_w"], p["c2_b"]),
                 p["bn2_g"], p["bn2_b"], p["bn2_m"], p["bn2_v"]), p["a2"])
    y = avgpool(y)
    y = prelu(bn(conv2d(y, p["c3_w"], p["c3_b"]),
                 p["bn3_g"], p["bn3_b"], p["bn3_m"], p["bn3_v"]), p["a3"])
    y = y.reshape(y.shape[0], -1)
    y = silu(y @ p["fc1_w"].T + p["fc1_b"])
    y = silu(y @ p["fc2_w"].T + p["fc2_b"])
    y = silu(y @ p["fc3_w"].T + p["fc3_b"])
    y = y @ p["fc4_w"].T + p["fc4_b"]
    return y


# ----------------------------------------------------------------------------
# Deterministic parameter construction
# ----------------------------------------------------------------------------
def make_params(key):
    keys = iter(jax.random.split(key, 64))
    f32 = jnp.float32

    def nrm(shape, scale=0.1):
        return (scale * jax.random.normal(next(keys), shape)).astype(f32)

    def uni(shape, lo, hi):
        return jax.random.uniform(next(keys), shape, minval=lo, maxval=hi).astype(f32)

    p = {}
    # conv blocks
    p["c1_w"], p["c1_b"] = nrm((64, 1, 3, 3)), nrm((64,))
    p["bn1_g"], p["bn1_b"] = uni((64,), 0.5, 1.5), nrm((64,))
    p["bn1_m"], p["bn1_v"] = nrm((64,)), uni((64,), 0.5, 1.5)
    p["a1"] = uni((), 0.1, 0.5)

    p["c2_w"], p["c2_b"] = nrm((128, 64, 1, 1)), nrm((128,))
    p["bn2_g"], p["bn2_b"] = uni((128,), 0.5, 1.5), nrm((128,))
    p["bn2_m"], p["bn2_v"] = nrm((128,)), uni((128,), 0.5, 1.5)
    p["a2"] = uni((), 0.1, 0.5)

    p["c3_w"], p["c3_b"] = nrm((256, 128, 3, 3), 0.05), nrm((256,))
    p["bn3_g"], p["bn3_b"] = uni((256,), 0.5, 1.5), nrm((256,))
    p["bn3_m"], p["bn3_v"] = nrm((256,)), uni((256,), 0.5, 1.5)
    p["a3"] = uni((), 0.1, 0.5)

    # fc stack (PyTorch Linear weight shape: (out, in))
    p["fc1_w"], p["fc1_b"] = nrm((512, 1024), 0.03), nrm((512,))
    p["fc2_w"], p["fc2_b"] = nrm((256, 512), 0.05), nrm((256,))
    p["fc3_w"], p["fc3_b"] = nrm((128, 256), 0.05), nrm((128,))
    p["fc4_w"], p["fc4_b"] = nrm((4, 128), 0.05), nrm((4,))
    return p


# ----------------------------------------------------------------------------
if __name__ == "__main__":
    key = jax.random.PRNGKey(0)
    k_x, k_p = jax.random.split(key)

    # Input spatial size 8x8, 1 channel, so the flattened conv output is exactly
    # 1024 (256 channels * 2 * 2), matching nn.Linear(1024, 512).
    x = jax.random.normal(k_x, (2, 1, 8, 8), dtype=jnp.float32)   # NCHW like PyTorch
    params = make_params(k_p)

    fwd = jax.jit(conv_model2bn_forward)
    out = jax.block_until_ready(fwd(x, params))

    ref = jax.block_until_ready(reference_forward(x, params))
    np.testing.assert_allclose(np.asarray(out), np.asarray(ref),
                               rtol=2e-2, atol=2e-2)
    assert out.shape == (2, 4)

    print("KERNEL_OK")
</pallas_src>

<mosaic_0001>
module attributes {stable_mosaic.version = 11 : i64} {
  func.func @fused_forward_kernel(%arg0: memref<3xf32, #tpu.memory_space<smem>>, %arg1: memref<288x9xf32, #tpu.memory_space<vmem>>, %arg2: memref<9x64xf32, #tpu.memory_space<vmem>>, %arg3: memref<1x64xf32, #tpu.memory_space<vmem>>, %arg4: memref<64x128xbf16, #tpu.memory_space<vmem>>, %arg5: memref<1x128xf32, #tpu.memory_space<vmem>>, %arg6: memref<1152x256xbf16, #tpu.memory_space<vmem>>, %arg7: memref<1x256xf32, #tpu.memory_space<vmem>>, %arg8: memref<1024x512xbf16, #tpu.memory_space<any>>, %arg9: memref<1x512xf32, #tpu.memory_space<vmem>>, %arg10: memref<512x256xbf16, #tpu.memory_space<any>>, %arg11: memref<1x256xf32, #tpu.memory_space<vmem>>, %arg12: memref<256x128xbf16, #tpu.memory_space<any>>, %arg13: memref<1x128xf32, #tpu.memory_space<vmem>>, %arg14: memref<128x128xf32, #tpu.memory_space<vmem>>, %arg15: memref<1x128xf32, #tpu.memory_space<vmem>>, %arg16: memref<8x128xf32, #tpu.memory_space<vmem>>, %arg17: memref<1024x512xbf16, #tpu.memory_space<vmem>>, %arg18: memref<512x256xbf16, #tpu.memory_space<vmem>>, %arg19: memref<256x128xbf16, #tpu.memory_space<vmem>>, %arg20: memref<3x!tpu.dma_semaphore, #tpu.memory_space<semaphore_mem>>) attributes {dimension_semantics = [], scalar_prefetch = 0 : i64, scratch_operands = 4 : i64, tpu.core_type = #tpu.core_type<tc>} {
    %c0_i32 = arith.constant 0 : i32
    %0 = tpu.memref_slice %arg20[%c0_i32] : memref<3x!tpu.dma_semaphore, #tpu.memory_space<semaphore_mem>> -> memref<1x!tpu.dma_semaphore, #tpu.memory_space<semaphore_mem>>
    %1 = tpu.memref_squeeze %0 : memref<1x!tpu.dma_semaphore, #tpu.memory_space<semaphore_mem>> -> memref<!tpu.dma_semaphore, #tpu.memory_space<semaphore_mem>>
    tpu.enqueue_dma source(%arg8 : memref<1024x512xbf16, #tpu.memory_space<any>>) target(%arg17 : memref<1024x512xbf16, #tpu.memory_space<vmem>>) target_semaphore(%1 : memref<!tpu.dma_semaphore, #tpu.memory_space<semaphore_mem>>)
    %c1_i32 = arith.constant 1 : i32
    %2 = tpu.memref_slice %arg20[%c1_i32] : memref<3x!tpu.dma_semaphore, #tpu.memory_space<semaphore_mem>> -> memref<1x!tpu.dma_semaphore, #tpu.memory_space<semaphore_mem>>
    %3 = tpu.memref_squeeze %2 : memref<1x!tpu.dma_semaphore, #tpu.memory_space<semaphore_mem>> -> memref<!tpu.dma_semaphore, #tpu.memory_space<semaphore_mem>>
    tpu.enqueue_dma source(%arg10 : memref<512x256xbf16, #tpu.memory_space<any>>) target(%arg18 : memref<512x256xbf16, #tpu.memory_space<vmem>>) target_semaphore(%3 : memref<!tpu.dma_semaphore, #tpu.memory_space<semaphore_mem>>)
    %c2_i32 = arith.constant 2 : i32
    %4 = tpu.memref_slice %arg20[%c2_i32] : memref<3x!tpu.dma_semaphore, #tpu.memory_space<semaphore_mem>> -> memref<1x!tpu.dma_semaphore, #tpu.memory_space<semaphore_mem>>
    %5 = tpu.memref_squeeze %4 : memref<1x!tpu.dma_semaphore, #tpu.memory_space<semaphore_mem>> -> memref<!tpu.dma_semaphore, #tpu.memory_space<semaphore_mem>>
    tpu.enqueue_dma source(%arg12 : memref<256x128xbf16, #tpu.memory_space<any>>) target(%arg19 : memref<256x128xbf16, #tpu.memory_space<vmem>>) target_semaphore(%5 : memref<!tpu.dma_semaphore, #tpu.memory_space<semaphore_mem>>)
    %c0 = arith.constant 0 : index
    %6 = memref.load %arg0[%c0] : memref<3xf32, #tpu.memory_space<smem>>
    %c1 = arith.constant 1 : index
    %7 = memref.load %arg0[%c1] : memref<3xf32, #tpu.memory_space<smem>>
    %c2 = arith.constant 2 : index
    %8 = memref.load %arg0[%c2] : memref<3xf32, #tpu.memory_space<smem>>
    %c0_0 = arith.constant 0 : index
    %c0_1 = arith.constant 0 : index
    %9 = vector.load %arg1[%c0_0, %c0_1] : memref<288x9xf32, #tpu.memory_space<vmem>>, vector<288x9xf32>
    %c0_2 = arith.constant 0 : index
    %c0_3 = arith.constant 0 : index
    %10 = vector.load %arg2[%c0_2, %c0_3] : memref<9x64xf32, #tpu.memory_space<vmem>>, vector<9x64xf32>
    %cst = arith.constant dense<0.000000e+00> : vector<288x64xf32>
    %11 = tpu.matmul %9, %10, %cst {dimension_numbers = #tpu.dot_dimension_numbers<[1], [0], [0], [1], [0, 0, 1, 1], [], []>} : vector<288x9xf32>, vector<9x64xf32>, vector<288x64xf32> -> vector<288x64xf32>
    %c0_4 = arith.constant 0 : index
    %c0_5 = arith.constant 0 : index
    %12 = vector.load %arg3[%c0_4, %c0_5] : memref<1x64xf32, #tpu.memory_space<vmem>>, vector<1x64xf32>
    %13 = vector.broadcast %12 : vector<1x64xf32> to vector<288x64xf32>
    %14 = arith.addf %11, %13 : vector<288x64xf32>
    %cst_6 = arith.constant 0.000000e+00 : f32
    %15 = vector.broadcast %cst_6 : f32 to vector<288x64xf32>
    %16 = arith.cmpf ogt, %14, %15 : vector<288x64xf32>
    %17 = vector.broadcast %6 : f32 to vector<288x64xf32>
    %18 = arith.mulf %17, %14 : vector<288x64xf32>
    %19 = arith.select %16, %14, %18 : vector<288x64xi1>, vector<288x64xf32>
    %20 = vector.shape_cast %19 : vector<288x64xf32> to vector<6x6x8x64xf32>
    %21 = vector.extract_strided_slice %20 {offsets = [0, 0, 0, 0], sizes = [5, 5, 8, 64], strides = [1, 1, 1, 1]} : vector<6x6x8x64xf32> to vector<5x5x8x64xf32>
    %22 = vector.extract_strided_slice %20 {offsets = [1, 0, 0, 0], sizes = [5, 5, 8, 64], strides = [1, 1, 1, 1]} : vector<6x6x8x64xf32> to vector<5x5x8x64xf32>
    %23 = arith.addf %21, %22 : vector<5x5x8x64xf32>
    %24 = vector.extract_strided_slice %20 {offsets = [0, 1, 0, 0], sizes = [5, 5, 8, 64], strides = [1, 1, 1, 1]} : vector<6x6x8x64xf32> to vector<5x5x8x64xf32>
    %25 = arith.addf %23, %24 : vector<5x5x8x64xf32>
    %26 = vector.extract_strided_slice %20 {offsets = [1, 1, 0, 0], sizes = [5, 5, 8, 64], strides = [1, 1, 1, 1]} : vector<6x6x8x64xf32> to vector<5x5x8x64xf32>
    %27 = arith.addf %25, %26 : vector<5x5x8x64xf32>
    %cst_7 = arith.constant 2.500000e-01 : f32
    %28 = vector.broadcast %cst_7 : f32 to vector<5x5x8x64xf32>
    %29 = arith.mulf %28, %27 : vector<5x5x8x64xf32>
    %30 = vector.shape_cast %29 : vector<5x5x8x64xf32> to vector<200x64xf32>
    %31 = arith.truncf %30 : vector<200x64xf32> to vector<200x64xbf16>
    %c0_8 = arith.constant 0 : index
    %c0_9 = arith.constant 0 : index
    %32 = vector.load %arg4[%c0_8, %c0_9] : memref<64x128xbf16, #tpu.memory_space<vmem>>, vector<64x128xbf16>
    %cst_10 = arith.constant dense<0.000000e+00> : vector<200x128xf32>
    %33 = tpu.matmul %31, %32, %cst_10 {dimension_numbers = #tpu.dot_dimension_numbers<[1], [0], [0], [1], [0, 0, 1, 1], [], []>} : vector<200x64xbf16>, vector<64x128xbf16>, vector<200x128xf32> -> vector<200x128xf32>
    %c0_11 = arith.constant 0 : index
    %c0_12 = arith.constant 0 : index
    %34 = vector.load %arg5[%c0_11, %c0_12] : memref<1x128xf32, #tpu.memory_space<vmem>>, vector<1x128xf32>
    %35 = vector.broadcast %34 : vector<1x128xf32> to vector<200x128xf32>
    %36 = arith.addf %33, %35 : vector<200x128xf32>
    %cst_13 = arith.constant 0.000000e+00 : f32
    %37 = vector.broadcast %cst_13 : f32 to vector<200x128xf32>
    %38 = arith.cmpf ogt, %36, %37 : vector<200x128xf32>
    %39 = vector.broadcast %7 : f32 to vector<200x128xf32>
    %40 = arith.mulf %39, %36 : vector<200x128xf32>
    %41 = arith.select %38, %36, %40 : vector<200x128xi1>, vector<200x128xf32>
    %42 = vector.shape_cast %41 : vector<200x128xf32> to vector<5x5x8x128xf32>
    %43 = vector.extract_strided_slice %42 {offsets = [0, 0, 0, 0], sizes = [4, 4, 8, 128], strides = [1, 1, 1, 1]} : vector<5x5x8x128xf32> to vector<4x4x8x128xf32>
    %44 = vector.extract_strided_slice %42 {offsets = [1, 0, 0, 0], sizes = [4, 4, 8, 128], strides = [1, 1, 1, 1]} : vector<5x5x8x128xf32> to vector<4x4x8x128xf32>
    %45 = arith.addf %43, %44 : vector<4x4x8x128xf32>
    %46 = vector.extract_strided_slice %42 {offsets = [0, 1, 0, 0], sizes = [4, 4, 8, 128], strides = [1, 1, 1, 1]} : vector<5x5x8x128xf32> to vector<4x4x8x128xf32>
    %47 = arith.addf %45, %46 : vector<4x4x8x128xf32>
    %48 = vector.extract_strided_slice %42 {offsets = [1, 1, 0, 0], sizes = [4, 4, 8, 128], strides = [1, 1, 1, 1]} : vector<5x5x8x128xf32> to vector<4x4x8x128xf32>
    %49 = arith.addf %47, %48 : vector<4x4x8x128xf32>
    %cst_14 = arith.constant 2.500000e-01 : f32
    %50 = vector.broadcast %cst_14 : f32 to vector<4x4x8x128xf32>
    %51 = arith.mulf %50, %49 : vector<4x4x8x128xf32>
    %52 = arith.truncf %51 : vector<4x4x8x128xf32> to vector<4x4x8x128xbf16>
    %53 = vector.extract_strided_slice %52 {offsets = [0, 0, 0, 0], sizes = [1, 1, 8, 128], strides = [1, 1, 1, 1]} : vector<4x4x8x128xbf16> to vector<1x1x8x128xbf16>
    %54 = vector.shape_cast %53 : vector<1x1x8x128xbf16> to vector<8x128xbf16>
    %55 = vector.extract_strided_slice %52 {offsets = [0, 1, 0, 0], sizes = [1, 1, 8, 128], strides = [1, 1, 1, 1]} : vector<4x4x8x128xbf16> to vector<1x1x8x128xbf16>
    %56 = vector.shape_cast %55 : vector<1x1x8x128xbf16> to vector<8x128xbf16>
    %57 = vector.extract_strided_slice %52 {offsets = [0, 2, 0, 0], sizes = [1, 1, 8, 128], strides = [1, 1, 1, 1]} : vector<4x4x8x128xbf16> to vector<1x1x8x128xbf16>
    %58 = vector.shape_cast %57 : vector<1x1x8x128xbf16> to vector<8x128xbf16>
    %59 = vector.extract_strided_slice %52 {offsets = [1, 0, 0, 0], sizes = [1, 1, 8, 128], strides = [1, 1, 1, 1]} : vector<4x4x8x128xbf16> to vector<1x1x8x128xbf16>
    %60 = vector.shape_cast %59 : vector<1x1x8x128xbf16> to vector<8x128xbf16>
    %61 = vector.extract_strided_slice %52 {offsets = [1, 1, 0, 0], sizes = [1, 1, 8, 128], strides = [1, 1, 1, 1]} : vector<4x4x8x128xbf16> to vector<1x1x8x128xbf16>
    %62 = vector.shape_cast %61 : vector<1x1x8x128xbf16> to vector<8x128xbf16>
    %63 = vector.extract_strided_slice %52 {offsets = [1, 2, 0, 0], sizes = [1, 1, 8, 128], strides = [1, 1, 1, 1]} : vector<4x4x8x128xbf16> to vector<1x1x8x128xbf16>
    %64 = vector.shape_cast %63 : vector<1x1x8x128xbf16> to vector<8x128xbf16>
    %65 = vector.extract_strided_slice %52 {offsets = [2, 0, 0, 0], sizes = [1, 1, 8, 128], strides = [1, 1, 1, 1]} : vector<4x4x8x128xbf16> to vector<1x1x8x128xbf16>
    %66 = vector.shape_cast %65 : vector<1x1x8x128xbf16> to vector<8x128xbf16>
    %67 = vector.extract_strided_slice %52 {offsets = [2, 1, 0, 0], sizes = [1, 1, 8, 128], strides = [1, 1, 1, 1]} : vector<4x4x8x128xbf16> to vector<1x1x8x128xbf16>
    %68 = vector.shape_cast %67 : vector<1x1x8x128xbf16> to vector<8x128xbf16>
    %69 = vector.extract_strided_slice %52 {offsets = [2, 2, 0, 0], sizes = [1, 1, 8, 128], strides = [1, 1, 1, 1]} : vector<4x4x8x128xbf16> to vector<1x1x8x128xbf16>
    %70 = vector.shape_cast %69 : vector<1x1x8x128xbf16> to vector<8x128xbf16>
    %71 = tpu.concatenate %54, %56, %58, %60, %62, %64, %66, %68, %70 in 1 : vector<8x128xbf16>, vector<8x128xbf16>, vector<8x128xbf16>, vector<8x128xbf16>, vector<8x128xbf16>, vector<8x128xbf16>, vector<8x128xbf16>, vector<8x128xbf16>, vector<8x128xbf16> -> vector<8x1152xbf16>
    %72 = vector.extract_strided_slice %52 {offsets = [0, 1, 0, 0], sizes = [1, 1, 8, 128], strides = [1, 1, 1, 1]} : vector<4x4x8x128xbf16> to vector<1x1x8x128xbf16>
    %73 = vector.shape_cast %72 : vector<1x1x8x128xbf16> to vector<8x128xbf16>
    %74 = vector.extract_strided_slice %52 {offsets = [0, 2, 0, 0], sizes = [1, 1, 8, 128], strides = [1, 1, 1, 1]} : vector<4x4x8x128xbf16> to vector<1x1x8x128xbf16>
    %75 = vector.shape_cast %74 : vector<1x1x8x128xbf16> to vector<8x128xbf16>
    %76 = vector.extract_strided_slice %52 {offsets = [0, 3, 0, 0], sizes = [1, 1, 8, 128], strides = [1, 1, 1, 1]} : vector<4x4x8x128xbf16> to vector<1x1x8x128xbf16>
    %77 = vector.shape_cast %76 : vector<1x1x8x128xbf16> to vector<8x128xbf16>
    %78 = vector.extract_strided_slice %52 {offsets = [1, 1, 0, 0], sizes = [1, 1, 8, 128], strides = [1, 1, 1, 1]} : vector<4x4x8x128xbf16> to vector<1x1x8x128xbf16>
    %79 = vector.shape_cast %78 : vector<1x1x8x128xbf16> to vector<8x128xbf16>
    %80 = vector.extract_strided_slice %52 {offsets = [1, 2, 0, 0], sizes = [1, 1, 8, 128], strides = [1, 1, 1, 1]} : vector<4x4x8x128xbf16> to vector<1x1x8x128xbf16>
    %81 = vector.shape_cast %80 : vector<1x1x8x128xbf16> to vector<8x128xbf16>
    %82 = vector.extract_strided_slice %52 {offsets = [1, 3, 0, 0], sizes = [1, 1, 8, 128], strides = [1, 1, 1, 1]} : vector<4x4x8x128xbf16> to vector<1x1x8x128xbf16>
    %83 = vector.shape_cast %82 : vector<1x1x8x128xbf16> to vector<8x128xbf16>
    %84 = vector.extract_strided_slice %52 {offsets = [2, 1, 0, 0], sizes = [1, 1, 8, 128], strides = [1, 1, 1, 1]} : vector<4x4x8x128xbf16> to vector<1x1x8x128xbf16>
    %85 = vector.shape_cast %84 : vector<1x1x8x128xbf16> to vector<8x128xbf16>
    %86 = vector.extract_strided_slice %52 {offsets = [2, 2, 0, 0], sizes = [1, 1, 8, 128], strides = [1, 1, 1, 1]} : vector<4x4x8x128xbf16> to vector<1x1x8x128xbf16>
    %87 = vector.shape_cast %86 : vector<1x1x8x128xbf16> to vector<8x128xbf16>
    %88 = vector.extract_strided_slice %52 {offsets = [2, 3, 0, 0], sizes = [1, 1, 8, 128], strides = [1, 1, 1, 1]} : vector<4x4x8x128xbf16> to vector<1x1x8x128xbf16>
    %89 = vector.shape_cast %88 : vector<1x1x8x128xbf16> to vector<8x128xbf16>
    %90 = tpu.concatenate %73, %75, %77, %79, %81, %83, %85, %87, %89 in 1 : vector<8x128xbf16>, vector<8x128xbf16>, vector<8x128xbf16>, vector<8x128xbf16>, vector<8x128xbf16>, vector<8x128xbf16>, vector<8x128xbf16>, vector<8x128xbf16>, vector<8x128xbf16> -> vector<8x1152xbf16>
    %91 = vector.extract_strided_slice %52 {offsets = [1, 0, 0, 0], sizes = [1, 1, 8, 128], strides = [1, 1, 1, 1]} : vector<4x4x8x128xbf16> to vector<1x1x8x128xbf16>
    %92 = vector.shape_cast %91 : vector<1x1x8x128xbf16> to vector<8x128xbf16>
    %93 = vector.extract_strided_slice %52 {offsets = [1, 1, 0, 0], sizes = [1, 1, 8, 128], strides = [1, 1, 1, 1]} : vector<4x4x8x128xbf16> to vector<1x1x8x128xbf16>
    %94 = vector.shape_cast %93 : vector<1x1x8x128xbf16> to vector<8x128xbf16>
    %95 = vector.extract_strided_slice %52 {offsets = [1, 2, 0, 0], sizes = [1, 1, 8, 128], strides = [1, 1, 1, 1]} : vector<4x4x8x128xbf16> to vector<1x1x8x128xbf16>
    %96 = vector.shape_cast %95 : vector<1x1x8x128xbf16> to vector<8x128xbf16>
    %97 = vector.extract_strided_slice %52 {offsets = [2, 0, 0, 0], sizes = [1, 1, 8, 128], strides = [1, 1, 1, 1]} : vector<4x4x8x128xbf16> to vector<1x1x8x128xbf16>
    %98 = vector.shape_cast %97 : vector<1x1x8x128xbf16> to vector<8x128xbf16>
    %99 = vector.extract_strided_slice %52 {offsets = [2, 1, 0, 0], sizes = [1, 1, 8, 128], strides = [1, 1, 1, 1]} : vector<4x4x8x128xbf16> to vector<1x1x8x128xbf16>
    %100 = vector.shape_cast %99 : vector<1x1x8x128xbf16> to vector<8x128xbf16>
    %101 = vector.extract_strided_slice %52 {offsets = [2, 2, 0, 0], sizes = [1, 1, 8, 128], strides = [1, 1, 1, 1]} : vector<4x4x8x128xbf16> to vector<1x1x8x128xbf16>
    %102 = vector.shape_cast %101 : vector<1x1x8x128xbf16> to vector<8x128xbf16>
    %103 = vector.extract_strided_slice %52 {offsets = [3, 0, 0, 0], sizes = [1, 1, 8, 128], strides = [1, 1, 1, 1]} : vector<4x4x8x128xbf16> to vector<1x1x8x128xbf16>
    %104 = vector.shape_cast %103 : vector<1x1x8x128xbf16> to vector<8x128xbf16>
    %105 = vector.extract_strided_slice %52 {offsets = [3, 1, 0, 0], sizes = [1, 1, 8, 128], strides = [1, 1, 1, 1]} : vector<4x4x8x128xbf16> to vector<1x1x8x128xbf16>
    %106 = vector.shape_cast %105 : vector<1x1x8x128xbf16> to vector<8x128xbf16>
    %107 = vector.extract_strided_slice %52 {offsets = [3, 2, 0, 0], sizes = [1, 1, 8, 128], strides = [1, 1, 1, 1]} : vector<4x4x8x128xbf16> to vector<1x1x8x128xbf16>
    %108 = vector.shape_cast %107 : vector<1x1x8x128xbf16> to vector<8x128xbf16>
    %109 = tpu.concatenate %92, %94, %96, %98, %100, %102, %104, %106, %108 in 1 : vector<8x128xbf16>, vector<8x128xbf16>, vector<8x128xbf16>, vector<8x128xbf16>, vector<8x128xbf16>, vector<8x128xbf16>, vector<8x128xbf16>, vector<8x128xbf16>, vector<8x128xbf16> -> vector<8x1152xbf16>
    %110 = vector.extract_strided_slice %52 {offsets = [1, 1, 0, 0], sizes = [1, 1, 8, 128], strides = [1, 1, 1, 1]} : vector<4x4x8x128xbf16> to vector<1x1x8x128xbf16>
    %111 = vector.shape_cast %110 : vector<1x1x8x128xbf16> to vector<8x128xbf16>
    %112 = vector.extract_strided_slice %52 {offsets = [1, 2, 0, 0], sizes = [1, 1, 8, 128], strides = [1, 1, 1, 1]} : vector<4x4x8x128xbf16> to vector<1x1x8x128xbf16>
    %113 = vector.shape_cast %112 : vector<1x1x8x128xbf16> to vector<8x128xbf16>
    %114 = vector.extract_strided_slice %52 {offsets = [1, 3, 0, 0], sizes = [1, 1, 8, 128], strides = [1, 1, 1, 1]} : vector<4x4x8x128xbf16> to vector<1x1x8x128xbf16>
    %115 = vector.shape_cast %114 : vector<1x1x8x128xbf16> to vector<8x128xbf16>
    %116 = vector.extract_strided_slice %52 {offsets = [2, 1, 0, 0], sizes = [1, 1, 8, 128], strides = [1, 1, 1, 1]} : vector<4x4x8x128xbf16> to vector<1x1x8x128xbf16>
    %117 = vector.shape_cast %116 : vector<1x1x8x128xbf16> to vector<8x128xbf16>
    %118 = vector.extract_strided_slice %52 {offsets = [2, 2, 0, 0], sizes = [1, 1, 8, 128], strides = [1, 1, 1, 1]} : vector<4x4x8x128xbf16> to vector<1x1x8x128xbf16>
    %119 = vector.shape_cast %118 : vector<1x1x8x128xbf16> to vector<8x128xbf16>
    %120 = vector.extract_strided_slice %52 {offsets = [2, 3, 0, 0], sizes = [1, 1, 8, 128], strides = [1, 1, 1, 1]} : vector<4x4x8x128xbf16> to vector<1x1x8x128xbf16>
    %121 = vector.shape_cast %120 : vector<1x1x8x128xbf16> to vector<8x128xbf16>
    %122 = vector.extract_strided_slice %52 {offsets = [3, 1, 0, 0], sizes = [1, 1, 8, 128], strides = [1, 1, 1, 1]} : vector<4x4x8x128xbf16> to vector<1x1x8x128xbf16>
    %123 = vector.shape_cast %122 : vector<1x1x8x128xbf16> to vector<8x128xbf16>
    %124 = vector.extract_strided_slice %52 {offsets = [3, 2, 0, 0], sizes = [1, 1, 8, 128], strides = [1, 1, 1, 1]} : vector<4x4x8x128xbf16> to vector<1x1x8x128xbf16>
    %125 = vector.shape_cast %124 : vector<1x1x8x128xbf16> to vector<8x128xbf16>
    %126 = vector.extract_strided_slice %52 {offsets = [3, 3, 0, 0], sizes = [1, 1, 8, 128], strides = [1, 1, 1, 1]} : vector<4x4x8x128xbf16> to vector<1x1x8x128xbf16>
    %127 = vector.shape_cast %126 : vector<1x1x8x128xbf16> to vector<8x128xbf16>
    %128 = tpu.concatenate %111, %113, %115, %117, %119, %121, %123, %125, %127 in 1 : vector<8x128xbf16>, vector<8x128xbf16>, vector<8x128xbf16>, vector<8x128xbf16>, vector<8x128xbf16>, vector<8x128xbf16>, vector<8x128xbf16>, vector<8x128xbf16>, vector<8x128xbf16> -> vector<8x1152xbf16>
    %129 = tpu.concatenate %71, %90, %109, %128 in 0 : vector<8x1152xbf16>, vector<8x1152xbf16>, vector<8x1152xbf16>, vector<8x1152xbf16> -> vector<32x1152xbf16>
    %c0_15 = arith.constant 0 : index
    %c0_16 = arith.constant 0 : index
    %130 = vector.load %arg6[%c0_15, %c0_16] : memref<1152x256xbf16, #tpu.memory_space<vmem>>, vector<1152x256xbf16>
    %cst_17 = arith.constant dense<0.000000e+00> : vector<32x256xf32>
    %131 = tpu.matmul %129, %130, %cst_17 {dimension_numbers = #tpu.dot_dimension_numbers<[1], [0], [0], [1], [0, 0, 1, 1], [], []>} : vector<32x1152xbf16>, vector<1152x256xbf16>, vector<32x256xf32> -> vector<32x256xf32>
    %c0_18 = arith.constant 0 : index
    %c0_19 = arith.constant 0 : index
    %132 = vector.load %arg7[%c0_18, %c0_19] : memref<1x256xf32, #tpu.memory_space<vmem>>, vector<1x256xf32>
    %133 = vector.broadcast %132 : vector<1x256xf32> to vector<32x256xf32>
    %134 = arith.addf %131, %133 : vector<32x256xf32>
    %cst_20 = arith.constant 0.000000e+00 : f32
    %135 = vector.broadcast %cst_20 : f32 to vector<32x256xf32>
    %136 = arith.cmpf ogt, %134, %135 : vector<32x256xf32>
    %137 = vector.broadcast %8 : f32 to vector<32x256xf32>
    %138 = arith.mulf %137, %134 : vector<32x256xf32>
    %139 = arith.select %136, %134, %138 : vector<32x256xi1>, vector<32x256xf32>
    %140 = vector.extract_strided_slice %139 {offsets = [0, 0], sizes = [8, 256], strides = [1, 1]} : vector<32x256xf32> to vector<8x256xf32>
    %141 = vector.extract_strided_slice %139 {offsets = [8, 0], sizes = [8, 256], strides = [1, 1]} : vector<32x256xf32> to vector<8x256xf32>
    %142 = vector.extract_strided_slice %139 {offsets = [16, 0], sizes = [8, 256], strides = [1, 1]} : vector<32x256xf32> to vector<8x256xf32>
    %143 = vector.extract_strided_slice %139 {offsets = [24, 0], sizes = [8, 256], strides = [1, 1]} : vector<32x256xf32> to vector<8x256xf32>
    %144 = tpu.concatenate %140, %141, %142, %143 in 1 : vector<8x256xf32>, vector<8x256xf32>, vector<8x256xf32>, vector<8x256xf32> -> vector<8x1024xf32>
    %145 = arith.truncf %144 : vector<8x1024xf32> to vector<8x1024xbf16>
    %c0_i32_21 = arith.constant 0 : i32
    %146 = tpu.memref_slice %arg20[%c0_i32_21] : memref<3x!tpu.dma_semaphore, #tpu.memory_space<semaphore_mem>> -> memref<1x!tpu.dma_semaphore, #tpu.memory_space<semaphore_mem>>
    %147 = tpu.memref_squeeze %146 : memref<1x!tpu.dma_semaphore, #tpu.memory_space<semaphore_mem>> -> memref<!tpu.dma_semaphore, #tpu.memory_space<semaphore_mem>>
    tpu.wait_dma2 semaphore(%147 : memref<!tpu.dma_semaphore, #tpu.memory_space<semaphore_mem>>) src(%arg8 : memref<1024x512xbf16, #tpu.memory_space<any>>) dst(%arg17 : memref<1024x512xbf16, #tpu.memory_space<vmem>>)
    %c1_i32_22 = arith.constant 1 : i32
    %148 = tpu.memref_slice %arg20[%c1_i32_22] : memref<3x!tpu.dma_semaphore, #tpu.memory_space<semaphore_mem>> -> memref<1x!tpu.dma_semaphore, #tpu.memory_space<semaphore_mem>>
    %149 = tpu.memref_squeeze %148 : memref<1x!tpu.dma_semaphore, #tpu.memory_space<semaphore_mem>> -> memref<!tpu.dma_semaphore, #tpu.memory_space<semaphore_mem>>
    tpu.wait_dma2 semaphore(%149 : memref<!tpu.dma_semaphore, #tpu.memory_space<semaphore_mem>>) src(%arg10 : memref<512x256xbf16, #tpu.memory_space<any>>) dst(%arg18 : memref<512x256xbf16, #tpu.memory_space<vmem>>)
    %c2_i32_23 = arith.constant 2 : i32
    %150 = tpu.memref_slice %arg20[%c2_i32_23] : memref<3x!tpu.dma_semaphore, #tpu.memory_space<semaphore_mem>> -> memref<1x!tpu.dma_semaphore, #tpu.memory_space<semaphore_mem>>
    %151 = tpu.memref_squeeze %150 : memref<1x!tpu.dma_semaphore, #tpu.memory_space<semaphore_mem>> -> memref<!tpu.dma_semaphore, #tpu.memory_space<semaphore_mem>>
    tpu.wait_dma2 semaphore(%151 : memref<!tpu.dma_semaphore, #tpu.memory_space<semaphore_mem>>) src(%arg12 : memref<256x128xbf16, #tpu.memory_space<any>>) dst(%arg19 : memref<256x128xbf16, #tpu.memory_space<vmem>>)
    %c0_24 = arith.constant 0 : index
    %c0_25 = arith.constant 0 : index
    %152 = vector.load %arg17[%c0_24, %c0_25] : memref<1024x512xbf16, #tpu.memory_space<vmem>>, vector<1024x512xbf16>
    %cst_26 = arith.constant dense<0.000000e+00> : vector<8x512xf32>
    %153 = tpu.matmul %145, %152, %cst_26 {dimension_numbers = #tpu.dot_dimension_numbers<[1], [0], [0], [1], [0, 0, 1, 1], [], []>} : vector<8x1024xbf16>, vector<1024x512xbf16>, vector<8x512xf32> -> vector<8x512xf32>
    %c0_27 = arith.constant 0 : index
    %c0_28 = arith.constant 0 : index
    %154 = vector.load %arg9[%c0_27, %c0_28] : memref<1x512xf32, #tpu.memory_space<vmem>>, vector<1x512xf32>
    %155 = vector.broadcast %154 : vector<1x512xf32> to vector<8x512xf32>
    %156 = arith.addf %153, %155 : vector<8x512xf32>
    %157 = arith.negf %156 : vector<8x512xf32>
    %158 = math.exp %157 : vector<8x512xf32>
    %cst_29 = arith.constant 1.000000e+00 : f32
    %159 = vector.broadcast %cst_29 : f32 to vector<8x512xf32>
    %160 = arith.addf %159, %158 : vector<8x512xf32>
    %161 = arith.divf %159, %160 : vector<8x512xf32>
    %162 = arith.mulf %156, %161 : vector<8x512xf32>
    %163 = arith.truncf %162 : vector<8x512xf32> to vector<8x512xbf16>
    %c0_30 = arith.constant 0 : index
    %c0_31 = arith.constant 0 : index
    %164 = vector.load %arg18[%c0_30, %c0_31] : memref<512x256xbf16, #tpu.memory_space<vmem>>, vector<512x256xbf16>
    %cst_32 = arith.constant dense<0.000000e+00> : vector<8x256xf32>
    %165 = tpu.matmul %163, %164, %cst_32 {dimension_numbers = #tpu.dot_dimension_numbers<[1], [0], [0], [1], [0, 0, 1, 1], [], []>} : vector<8x512xbf16>, vector<512x256xbf16>, vector<8x256xf32> -> vector<8x256xf32>
    %c0_33 = arith.constant 0 : index
    %c0_34 = arith.constant 0 : index
    %166 = vector.load %arg11[%c0_33, %c0_34] : memref<1x256xf32, #tpu.memory_space<vmem>>, vector<1x256xf32>
    %167 = vector.broadcast %166 : vector<1x256xf32> to vector<8x256xf32>
    %168 = arith.addf %165, %167 : vector<8x256xf32>
    %169 = arith.negf %168 : vector<8x256xf32>
    %170 = math.exp %169 : vector<8x256xf32>
    %cst_35 = arith.constant 1.000000e+00 : f32
    %171 = vector.broadcast %cst_35 : f32 to vector<8x256xf32>
    %172 = arith.addf %171, %170 : vector<8x256xf32>
    %173 = arith.divf %171, %172 : vector<8x256xf32>
    %174 = arith.mulf %168, %173 : vector<8x256xf32>
    %175 = arith.truncf %174 : vector<8x256xf32> to vector<8x256xbf16>
    %c0_36 = arith.constant 0 : index
    %c0_37 = arith.constant 0 : index
    %176 = vector.load %arg19[%c0_36, %c0_37] : memref<256x128xbf16, #tpu.memory_space<vmem>>, vector<256x128xbf16>
    %cst_38 = arith.constant dense<0.000000e+00> : vector<8x128xf32>
    %177 = tpu.matmul %175, %176, %cst_38 {dimension_numbers = #tpu.dot_dimension_numbers<[1], [0], [0], [1], [0, 0, 1, 1], [], []>} : vector<8x256xbf16>, vector<256x128xbf16>, vector<8x128xf32> -> vector<8x128xf32>
    %c0_39 = arith.constant 0 : index
    %c0_40 = arith.constant 0 : index
    %178 = vector.load %arg13[%c0_39, %c0_40] : memref<1x128xf32, #tpu.memory_space<vmem>>, vector<1x128xf32>
    %179 = vector.broadcast %178 : vector<1x128xf32> to vector<8x128xf32>
    %180 = arith.addf %177, %179 : vector<8x128xf32>
    %181 = arith.negf %180 : vector<8x128xf32>
    %182 = math.exp %181 : vector<8x128xf32>
    %cst_41 = arith.constant 1.000000e+00 : f32
    %183 = vector.broadcast %cst_41 : f32 to vector<8x128xf32>
    %184 = arith.addf %183, %182 : vector<8x128xf32>
    %185 = arith.divf %183, %184 : vector<8x128xf32>
    %186 = arith.mulf %180, %185 : vector<8x128xf32>
    %c0_42 = arith.constant 0 : index
    %c0_43 = arith.constant 0 : index
    %187 = vector.load %arg14[%c0_42, %c0_43] : memref<128x128xf32, #tpu.memory_space<vmem>>, vector<128x128xf32>
    %cst_44 = arith.constant dense<0.000000e+00> : vector<8x128xf32>
    %188 = tpu.matmul %186, %187, %cst_44 {dimension_numbers = #tpu.dot_dimension_numbers<[1], [0], [0], [1], [0, 0, 1, 1], [], []>} : vector<8x128xf32>, vector<128x128xf32>, vector<8x128xf32> -> vector<8x128xf32>
    %c0_45 = arith.constant 0 : index
    %c0_46 = arith.constant 0 : index
    %189 = vector.load %arg15[%c0_45, %c0_46] : memref<1x128xf32, #tpu.memory_space<vmem>>, vector<1x128xf32>
    %190 = vector.broadcast %189 : vector<1x128xf32> to vector<8x128xf32>
    %191 = arith.addf %188, %190 : vector<8x128xf32>
    %c0_47 = arith.constant 0 : index
    %c0_48 = arith.constant 0 : index
    %192 = vector.load %arg16[%c0_47, %c0_48] : memref<8x128xf32, #tpu.memory_space<vmem>>, vector<8x128xf32>
    tpu.vector_store %arg16[%c0_47, %c0_48], %191 {strides = array<i32>} : memref<8x128xf32, #tpu.memory_space<vmem>>, vector<8x128xf32>,
    return
  }
}

</mosaic_0001>

<bundles_post_ra>
// kernel: conv_model2bn_forward.1
= control target key start
LH: loop header
LB: loop body
LE: loop exit
PB: predicated region body
PF: predicated region fallthrough
CT: control target
= control target key end

     0   :  { %s11970_s0 = inlined_call_operand.vmem [shape: f32[3], index: 0, kind: input, shape index: {}]   ;;  %s11971_s1 = inlined_call_operand.vmem [shape: f32[288,9], index: 1, kind: input, shape index: {}]   ;;  %s11972_s2 = inlined_call_operand.vmem [shape: f32[9,64], index: 2, kind: input, shape index: {}]   ;;  %s11973_s3 = inlined_call_operand.vmem [shape: f32[1,64], index: 3, kind: input, shape index: {}]   ;;  %s11974_s4 = inlined_call_operand.vmem [shape: bf16[64,128], index: 4, kind: input, shape index: {}]   ;;  %s11975_s5 = inlined_call_operand.vmem [shape: f32[1,128], index: 5, kind: input, shape index: {}]   ;;  %s11976_s6 = inlined_call_operand.vmem [shape: bf16[1152,256], index: 6, kind: input, shape index: {}]   ;;  %s11977_s7 = inlined_call_operand.vmem [shape: f32[1,256], index: 7, kind: input, shape index: {}]   ;;  %s11978_s8 = inlined_call_operand.vmem [shape: bf16[1024,512], index: 8, kind: input, shape index: {}]   ;;  %s11979_s9 = inlined_call_operand.vmem [shape: f32[1,512], index: 9, kind: input, shape index: {}]   ;;  %s11980_s10 = inlined_call_operand.vmem [shape: bf16[512,256], index: 10, kind: input, shape index: {}]   ;;  %s11981_s11 = inlined_call_operand.vmem [shape: f32[1,256], index: 11, kind: input, shape index: {}]   ;;  %s11982_s12 = inlined_call_operand.vmem [shape: bf16[256,128], index: 12, kind: input, shape index: {}]   ;;  %s11983_s13 = inlined_call_operand.vmem [shape: f32[1,128], index: 13, kind: input, shape index: {}]   ;;  %s11984_s14 = inlined_call_operand.vmem [shape: f32[128,128], index: 14, kind: input, shape index: {}]   ;;  %s11985_s15 = inlined_call_operand.vmem [shape: f32[1,128], index: 15, kind: input, shape index: {}]   ;;  %s11986_s16 = inlined_call_operand.vmem [shape: f32[8,128], index: 16, kind: output, shape index: {}]  }
   0x1   :  { %11987 = sst [smem:[#allocation15_spill]] %s11970_s0 }
   0x2   :  { %21 = vsyncpa [#allocation7], 0  ;;  %s11988_s23 = sld [smem:[#allocation15_spill]] }
   0x8   :  { %s28_s24 = sshll.u32 %s11988_s23, 4  ;;  %s29_s24 = int_to_ptr.vmem [resolvable:$true] %s28_s24 }
   0x9   :  { %s9024_s25 = scalar_lea.vmem %s29_s24, 16  ;;  %p9029_p1 = scmp.lt.s32.totalorder %s29_s24, %s29_s24 }
   0xa   :  { %p9025_p0 = scmp.ne.s32.totalorder %s29_s24, %s9024_s25  ;;  %p9030_p2 = scmp.lt.s32.totalorder %s9024_s25, %s9024_s25 }
   0xc   :  { %p9031_p3 = por %p9030_p2, %p9029_p1 }
   0xe   :  { %p9032_p4 = pnand %p9031_p3, %p9025_p0 }
  0x10   :  { %9035 = shalt.err (!%p9032_p4)
}
  0x11   :  { %s9044_s26 = smov [#allocation6]  }
  0x12   :  { %31 = dma.vmem_to_smem %s29_s24, 16, %s9044_s26, [#allocation7]  }
  0x13   :  { %9036 = dma.done.wait [#allocation7], 16  }
  0x14   :  { %9037 = vsyncadd [#allocation7], 4294967280 }
  0x15   :  { %59 = sfence }
  0x16   :  { %v78_v0 = vld [vmem:[%s11978_s8] sm:$0xf]  ;;  %v80_v1 = vld [vmem:[%s11978_s8 + $0x10] sm:$0xf]  ;;  %v82_v2 = vld [vmem:[%s11978_s8 + $0x4] sm:$0xf] }
  0x17   :  { %79 = vst [vmem:[#allocation2] sm:$0xf] %v78_v0  ;;  %81 = vst [vmem:[#allocation2 + $0x4] sm:$0xf] %v80_v1  ;;  %v84_v3 = vld [vmem:[%s11978_s8 + $0x14] sm:$0xf] }
  0x18   :  { %83 = vst [vmem:[#allocation2 + $0x8] sm:$0xf] %v82_v2  ;;  %v86_v4 = vld [vmem:[%s11978_s8 + $0x8] sm:$0xf]  ;;  %v88_v5 = vld [vmem:[%s11978_s8 + $0x18] sm:$0xf] }
  0x19   :  { %85 = vst [vmem:[#allocation2 + $0xc] sm:$0xf] %v84_v3  ;;  %87 = vst [vmem:[#allocation2 + $0x10] sm:$0xf] %v86_v4  ;;  %v90_v6 = vld [vmem:[%s11978_s8 + $0xc] sm:$0xf] }
  0x1a   :  { %89 = vst [vmem:[#allocation2 + $0x14] sm:$0xf] %v88_v5  ;;  %v92_v7 = vld [vmem:[%s11978_s8 + $0x1c] sm:$0xff]   ;;  %v96_v8 = vld [vmem:[%s11978_s8 + $0x30] sm:$0xf] }
  0x1b   :  { %91 = vst [vmem:[#allocation2 + $0x18] sm:$0xf] %v90_v6  ;;  %93 = vst [vmem:[#allocation2 + $0x1c] sm:$0xff] %v92_v7   ;;  %v98_v9 = vld [vmem:[%s11978_s8 + $0x24] sm:$0xf]  ;;  %v108_v14 = vld [vmem:[%s11978_s8 + $0x3c] sm:$0xff]  }
  0x1c   :  { %97 = vst [vmem:[#allocation2 + $0x24] sm:$0xf] %v96_v8  ;;  %v100_v10 = vld [vmem:[%s11978_s8 + $0x34] sm:$0xf]  ;;  %v102_v11 = vld [vmem:[%s11978_s8 + $0x28] sm:$0xf] }
  0x1d   :  { %99 = vst [vmem:[#allocation2 + $0x28] sm:$0xf] %v98_v9  ;;  %101 = vst [vmem:[#allocation2 + $0x2c] sm:$0xf] %v100_v10  ;;  %v104_v12 = vld [vmem:[%s11978_s8 + $0x38] sm:$0xf] }
  0x1e   :  { %103 = vst [vmem:[#allocation2 + $0x30] sm:$0xf] %v102_v11  ;;  %v106_v13 = vld [vmem:[%s11978_s8 + $0x2c] sm:$0xf]  ;;  %105 = vst [vmem:[#allocation2 + $0x34] sm:$0xf] %v104_v12 }
  0x1f   :  { %107 = vst [vmem:[#allocation2 + $0x38] sm:$0xf] %v106_v13  ;;  %109 = vst [vmem:[#allocation2 + $0x3c] sm:$0xff] %v108_v14   ;;  %v112_v15 = vld [vmem:[%s11978_s8 + $0x50] sm:$0xf]  ;;  %v124_v21 = vld [vmem:[%s11978_s8 + $0x5c] sm:$0xff]  }
  0x20   :  { %v114_v16 = vld [vmem:[%s11978_s8 + $0x44] sm:$0xf]  ;;  %v116_v17 = vld [vmem:[%s11978_s8 + $0x54] sm:$0xf]  ;;  %113 = vst [vmem:[#allocation2 + $0x44] sm:$0xf] %v112_v15 }
  0x21   :  { %115 = vst [vmem:[#allocation2 + $0x48] sm:$0xf] %v114_v16  ;;  %117 = vst [vmem:[#allocation2 + $0x4c] sm:$0xf] %v116_v17  ;;  %v118_v18 = vld [vmem:[%s11978_s8 + $0x48] sm:$0xf] }
  0x22   :  { %v120_v19 = vld [vmem:[%s11978_s8 + $0x58] sm:$0xf]  ;;  %v122_v20 = vld [vmem:[%s11978_s8 + $0x4c] sm:$0xf]  ;;  %119 = vst [vmem:[#allocation2 + $0x50] sm:$0xf] %v118_v18 }
  0x23   :  { %121 = vst [vmem:[#allocation2 + $0x54] sm:$0xf] %v120_v19  ;;  %123 = vst [vmem:[#allocation2 + $0x58] sm:$0xf] %v122_v20  ;;  %v128_v22 = vld [vmem:[%s11978_s8 + $0x70] sm:$0xf] }
  0x24   :  { %v130_v23 = vld [vmem:[%s11978_s8 + $0x64] sm:$0xf]  ;;  %125 = vst [vmem:[#allocation2 + $0x5c] sm:$0xff] %v124_v21   ;;  %129 = vst [vmem:[#allocation2 + $0x64] sm:$0xf] %v128_v22  ;;  %v140_v28 = vld [vmem:[%s11978_s8 + $0x7c] sm:$0xff]  }
  0x25   :  { %131 = vst [vmem:[#allocation2 + $0x68] sm:$0xf] %v130_v23  ;;  %v132_v24 = vld [vmem:[%s11978_s8 + $0x74] sm:$0xf]  ;;  %v134_v25 = vld [vmem:[%s11978_s8 + $0x68] sm:$0xf] }
  0x26   :  { %v136_v26 = vld [vmem:[%s11978_s8 + $0x78] sm:$0xf]  ;;  %133 = vst [vmem:[#allocation2 + $0x6c] sm:$0xf] %v132_v24  ;;  %135 = vst [vmem:[#allocation2 + $0x70] sm:$0xf] %v134_v25 }
  0x27   :  { %137 = vst [vmem:[#allocation2 + $0x74] sm:$0xf] %v136_v26  ;;  %v138_v27 = vld [vmem:[%s11978_s8 + $0x6c] sm:$0xf]  ;;  %v144_v29 = vld [vmem:[%s11978_s8 + $0x90] sm:$0xf] }
  0x28   :  { %139 = vst [vmem:[#allocation2 + $0x78] sm:$0xf] %v138_v27  ;;  %141 = vst [vmem:[#allocation2 + $0x7c] sm:$0xff] %v140_v28   ;;  %v146_v30 = vld [vmem:[%s11978_s8 + $0x84] sm:$0xf]  ;;  %v156_v35 = vld [vmem:[%s11978_s8 + $0x9c] sm:$0xff]  }
  0x29   :  { %145 = vst [vmem:[#allocation2 + $0x84] sm:$0xf] %v144_v29  ;;  %v148_v31 = vld [vmem:[%s11978_s8 + $0x94] sm:$0xf]  ;;  %v150_v32 = vld [vmem:[%s11978_s8 + $0x88] sm:$0xf] }
  0x2a   :  { %147 = vst [vmem:[#allocation2 + $0x88] sm:$0xf] %v146_v30  ;;  %149 = vst [vmem:[#allocation2 + $0x8c] sm:$0xf] %v148_v31  ;;  %v152_v33 = vld [vmem:[%s11978_s8 + $0x98] sm:$0xf] }
  0x2b   :  { %151 = vst [vmem:[#allocation2 + $0x90] sm:$0xf] %v150_v32  ;;  %v154_v34 = vld [vmem:[%s11978_s8 + $0x8c] sm:$0xf]  ;;  %153 = vst [vmem:[#allocation2 + $0x94] sm:$0xf] %v152_v33 }
  0x2c   :  { %155 = vst [vmem:[#allocation2 + $0x98] sm:$0xf] %v154_v34  ;;  %157 = vst [vmem:[#allocation2 + $0x9c] sm:$0xff] %v156_v35   ;;  %v160_v36 = vld [vmem:[%s11978_s8 + $0xb0] sm:$0xf]  ;;  %v172_v42 = vld [vmem:[%s11978_s8 + $0xbc] sm:$0xff]  }
  0x2d   :  { %v162_v37 = vld [vmem:[%s11978_s8 + $0xa4] sm:$0xf]  ;;  %v164_v38 = vld [vmem:[%s11978_s8 + $0xb4] sm:$0xf]  ;;  %161 = vst [vmem:[#allocation2 + $0xa4] sm:$0xf] %v160_v36 }
  0x2e   :  { %163 = vst [vmem:[#allocation2 + $0xa8] sm:$0xf] %v162_v37  ;;  %165 = vst [vmem:[#allocation2 + $0xac] sm:$0xf] %v164_v38  ;;  %v166_v39 = vld [vmem:[%s11978_s8 + $0xa8] sm:$0xf] }
  0x2f   :  { %v168_v40 = vld [vmem:[%s11978_s8 + $0xb8] sm:$0xf]  ;;  %v170_v41 = vld [vmem:[%s11978_s8 + $0xac] sm:$0xf]  ;;  %167 = vst [vmem:[#allocation2 + $0xb0] sm:$0xf] %v166_v39 }
  0x30   :  { %169 = vst [vmem:[#allocation2 + $0xb4] sm:$0xf] %v168_v40  ;;  %171 = vst [vmem:[#allocation2 + $0xb8] sm:$0xf] %v170_v41  ;;  %v176_v43 = vld [vmem:[%s11978_s8 + $0xd0] sm:$0xf] }
  0x31   :  { %v178_v44 = vld [vmem:[%s11978_s8 + $0xc4] sm:$0xf]  ;;  %173 = vst [vmem:[#allocation2 + $0xbc] sm:$0xff] %v172_v42   ;;  %177 = vst [vmem:[#allocation2 + $0xc4] sm:$0xf] %v176_v43  ;;  %v188_v49 = vld [vmem:[%s11978_s8 + $0xdc] sm:$0xff]  }
  0x32   :  { %179 = vst [vmem:[#allocation2 + $0xc8] sm:$0xf] %v178_v44  ;;  %v180_v45 = vld [vmem:[%s11978_s8 + $0xd4] sm:$0xf]  ;;  %v182_v46 = vld [vmem:[%s11978_s8 + $0xc8] sm:$0xf] }
  0x33   :  { %v184_v47 = vld [vmem:[%s11978_s8 + $0xd8] sm:$0xf]  ;;  %181 = vst [vmem:[#allocation2 + $0xcc] sm:$0xf] %v180_v45  ;;  %183 = vst [vmem:[#allocation2 + $0xd0] sm:$0xf] %v182_v46 }
  0x34   :  { %185 = vst [vmem:[#allocation2 + $0xd4] sm:$0xf] %v184_v47  ;;  %v186_v48 = vld [vmem:[%s11978_s8 + $0xcc] sm:$0xf]  ;;  %v192_v50 = vld [vmem:[%s11978_s8 + $0xf0] sm:$0xf] }
  0x35   :  { %187 = vst [vmem:[#allocation2 + $0xd8] sm:$0xf] %v186_v48  ;;  %189 = vst [vmem:[#allocation2 + $0xdc] sm:$0xff] %v188_v49   ;;  %v194_v51 = vld [vmem:[%s11978_s8 + $0xe4] sm:$0xf]  ;;  %v204_v56 = vld [vmem:[%s11978_s8 + $0xfc] sm:$0xff]  }
  0x36   :  { %193 = vst [vmem:[#allocation2 + $0xe4] sm:$0xf] %v192_v50  ;;  %v196_v52 = vld [vmem:[%s11978_s8 + $0xf4] sm:$0xf]  ;;  %v198_v53 = vld [vmem:[%s11978_s8 + $0xe8] sm:$0xf] }
  0x37   :  { %195 = vst [vmem:[#allocation2 + $0xe8] sm:$0xf] %v194_v51  ;;  %197 = vst [vmem:[#allocation2 + $0xec] sm:$0xf] %v196_v52  ;;  %v200_v54 = vld [vmem:[%s11978_s8 + $0xf8] sm:$0xf] }
  0x38   :  { %199 = vst [vmem:[#allocation2 + $0xf0] sm:$0xf] %v198_v53  ;;  %v202_v55 = vld [vmem:[%s11978_s8 + $0xec] sm:$0xf]  ;;  %201 = vst [vmem:[#allocation2 + $0xf4] sm:$0xf] %v200_v54 }
  0x39   :  { %203 = vst [vmem:[#allocation2 + $0xf8] sm:$0xf] %v202_v55  ;;  %205 = vst [vmem:[#allocation2 + $0xfc] sm:$0xff] %v204_v56   ;;  %v208_v57 = vld [vmem:[%s11978_s8 + $0x110] sm:$0xf]  ;;  %v220_v63 = vld [vmem:[%s11978_s8 + $0x11c] sm:$0xff]  }
  0x3a   :  { %v210_v58 = vld [vmem:[%s11978_s8 + $0x104] sm:$0xf]  ;;  %v212_v59 = vld [vmem:[%s11978_s8 + $0x114] sm:$0xf]  ;;  %209 = vst [vmem:[#allocation2 + $0x104] sm:$0xf] %v208_v57 }
  0x3b   :  { %211 = vst [vmem:[#allocation2 + $0x108] sm:$0xf] %v210_v58  ;;  %213 = vst [vmem:[#allocation2 + $0x10c] sm:$0xf] %v212_v59  ;;  %v214_v60 = vld [vmem:[%s11978_s8 + $0x108] sm:$0xf] }
  0x3c   :  { %v216_v61 = vld [vmem:[%s11978_s8 + $0x118] sm:$0xf]  ;;  %v218_v62 = vld [vmem:[%s11978_s8 + $0x10c] sm:$0xf]  ;;  %215 = vst [vmem:[#allocation2 + $0x110] sm:$0xf] %v214_v60 }
  0x3d   :  { %217 = vst [vmem:[#allocation2 + $0x114] sm:$0xf] %v216_v61  ;;  %219 = vst [vmem:[#allocation2 + $0x118] sm:$0xf] %v218_v62  ;;  %v224_v0 = vld [vmem:[%s11978_s8 + $0x130] sm:$0xf] }
  0x3e   :  { %v226_v1 = vld [vmem:[%s11978_s8 + $0x124] sm:$0xf]  ;;  %221 = vst [vmem:[#allocation2 + $0x11c] sm:$0xff] %v220_v63   ;;  %225 = vst [vmem:[#allocation2 + $0x124] sm:$0xf] %v224_v0  ;;  %v236_v6 = vld [vmem:[%s11978_s8 + $0x13c] sm:$0xff]  }
  0x3f   :  { %227 = vst [vmem:[#allocation2 + $0x128] sm:$0xf] %v226_v1  ;;  %v228_v2 = vld [vmem:[%s11978_s8 + $0x134] sm:$0xf]  ;;  %v230_v3 = vld [vmem:[%s11978_s8 + $0x128] sm:$0xf] }
  0x40   :  { %v232_v4 = vld [vmem:[%s11978_s8 + $0x138] sm:$0xf]  ;;  %229 = vst [vmem:[#allocation2 + $0x12c] sm:$0xf] %v228_v2  ;;  %231 = vst [vmem:[#allocation2 + $0x130] sm:$0xf] %v230_v3 }
  0x41   :  { %233 = vst [vmem:[#allocation2 + $0x134] sm:$0xf] %v232_v4  ;;  %v234_v5 = vld [vmem:[%s11978_s8 + $0x12c] sm:$0xf]  ;;  %v240_v7 = vld [vmem:[%s11978_s8 + $0x150] sm:$0xf] }
  0x42   :  { %235 = vst [vmem:[#allocation2 + $0x138] sm:$0xf] %v234_v5  ;;  %237 = vst [vmem:[#allocation2 + $0x13c] sm:$0xff] %v236_v6   ;;  %v242_v8 = vld [vmem:[%s11978_s8 + $0x144] sm:$0xf]  ;;  %v252_v13 = vld [vmem:[%s11978_s8 + $0x15c] sm:$0xff]  }
  0x43   :  { %241 = vst [vmem:[#allocation2 + $0x144] sm:$0xf] %v240_v7  ;;  %v244_v9 = vld [vmem:[%s11978_s8 + $0x154] sm:$0xf]  ;;  %v246_v10 = vld [vmem:[%s11978_s8 + $0x148] sm:$0xf] }
  0x44   :  { %243 = vst [vmem:[#allocation2 + $0x148] sm:$0xf] %v242_v8  ;;  %245 = vst [vmem:[#allocation2 + $0x14c] sm:$0xf] %v244_v9  ;;  %v248_v11 = vld [vmem:[%s11978_s8 + $0x158] sm:$0xf] }
  0x45   :  { %247 = vst [vmem:[#allocation2 + $0x150] sm:$0xf] %v246_v10  ;;  %v250_v12 = vld [vmem:[%s11978_s8 + $0x14c] sm:$0xf]  ;;  %249 = vst [vmem:[#allocation2 + $0x154] sm:$0xf] %v248_v11 }
  0x46   :  { %251 = vst [vmem:[#allocation2 + $0x158] sm:$0xf] %v250_v12  ;;  %253 = vst [vmem:[#allocation2 + $0x15c] sm:$0xff] %v252_v13   ;;  %v256_v14 = vld [vmem:[%s11978_s8 + $0x170] sm:$0xf]  ;;  %v268_v20 = vld [vmem:[%s11978_s8 + $0x17c] sm:$0xff]  }
  0x47   :  { %v258_v15 = vld [vmem:[%s11978_s8 + $0x164] sm:$0xf]  ;;  %v260_v16 = vld [vmem:[%s11978_s8 + $0x174] sm:$0xf]  ;;  %257 = vst [vmem:[#allocation2 + $0x164] sm:$0xf] %v256_v14 }
  0x48   :  { %259 = vst [vmem:[#allocation2 + $0x168] sm:$0xf] %v258_v15  ;;  %261 = vst [vmem:[#allocation2 + $0x16c] sm:$0xf] %v260_v16  ;;  %v262_v17 = vld [vmem:[%s11978_s8 + $0x168] sm:$0xf] }
  0x49   :  { %v264_v18 = vld [vmem:[%s11978_s8 + $0x178] sm:$0xf]  ;;  %v266_v19 = vld [vmem:[%s11978_s8 + $0x16c] sm:$0xf]  ;;  %263 = vst [vmem:[#allocation2 + $0x170] sm:$0xf] %v262_v17 }
  0x4a   :  { %265 = vst [vmem:[#allocation2 + $0x174] sm:$0xf] %v264_v18  ;;  %267 = vst [vmem:[#allocation2 + $0x178] sm:$0xf] %v266_v19  ;;  %v272_v21 = vld [vmem:[%s11978_s8 + $0x190] sm:$0xf] }
  0x4b   :  { %v274_v22 = vld [vmem:[%s11978_s8 + $0x184] sm:$0xf]  ;;  %269 = vst [vmem:[#allocation2 + $0x17c] sm:$0xff] %v268_v20   ;;  %273 = vst [vmem:[#allocation2 + $0x184] sm:$0xf] %v272_v21  ;;  %v284_v27 = vld [vmem:[%s11978_s8 + $0x19c] sm:$0xff]  }
  0x4c   :  { %275 = vst [vmem:[#allocation2 + $0x188] sm:$0xf] %v274_v22  ;;  %v276_v23 = vld [vmem:[%s11978_s8 + $0x194] sm:$0xf]  ;;  %v278_v24 = vld [vmem:[%s11978_s8 + $0x188] sm:$0xf] }
  0x4d   :  { %v280_v25 = vld [vmem:[%s11978_s8 + $0x198] sm:$0xf]  ;;  %277 = vst [vmem:[#allocation2 + $0x18c] sm:$0xf] %v276_v23  ;;  %279 = vst [vmem:[#allocation2 + $0x190] sm:$0xf] %v278_v24 }
  0x4e   :  { %281 = vst [vmem:[#allocation2 + $0x194] sm:$0xf] %v280_v25  ;;  %v282_v26 = vld [vmem:[%s11978_s8 + $0x18c] sm:$0xf]  ;;  %v288_v28 = vld [vmem:[%s11978_s8 + $0x1b0] sm:$0xf] }
  0x4f   :  { %283 = vst [vmem:[#allocation2 + $0x198] sm:$0xf] %v282_v26  ;;  %285 = vst [vmem:[#allocation2 + $0x19c] sm:$0xff] %v284_v27   ;;  %v290_v29 = vld [vmem:[%s11978_s8 + $0x1a4] sm:$0xf]  ;;  %v300_v34 = vld [vmem:[%s11978_s8 + $0x1bc] sm:$0xff]  }
  0x50   :  { %289 = vst [vmem:[#allocation2 + $0x1a4] sm:$0xf] %v288_v28  ;;  %v292_v30 = vld [vmem:[%s11978_s8 + $0x1b4] sm:$0xf]  ;;  %v294_v31 = vld [vmem:[%s11978_s8 + $0x1a8] sm:$0xf] }
  0x51   :  { %291 = vst [vmem:[#allocation2 + $0x1a8] sm:$0xf] %v290_v29  ;;  %293 = vst [vmem:[#allocation2 + $0x1ac] sm:$0xf] %v292_v30  ;;  %v296_v32 = vld [vmem:[%s11978_s8 + $0x1b8] sm:$0xf] }
  0x52   :  { %295 = vst [vmem:[#allocation2 + $0x1b0] sm:$0xf] %v294_v31  ;;  %v298_v33 = vld [vmem:[%s11978_s8 + $0x1ac] sm:$0xf]  ;;  %297 = vst [vmem:[#allocation2 + $0x1b4] sm:$0xf] %v296_v32 }
  0x53   :  { %299 = vst [vmem:[#allocation2 + $0x1b8] sm:$0xf] %v298_v33  ;;  %301 = vst [vmem:[#allocation2 + $0x1bc] sm:$0xff] %v300_v34   ;;  %v304_v35 = vld [vmem:[%s11978_s8 + $0x1d0] sm:$0xf]  ;;  %v316_v41 = vld [vmem:[%s11978_s8 + $0x1dc] sm:$0xff]  }
  0x54   :  { %v306_v36 = vld [vmem:[%s11978_s8 + $0x1c4] sm:$0xf]  ;;  %v308_v37 = vld [vmem:[%s11978_s8 + $0x1d4] sm:$0xf]  ;;  %305 = vst [vmem:[#allocation2 + $0x1c4] sm:$0xf] %v304_v35 }
  0x55   :  { %307 = vst [vmem:[#allocation2 + $0x1c8] sm:$0xf] %v306_v36  ;;  %309 = vst [vmem:[#allocation2 + $0x1cc] sm:$0xf] %v308_v37  ;;  %v310_v38 = vld [vmem:[%s11978_s8 + $0x1c8] sm:$0xf] }
  0x56   :  { %v312_v39 = vld [vmem:[%s11978_s8 + $0x1d8] sm:$0xf]  ;;  %v314_v40 = vld [vmem:[%s11978_s8 + $0x1cc] sm:$0xf]  ;;  %311 = vst [vmem:[#allocation2 + $0x1d0] sm:$0xf] %v310_v38 }
  0x57   :  { %313 = vst [vmem:[#allocation2 + $0x1d4] sm:$0xf] %v312_v39  ;;  %315 = vst [vmem:[#allocation2 + $0x1d8] sm:$0xf] %v314_v40  ;;  %v320_v42 = vld [vmem:[%s11978_s8 + $0x1f0] sm:$0xf] }
  0x58   :  { %v322_v43 = vld [vmem:[%s11978_s8 + $0x1e4] sm:$0xf]  ;;  %317 = vst [vmem:[#allocation2 + $0x1dc] sm:$0xff] %v316_v41   ;;  %321 = vst [vmem:[#allocation2 + $0x1e4] sm:$0xf] %v320_v42  ;;  %v332_v48 = vld [vmem:[%s11978_s8 + $0x1fc] sm:$0xff]  }
  0x59   :  { %323 = vst [vmem:[#allocation2 + $0x1e8] sm:$0xf] %v322_v43  ;;  %v324_v44 = vld [vmem:[%s11978_s8 + $0x1f4] sm:$0xf]  ;;  %v326_v45 = vld [vmem:[%s11978_s8 + $0x1e8] sm:$0xf] }
  0x5a   :  { %v328_v46 = vld [vmem:[%s11978_s8 + $0x1f8] sm:$0xf]  ;;  %325 = vst [vmem:[#allocation2 + $0x1ec] sm:$0xf] %v324_v44  ;;  %327 = vst [vmem:[#allocation2 + $0x1f0] sm:$0xf] %v326_v45 }
  0x5b   :  { %329 = vst [vmem:[#allocation2 + $0x1f4] sm:$0xf] %v328_v46  ;;  %v330_v47 = vld [vmem:[%s11978_s8 + $0x1ec] sm:$0xf]  ;;  %v336_v49 = vld [vmem:[%s11978_s8 + $0x210] sm:$0xf] }
  0x5c   :  { %331 = vst [vmem:[#allocation2 + $0x1f8] sm:$0xf] %v330_v47  ;;  %333 = vst [vmem:[#allocation2 + $0x1fc] sm:$0xff] %v332_v48   ;;  %v338_v50 = vld [vmem:[%s11978_s8 + $0x204] sm:$0xf]  ;;  %v348_v55 = vld [vmem:[%s11978_s8 + $0x21c] sm:$0xff]  }
  0x5d   :  { %337 = vst [vmem:[#allocation2 + $0x204] sm:$0xf] %v336_v49  ;;  %v340_v51 = vld [vmem:[%s11978_s8 + $0x214] sm:$0xf]  ;;  %v342_v52 = vld [vmem:[%s11978_s8 + $0x208] sm:$0xf] }
  0x5e   :  { %339 = vst [vmem:[#allocation2 + $0x208] sm:$0xf] %v338_v50  ;;  %341 = vst [vmem:[#allocation2 + $0x20c] sm:$0xf] %v340_v51  ;;  %v344_v53 = vld [vmem:[%s11978_s8 + $0x218] sm:$0xf] }
  0x5f   :  { %343 = vst [vmem:[#allocation2 + $0x210] sm:$0xf] %v342_v52  ;;  %v346_v54 = vld [vmem:[%s11978_s8 + $0x20c] sm:$0xf]  ;;  %345 = vst [vmem:[#allocation2 + $0x214] sm:$0xf] %v344_v53 }
  0x60   :  { %347 = vst [vmem:[#allocation2 + $0x218] sm:$0xf] %v346_v54  ;;  %349 = vst [vmem:[#allocation2 + $0x21c] sm:$0xff] %v348_v55   ;;  %v352_v56 = vld [vmem:[%s11978_s8 + $0x230] sm:$0xf]  ;;  %v364_v62 = vld [vmem:[%s11978_s8 + $0x23c] sm:$0xff]  }
  0x61   :  { %v354_v57 = vld [vmem:[%s11978_s8 + $0x224] sm:$0xf]  ;;  %v356_v58 = vld [vmem:[%s11978_s8 + $0x234] sm:$0xf]  ;;  %353 = vst [vmem:[#allocation2 + $0x224] sm:$0xf] %v352_v56 }
  0x62   :  { %355 = vst [vmem:[#allocation2 + $0x228] sm:$0xf] %v354_v57  ;;  %357 = vst [vmem:[#allocation2 + $0x22c] sm:$0xf] %v356_v58  ;;  %v358_v59 = vld [vmem:[%s11978_s8 + $0x228] sm:$0xf] }
  0x63   :  { %v360_v60 = vld [vmem:[%s11978_s8 + $0x238] sm:$0xf]  ;;  %v362_v61 = vld [vmem:[%s11978_s8 + $0x22c] sm:$0xf]  ;;  %359 = vst [vmem:[#allocation2 + $0x230] sm:$0xf] %v358_v59 }
  0x64   :  { %361 = vst [vmem:[#allocation2 + $0x234] sm:$0xf] %v360_v60  ;;  %363 = vst [vmem:[#allocation2 + $0x238] sm:$0xf] %v362_v61  ;;  %v368_v63 = vld [vmem:[%s11978_s8 + $0x250] sm:$0xf] }
  0x65   :  { %v370_v0 = vld [vmem:[%s11978_s8 + $0x244] sm:$0xf]  ;;  %365 = vst [vmem:[#allocation2 + $0x23c] sm:$0xff] %v364_v62   ;;  %369 = vst [vmem:[#allocation2 + $0x244] sm:$0xf] %v368_v63  ;;  %v380_v5 = vld [vmem:[%s11978_s8 + $0x25c] sm:$0xff]  }
  0x66   :  { %371 = vst [vmem:[#allocation2 + $0x248] sm:$0xf] %v370_v0  ;;  %v372_v1 = vld [vmem:[%s11978_s8 + $0x254] sm:$0xf]  ;;  %v374_v2 = vld [vmem:[%s11978_s8 + $0x248] sm:$0xf] }
  0x67   :  { %v376_v3 = vld [vmem:[%s11978_s8 + $0x258] sm:$0xf]  ;;  %373 = vst [vmem:[#allocation2 + $0x24c] sm:$0xf] %v372_v1  ;;  %375 = vst [vmem:[#allocation2 + $0x250] sm:$0xf] %v374_v2 }
  0x68   :  { %377 = vst [vmem:[#allocation2 + $0x254] sm:$0xf] %v376_v3  ;;  %v378_v4 = vld [vmem:[%s11978_s8 + $0x24c] sm:$0xf]  ;;  %v384_v6 = vld [vmem:[%s11978_s8 + $0x270] sm:$0xf] }
  0x69   :  { %379 = vst [vmem:[#allocation2 + $0x258] sm:$0xf] %v378_v4  ;;  %381 = vst [vmem:[#allocation2 + $0x25c] sm:$0xff] %v380_v5   ;;  %v386_v7 = vld [vmem:[%s11978_s8 + $0x264] sm:$0xf]  ;;  %v396_v12 = vld [vmem:[%s11978_s8 + $0x27c] sm:$0xff]  }
  0x6a   :  { %385 = vst [vmem:[#allocation2 + $0x264] sm:$0xf] %v384_v6  ;;  %v388_v8 = vld [vmem:[%s11978_s8 + $0x274] sm:$0xf]  ;;  %v390_v9 = vld [vmem:[%s11978_s8 + $0x268] sm:$0xf] }
  0x6b   :  { %387 = vst [vmem:[#allocation2 + $0x268] sm:$0xf] %v386_v7  ;;  %389 = vst [vmem:[#allocation2 + $0x26c] sm:$0xf] %v388_v8  ;;  %v392_v10 = vld [vmem:[%s11978_s8 + $0x278] sm:$0xf] }
  0x6c   :  { %391 = vst [vmem:[#allocation2 + $0x270] sm:$0xf] %v390_v9  ;;  %v394_v11 = vld [vmem:[%s11978_s8 + $0x26c] sm:$0xf]  ;;  %393 = vst [vmem:[#allocation2 + $0x274] sm:$0xf] %v392_v10 }
  0x6d   :  { %395 = vst [vmem:[#allocation2 + $0x278] sm:$0xf] %v394_v11  ;;  %397 = vst [vmem:[#allocation2 + $0x27c] sm:$0xff] %v396_v12   ;;  %v400_v13 = vld [vmem:[%s11978_s8 + $0x290] sm:$0xf]  ;;  %v412_v19 = vld [vmem:[%s11978_s8 + $0x29c] sm:$0xff]  }
  0x6e   :  { %v402_v14 = vld [vmem:[%s11978_s8 + $0x284] sm:$0xf]  ;;  %v404_v15 = vld [vmem:[%s11978_s8 + $0x294] sm:$0xf]  ;;  %401 = vst [vmem:[#allocation2 + $0x284] sm:$0xf] %v400_v13 }
  0x6f   :  { %403 = vst [vmem:[#allocation2 + $0x288] sm:$0xf] %v402_v14  ;;  %405 = vst [vmem:[#allocation2 + $0x28c] sm:$0xf] %v404_v15  ;;  %v406_v16 = vld [vmem:[%s11978_s8 + $0x288] sm:$0xf] }
  0x70   :  { %v408_v17 = vld [vmem:[%s11978_s8 + $0x298] sm:$0xf]  ;;  %v410_v18 = vld [vmem:[%s11978_s8 + $0x28c] sm:$0xf]  ;;  %407 = vst [vmem:[#allocation2 + $0x290] sm:$0xf] %v406_v16 }
  0x71   :  { %409 = vst [vmem:[#allocation2 + $0x294] sm:$0xf] %v408_v17  ;;  %411 = vst [vmem:[#allocation2 + $0x298] sm:$0xf] %v410_v18  ;;  %v416_v20 = vld [vmem:[%s11978_s8 + $0x2b0] sm:$0xf] }
  0x72   :  { %v418_v21 = vld [vmem:[%s11978_s8 + $0x2a4] sm:$0xf]  ;;  %413 = vst [vmem:[#allocation2 + $0x29c] sm:$0xff] %v412_v19   ;;  %417 = vst [vmem:[#allocation2 + $0x2a4] sm:$0xf] %v416_v20  ;;  %v428_v26 = vld [vmem:[%s11978_s8 + $0x2bc] sm:$0xff]  }
  0x73   :  { %419 = vst [vmem:[#allocation2 + $0x2a8] sm:$0xf] %v418_v21  ;;  %v420_v22 = vld [vmem:[%s11978_s8 + $0x2b4] sm:$0xf]  ;;  %v422_v23 = vld [vmem:[%s11978_s8 + $0x2a8] sm:$0xf] }
  0x74   :  { %v424_v24 = vld [vmem:[%s11978_s8 + $0x2b8] sm:$0xf]  ;;  %421 = vst [vmem:[#allocation2 + $0x2ac] sm:$0xf] %v420_v22  ;;  %423 = vst [vmem:[#allocation2 + $0x2b0] sm:$0xf] %v422_v23 }
  0x75   :  { %425 = vst [vmem:[#allocation2 + $0x2b4] sm:$0xf] %v424_v24  ;;  %v426_v25 = vld [vmem:[%s11978_s8 + $0x2ac] sm:$0xf]  ;;  %v432_v27 = vld [vmem:[%s11978_s8 + $0x2d0] sm:$0xf] }
  0x76   :  { %427 = vst [vmem:[#allocation2 + $0x2b8] sm:$0xf] %v426_v25  ;;  %429 = vst [vmem:[#allocation2 + $0x2bc] sm:$0xff] %v428_v26   ;;  %v434_v28 = vld [vmem:[%s11978_s8 + $0x2c4] sm:$0xf]  ;;  %v444_v33 = vld [vmem:[%s11978_s8 + $0x2dc] sm:$0xff]  }
  0x77   :  { %433 = vst [vmem:[#allocation2 + $0x2c4] sm:$0xf] %v432_v27  ;;  %v436_v29 = vld [vmem:[%s11978_s8 + $0x2d4] sm:$0xf]  ;;  %v438_v30 = vld [vmem:[%s11978_s8 + $0x2c8] sm:$0xf] }
  0x78   :  { %435 = vst [vmem:[#allocation2 + $0x2c8] sm:$0xf] %v434_v28  ;;  %437 = vst [vmem:[#allocation2 + $0x2cc] sm:$0xf] %v436_v29  ;;  %v440_v31 = vld [vmem:[%s11978_s8 + $0x2d8] sm:$0xf] }
  0x79   :  { %439 = vst [vmem:[#allocation2 + $0x2d0] sm:$0xf] %v438_v30  ;;  %v442_v32 = vld [vmem:[%s11978_s8 + $0x2cc] sm:$0xf]  ;;  %441 = vst [vmem:[#allocation2 + $0x2d4] sm:$0xf] %v440_v31 }
  0x7a   :  { %443 = vst [vmem:[#allocation2 + $0x2d8] sm:$0xf] %v442_v32  ;;  %445 = vst [vmem:[#allocation2 + $0x2dc] sm:$0xff] %v444_v33   ;;  %v448_v34 = vld [vmem:[%s11978_s8 + $0x2f0] sm:$0xf]  ;;  %v460_v40 = vld [vmem:[%s11978_s8 + $0x2fc] sm:$0xff]  }
  0x7b   :  { %v450_v35 = vld [vmem:[%s11978_s8 + $0x2e4] sm:$0xf]  ;;  %v452_v36 = vld [vmem:[%s11978_s8 + $0x2f4] sm:$0xf]  ;;  %449 = vst [vmem:[#allocation2 + $0x2e4] sm:$0xf] %v448_v34 }
  0x7c   :  { %451 = vst [vmem:[#allocation2 + $0x2e8] sm:$0xf] %v450_v35  ;;  %453 = vst [vmem:[#allocation2 + $0x2ec] sm:$0xf] %v452_v36  ;;  %v454_v37 = vld [vmem:[%s11978_s8 + $0x2e8] sm:$0xf] }
  0x7d   :  { %v456_v38 = vld [vmem:[%s11978_s8 + $0x2f8] sm:$0xf]  ;;  %v458_v39 = vld [vmem:[%s11978_s8 + $0x2ec] sm:$0xf]  ;;  %455 = vst [vmem:[#allocation2 + $0x2f0] sm:$0xf] %v454_v37 }
  0x7e   :  { %457 = vst [vmem:[#allocation2 + $0x2f4] sm:$0xf] %v456_v38  ;;  %459 = vst [vmem:[#allocation2 + $0x2f8] sm:$0xf] %v458_v39  ;;  %v464_v41 = vld [vmem:[%s11978_s8 + $0x310] sm:$0xf] }
  0x7f   :  { %v466_v42 = vld [vmem:[%s11978_s8 + $0x304] sm:$0xf]  ;;  %461 = vst [vmem:[#allocation2 + $0x2fc] sm:$0xff] %v460_v40   ;;  %465 = vst [vmem:[#allocation2 + $0x304] sm:$0xf] %v464_v41  ;;  %v476_v47 = vld [vmem:[%s11978_s8 + $0x31c] sm:$0xff]  }
  0x80   :  { %467 = vst [vmem:[#allocation2 + $0x308] sm:$0xf] %v466_v42  ;;  %v468_v43 = vld [vmem:[%s11978_s8 + $0x314] sm:$0xf]  ;;  %v470_v44 = vld [vmem:[%s11978_s8 + $0x308] sm:$0xf] }
  0x81   :  { %v472_v45 = vld [vmem:[%s11978_s8 + $0x318] sm:$0xf]  ;;  %469 = vst [vmem:[#allocation2 + $0x30c] sm:$0xf] %v468_v43  ;;  %471 = vst [vmem:[#allocation2 + $0x310] sm:$0xf] %v470_v44 }
  0x82   :  { %473 = vst [vmem:[#allocation2 + $0x314] sm:$0xf] %v472_v45  ;;  %v474_v46 = vld [vmem:[%s11978_s8 + $0x30c] sm:$0xf]  ;;  %v480_v48 = vld [vmem:[%s11978_s8 + $0x330] sm:$0xf] }
  0x83   :  { %475 = vst [vmem:[#allocation2 + $0x318] sm:$0xf] %v474_v46  ;;  %477 = vst [vmem:[#allocation2 + $0x31c] sm:$0xff] %v476_v47   ;;  %v482_v49 = vld [vmem:[%s11978_s8 + $0x324] sm:$0xf]  ;;  %v492_v54 = vld [vmem:[%s11978_s8 + $0x33c] sm:$0xff]  }
  0x84   :  { %481 = vst [vmem:[#allocation2 + $0x324] sm:$0xf] %v480_v48  ;;  %v484_v50 = vld [vmem:[%s11978_s8 + $0x334] sm:$0xf]  ;;  %v486_v51 = vld [vmem:[%s11978_s8 + $0x328] sm:$0xf] }
  0x85   :  { %483 = vst [vmem:[#allocation2 + $0x328] sm:$0xf] %v482_v49  ;;  %485 = vst [vmem:[#allocation2 + $0x32c] sm:$0xf] %v484_v50  ;;  %v488_v52 = vld [vmem:[%s11978_s8 + $0x338] sm:$0xf] }
  0x86   :  { %487 = vst [vmem:[#allocation2 + $0x330] sm:$0xf] %v486_v51  ;;  %v490_v53 = vld [vmem:[%s11978_s8 + $0x32c] sm:$0xf]  ;;  %489 = vst [vmem:[#allocation2 + $0x334] sm:$0xf] %v488_v52 }
  0x87   :  { %491 = vst [vmem:[#allocation2 + $0x338] sm:$0xf] %v490_v53  ;;  %493 = vst [vmem:[#allocation2 + $0x33c] sm:$0xff] %v492_v54   ;;  %v496_v55 = vld [vmem:[%s11978_s8 + $0x350] sm:$0xf]  ;;  %v508_v61 = vld [vmem:[%s11978_s8 + $0x35c] sm:$0xff]  }
  0x88   :  { %v498_v56 = vld [vmem:[%s11978_s8 + $0x344] sm:$0xf]  ;;  %v500_v57 = vld [vmem:[%s11978_s8 + $0x354] sm:$0xf]  ;;  %497 = vst [vmem:[#allocation2 + $0x344] sm:$0xf] %v496_v55 }
  0x89   :  { %499 = vst [vmem:[#allocation2 + $0x348] sm:$0xf] %v498_v56  ;;  %501 = vst [vmem:[#allocation2 + $0x34c] sm:$0xf] %v500_v57  ;;  %v502_v58 = vld [vmem:[%s11978_s8 + $0x348] sm:$0xf] }
  0x8a   :  { %v504_v59 = vld [vmem:[%s11978_s8 + $0x358] sm:$0xf]  ;;  %v506_v60 = vld [vmem:[%s11978_s8 + $0x34c] sm:$0xf]  ;;  %503 = vst [vmem:[#allocation2 + $0x350] sm:$0xf] %v502_v58 }
  0x8b   :  { %505 = vst [vmem:[#allocation2 + $0x354] sm:$0xf] %v504_v59  ;;  %507 = vst [vmem:[#allocation2 + $0x358] sm:$0xf] %v506_v60  ;;  %v512_v62 = vld [vmem:[%s11978_s8 + $0x370] sm:$0xf] }
  0x8c   :  { %v514_v63 = vld [vmem:[%s11978_s8 + $0x364] sm:$0xf]  ;;  %509 = vst [vmem:[#allocation2 + $0x35c] sm:$0xff] %v508_v61   ;;  %513 = vst [vmem:[#allocation2 + $0x364] sm:$0xf] %v512_v62  ;;  %v524_v4 = vld [vmem:[%s11978_s8 + $0x37c] sm:$0xff]  }
  0x8d   :  { %515 = vst [vmem:[#allocation2 + $0x368] sm:$0xf] %v514_v63  ;;  %v516_v0 = vld [vmem:[%s11978_s8 + $0x374] sm:$0xf]  ;;  %v518_v1 = vld [vmem:[%s11978_s8 + $0x368] sm:$0xf] }
  0x8e   :  { %v520_v2 = vld [vmem:[%s11978_s8 + $0x378] sm:$0xf]  ;;  %517 = vst [vmem:[#allocation2 + $0x36c] sm:$0xf] %v516_v0  ;;  %519 = vst [vmem:[#allocation2 + $0x370] sm:$0xf] %v518_v1 }
  0x8f   :  { %521 = vst [vmem:[#allocation2 + $0x374] sm:$0xf] %v520_v2  ;;  %v522_v3 = vld [vmem:[%s11978_s8 + $0x36c] sm:$0xf]  ;;  %v528_v5 = vld [vmem:[%s11978_s8 + $0x390] sm:$0xf] }
  0x90   :  { %523 = vst [vmem:[#allocation2 + $0x378] sm:$0xf] %v522_v3  ;;  %525 = vst [vmem:[#allocation2 + $0x37c] sm:$0xff] %v524_v4   ;;  %v530_v6 = vld [vmem:[%s11978_s8 + $0x384] sm:$0xf]  ;;  %v540_v11 = vld [vmem:[%s11978_s8 + $0x39c] sm:$0xff]  }
  0x91   :  { %529 = vst [vmem:[#allocation2 + $0x384] sm:$0xf] %v528_v5  ;;  %v532_v7 = vld [vmem:[%s11978_s8 + $0x394] sm:$0xf]  ;;  %v534_v8 = vld [vmem:[%s11978_s8 + $0x388] sm:$0xf] }
  0x92   :  { %531 = vst [vmem:[#allocation2 + $0x388] sm:$0xf] %v530_v6  ;;  %533 = vst [vmem:[#allocation2 + $0x38c] sm:$0xf] %v532_v7  ;;  %v536_v9 = vld [vmem:[%s11978_s8 + $0x398] sm:$0xf] }
  0x93   :  { %535 = vst [vmem:[#allocation2 + $0x390] sm:$0xf] %v534_v8  ;;  %v538_v10 = vld [vmem:[%s11978_s8 + $0x38c] sm:$0xf]  ;;  %537 = vst [vmem:[#allocation2 + $0x394] sm:$0xf] %v536_v9 }
  0x94   :  { %539 = vst [vmem:[#allocation2 + $0x398] sm:$0xf] %v538_v10  ;;  %541 = vst [vmem:[#allocation2 + $0x39c] sm:$0xff] %v540_v11   ;;  %v544_v12 = vld [vmem:[%s11978_s8 + $0x3b0] sm:$0xf]  ;;  %v556_v18 = vld [vmem:[%s11978_s8 + $0x3bc] sm:$0xff]  }
  0x95   :  { %v546_v13 = vld [vmem:[%s11978_s8 + $0x3a4] sm:$0xf]  ;;  %v548_v14 = vld [vmem:[%s11978_s8 + $0x3b4] sm:$0xf]  ;;  %545 = vst [vmem:[#allocation2 + $0x3a4] sm:$0xf] %v544_v12 }
  0x96   :  { %547 = vst [vmem:[#allocation2 + $0x3a8] sm:$0xf] %v546_v13  ;;  %549 = vst [vmem:[#allocation2 + $0x3ac] sm:$0xf] %v548_v14  ;;  %v550_v15 = vld [vmem:[%s11978_s8 + $0x3a8] sm:$0xf] }
  0x97   :  { %v552_v16 = vld [vmem:[%s11978_s8 + $0x3b8] sm:$0xf]  ;;  %v554_v17 = vld [vmem:[%s11978_s8 + $0x3ac] sm:$0xf]  ;;  %551 = vst [vmem:[#allocation2 + $0x3b0] sm:$0xf] %v550_v15 }
  0x98   :  { %553 = vst [vmem:[#allocation2 + $0x3b4] sm:$0xf] %v552_v16  ;;  %555 = vst [vmem:[#allocation2 + $0x3b8] sm:$0xf] %v554_v17  ;;  %v560_v19 = vld [vmem:[%s11978_s8 + $0x3d0] sm:$0xf] }
  0x99   :  { %v562_v20 = vld [vmem:[%s11978_s8 + $0x3c4] sm:$0xf]  ;;  %557 = vst [vmem:[#allocation2 + $0x3bc] sm:$0xff] %v556_v18   ;;  %561 = vst [vmem:[#allocation2 + $0x3c4] sm:$0xf] %v560_v19  ;;  %v572_v25 = vld [vmem:[%s11978_s8 + $0x3dc] sm:$0xff]  }
  0x9a   :  { %563 = vst [vmem:[#allocation2 + $0x3c8] sm:$0xf] %v562_v20  ;;  %v564_v21 = vld [vmem:[%s11978_s8 + $0x3d4] sm:$0xf]  ;;  %v566_v22 = vld [vmem:[%s11978_s8 + $0x3c8] sm:$0xf] }
  0x9b   :  { %v568_v23 = vld [vmem:[%s11978_s8 + $0x3d8] sm:$0xf]  ;;  %565 = vst [vmem:[#allocation2 + $0x3cc] sm:$0xf] %v564_v21  ;;  %567 = vst [vmem:[#allocation2 + $0x3d0] sm:$0xf] %v566_v22 }
  0x9c   :  { %569 = vst [vmem:[#allocation2 + $0x3d4] sm:$0xf] %v568_v23  ;;  %v570_v24 = vld [vmem:[%s11978_s8 + $0x3cc] sm:$0xf]  ;;  %v576_v26 = vld [vmem:[%s11978_s8 + $0x3f0] sm:$0xf] }
  0x9d   :  { %571 = vst [vmem:[#allocation2 + $0x3d8] sm:$0xf] %v570_v24  ;;  %573 = vst [vmem:[#allocation2 + $0x3dc] sm:$0xff] %v572_v25   ;;  %v578_v27 = vld [vmem:[%s11978_s8 + $0x3e4] sm:$0xf]  ;;  %v588_v32 = vld [vmem:[%s11978_s8 + $0x3fc] sm:$0xff]  }
  0x9e   :  { %577 = vst [vmem:[#allocation2 + $0x3e4] sm:$0xf] %v576_v26  ;;  %v580_v28 = vld [vmem:[%s11978_s8 + $0x3f4] sm:$0xf]  ;;  %v582_v29 = vld [vmem:[%s11978_s8 + $0x3e8] sm:$0xf] }
  0x9f   :  { %579 = vst [vmem:[#allocation2 + $0x3e8] sm:$0xf] %v578_v27  ;;  %581 = vst [vmem:[#allocation2 + $0x3ec] sm:$0xf] %v580_v28  ;;  %v584_v30 = vld [vmem:[%s11978_s8 + $0x3f8] sm:$0xf] }
  0xa0   :  { %583 = vst [vmem:[#allocation2 + $0x3f0] sm:$0xf] %v582_v29  ;;  %v586_v31 = vld [vmem:[%s11978_s8 + $0x3ec] sm:$0xf]  ;;  %585 = vst [vmem:[#allocation2 + $0x3f4] sm:$0xf] %v584_v30 }
  0xa1   :  { %587 = vst [vmem:[#allocation2 + $0x3f8] sm:$0xf] %v586_v31  ;;  %589 = vst [vmem:[#allocation2 + $0x3fc] sm:$0xff] %v588_v32   ;;  %v592_v33 = vld [vmem:[%s11978_s8 + $0x410] sm:$0xf]  ;;  %v604_v39 = vld [vmem:[%s11978_s8 + $0x41c] sm:$0xff]  }
  0xa2   :  { %v594_v34 = vld [vmem:[%s11978_s8 + $0x404] sm:$0xf]  ;;  %v596_v35 = vld [vmem:[%s11978_s8 + $0x414] sm:$0xf]  ;;  %593 = vst [vmem:[#allocation2 + $0x404] sm:$0xf] %v592_v33 }
  0xa3   :  { %595 = vst [vmem:[#allocation2 + $0x408] sm:$0xf] %v594_v34  ;;  %597 = vst [vmem:[#allocation2 + $0x40c] sm:$0xf] %v596_v35  ;;  %v598_v36 = vld [vmem:[%s11978_s8 + $0x408] sm:$0xf] }
  0xa4   :  { %v600_v37 = vld [vmem:[%s11978_s8 + $0x418] sm:$0xf]  ;;  %v602_v38 = vld [vmem:[%s11978_s8 + $0x40c] sm:$0xf]  ;;  %599 = vst [vmem:[#allocation2 + $0x410] sm:$0xf] %v598_v36 }
  0xa5   :  { %601 = vst [vmem:[#allocation2 + $0x414] sm:$0xf] %v600_v37  ;;  %603 = vst [vmem:[#allocation2 + $0x418] sm:$0xf] %v602_v38  ;;  %v608_v40 = vld [vmem:[%s11978_s8 + $0x430] sm:$0xf] }
  0xa6   :  { %v610_v41 = vld [vmem:[%s11978_s8 + $0x424] sm:$0xf]  ;;  %605 = vst [vmem:[#allocation2 + $0x41c] sm:$0xff] %v604_v39   ;;  %609 = vst [vmem:[#allocation2 + $0x424] sm:$0xf] %v608_v40  ;;  %v620_v46 = vld [vmem:[%s11978_s8 + $0x43c] sm:$0xff]  }
  0xa7   :  { %611 = vst [vmem:[#allocation2 + $0x428] sm:$0xf] %v610_v41  ;;  %v612_v42 = vld [vmem:[%s11978_s8 + $0x434] sm:$0xf]  ;;  %v614_v43 = vld [vmem:[%s11978_s8 + $0x428] sm:$0xf] }
  0xa8   :  { %v616_v44 = vld [vmem:[%s11978_s8 + $0x438] sm:$0xf]  ;;  %613 = vst [vmem:[#allocation2 + $0x42c] sm:$0xf] %v612_v42  ;;  %615 = vst [vmem:[#allocation2 + $0x430] sm:$0xf] %v614_v43 }
  0xa9   :  { %617 = vst [vmem:[#allocation2 + $0x434] sm:$0xf] %v616_v44  ;;  %v618_v45 = vld [vmem:[%s11978_s8 + $0x42c] sm:$0xf]  ;;  %v624_v47 = vld [vmem:[%s11978_s8 + $0x450] sm:$0xf] }
  0xaa   :  { %619 = vst [vmem:[#allocation2 + $0x438] sm:$0xf] %v618_v45  ;;  %621 = vst [vmem:[#allocation2 + $0x43c] sm:$0xff] %v620_v46   ;;  %v626_v48 = vld [vmem:[%s11978_s8 + $0x444] sm:$0xf]  ;;  %v636_v53 = vld [vmem:[%s11978_s8 + $0x45c] sm:$0xff]  }
  0xab   :  { %625 = vst [vmem:[#allocation2 + $0x444] sm:$0xf] %v624_v47  ;;  %v628_v49 = vld [vmem:[%s11978_s8 + $0x454] sm:$0xf]  ;;  %v630_v50 = vld [vmem:[%s11978_s8 + $0x448] sm:$0xf] }
  0xac   :  { %627 = vst [vmem:[#allocation2 + $0x448] sm:$0xf] %v626_v48  ;;  %629 = vst [vmem:[#allocation2 + $0x44c] sm:$0xf] %v628_v49  ;;  %v632_v51 = vld [vmem:[%s11978_s8 + $0x458] sm:$0xf] }
  0xad   :  { %631 = vst [vmem:[#allocation2 + $0x450] sm:$0xf] %v630_v50  ;;  %v634_v52 = vld [vmem:[%s11978_s8 + $0x44c] sm:$0xf]  ;;  %633 = vst [vmem:[#allocation2 + $0x454] sm:$0xf] %v632_v51 }
  0xae   :  { %635 = vst [vmem:[#allocation2 + $0x458] sm:$0xf] %v634_v52  ;;  %637 = vst [vmem:[#allocation2 + $0x45c] sm:$0xff] %v636_v53   ;;  %v640_v54 = vld [vmem:[%s11978_s8 + $0x470] sm:$0xf]  ;;  %v652_v60 = vld [vmem:[%s11978_s8 + $0x47c] sm:$0xff]  }
  0xaf   :  { %v642_v55 = vld [vmem:[%s11978_s8 + $0x464] sm:$0xf]  ;;  %v644_v56 = vld [vmem:[%s11978_s8 + $0x474] sm:$0xf]  ;;  %641 = vst [vmem:[#allocation2 + $0x464] sm:$0xf] %v640_v54 }
  0xb0   :  { %643 = vst [vmem:[#allocation2 + $0x468] sm:$0xf] %v642_v55  ;;  %645 = vst [vmem:[#allocation2 + $0x46c] sm:$0xf] %v644_v56  ;;  %v646_v57 = vld [vmem:[%s11978_s8 + $0x468] sm:$0xf] }
  0xb1   :  { %v648_v58 = vld [vmem:[%s11978_s8 + $0x478] sm:$0xf]  ;;  %v650_v59 = vld [vmem:[%s11978_s8 + $0x46c] sm:$0xf]  ;;  %647 = vst [vmem:[#allocation2 + $0x470] sm:$0xf] %v646_v57 }
  0xb2   :  { %649 = vst [vmem:[#allocation2 + $0x474] sm:$0xf] %v648_v58  ;;  %651 = vst [vmem:[#allocation2 + $0x478] sm:$0xf] %v650_v59  ;;  %v656_v61 = vld [vmem:[%s11978_s8 + $0x490] sm:$0xf] }
  0xb3   :  { %v658_v62 = vld [vmem:[%s11978_s8 + $0x484] sm:$0xf]  ;;  %653 = vst [vmem:[#allocation2 + $0x47c] sm:$0xff] %v652_v60   ;;  %657 = vst [vmem:[#allocation2 + $0x484] sm:$0xf] %v656_v61  ;;  %v668_v3 = vld [vmem:[%s11978_s8 + $0x49c] sm:$0xff]  }
  0xb4   :  { %659 = vst [vmem:[#allocation2 + $0x488] sm:$0xf] %v658_v62  ;;  %v660_v63 = vld [vmem:[%s11978_s8 + $0x494] sm:$0xf]  ;;  %v662_v0 = vld [vmem:[%s11978_s8 + $0x488] sm:$0xf] }
  0xb5   :  { %v664_v1 = vld [vmem:[%s11978_s8 + $0x498] sm:$0xf]  ;;  %661 = vst [vmem:[#allocation2 + $0x48c] sm:$0xf] %v660_v63  ;;  %663 = vst [vmem:[#allocation2 + $0x490] sm:$0xf] %v662_v0 }
  0xb6   :  { %665 = vst [vmem:[#allocation2 + $0x494] sm:$0xf] %v664_v1  ;;  %v666_v2 = vld [vmem:[%s11978_s8 + $0x48c] sm:$0xf]  ;;  %v672_v4 = vld [vmem:[%s11978_s8 + $0x4b0] sm:$0xf] }
  0xb7   :  { %667 = vst [vmem:[#allocation2 + $0x498] sm:$0xf] %v666_v2  ;;  %669 = vst [vmem:[#allocation2 + $0x49c] sm:$0xff] %v668_v3   ;;  %v674_v5 = vld [vmem:[%s11978_s8 + $0x4a4] sm:$0xf]  ;;  %v684_v10 = vld [vmem:[%s11978_s8 + $0x4bc] sm:$0xff]  }
  0xb8   :  { %673 = vst [vmem:[#allocation2 + $0x4a4] sm:$0xf] %v672_v4  ;;  %v676_v6 = vld [vmem:[%s11978_s8 + $0x4b4] sm:$0xf]  ;;  %v678_v7 = vld [vmem:[%s11978_s8 + $0x4a8] sm:$0xf] }
  0xb9   :  { %675 = vst [vmem:[#allocation2 + $0x4a8] sm:$0xf] %v674_v5  ;;  %677 = vst [vmem:[#allocation2 + $0x4ac] sm:$0xf] %v676_v6  ;;  %v680_v8 = vld [vmem:[%s11978_s8 + $0x4b8] sm:$0xf] }
  0xba   :  { %679 = vst [vmem:[#allocation2 + $0x4b0] sm:$0xf] %v678_v7  ;;  %v682_v9 = vld [vmem:[%s11978_s8 + $0x4ac] sm:$0xf]  ;;  %681 = vst [vmem:[#allocation2 + $0x4b4] sm:$0xf] %v680_v8 }
  0xbb   :  { %683 = vst [vmem:[#allocation2 + $0x4b8] sm:$0xf] %v682_v9  ;;  %685 = vst [vmem:[#allocation2 + $0x4bc] sm:$0xff] %v684_v10   ;;  %v688_v11 = vld [vmem:[%s11978_s8 + $0x4d0] sm:$0xf]  ;;  %v700_v17 = vld [vmem:[%s11978_s8 + $0x4dc] sm:$0xff]  }
  0xbc   :  { %v690_v12 = vld [vmem:[%s11978_s8 + $0x4c4] sm:$0xf]  ;;  %v692_v13 = vld [vmem:[%s11978_s8 + $0x4d4] sm:$0xf]  ;;  %689 = vst [vmem:[#allocation2 + $0x4c4] sm:$0xf] %v688_v11 }
  0xbd   :  { %691 = vst [vmem:[#allocation2 + $0x4c8] sm:$0xf] %v690_v12  ;;  %693 = vst [vmem:[#allocation2 + $0x4cc] sm:$0xf] %v692_v13  ;;  %v694_v14 = vld [vmem:[%s11978_s8 + $0x4c8] sm:$0xf] }
  0xbe   :  { %v696_v15 = vld [vmem:[%s11978_s8 + $0x4d8] sm:$0xf]  ;;  %v698_v16 = vld [vmem:[%s11978_s8 + $0x4cc] sm:$0xf]  ;;  %695 = vst [vmem:[#allocation2 + $0x4d0] sm:$0xf] %v694_v14 }
  0xbf   :  { %697 = vst [vmem:[#allocation2 + $0x4d4] sm:$0xf] %v696_v15  ;;  %699 = vst [vmem:[#allocation2 + $0x4d8] sm:$0xf] %v698_v16  ;;  %v704_v18 = vld [vmem:[%s11978_s8 + $0x4f0] sm:$0xf] }
  0xc0   :  { %v706_v19 = vld [vmem:[%s11978_s8 + $0x4e4] sm:$0xf]  ;;  %701 = vst [vmem:[#allocation2 + $0x4dc] sm:$0xff] %v700_v17   ;;  %705 = vst [vmem:[#allocation2 + $0x4e4] sm:$0xf] %v704_v18  ;;  %v716_v24 = vld [vmem:[%s11978_s8 + $0x4fc] sm:$0xff]  }
  0xc1   :  { %707 = vst [vmem:[#allocation2 + $0x4e8] sm:$0xf] %v706_v19  ;;  %v708_v20 = vld [vmem:[%s11978_s8 + $0x4f4] sm:$0xf]  ;;  %v710_v21 = vld [vmem:[%s11978_s8 + $0x4e8] sm:$0xf] }
  0xc2   :  { %v712_v22 = vld [vmem:[%s11978_s8 + $0x4f8] sm:$0xf]  ;;  %709 = vst [vmem:[#allocation2 + $0x4ec] sm:$0xf] %v708_v20  ;;  %711 = vst [vmem:[#allocation2 + $0x4f0] sm:$0xf] %v710_v21 }
  0xc3   :  { %713 = vst [vmem:[#allocation2 + $0x4f4] sm:$0xf] %v712_v22  ;;  %v714_v23 = vld [vmem:[%s11978_s8 + $0x4ec] sm:$0xf]  ;;  %v720_v25 = vld [vmem:[%s11978_s8 + $0x510] sm:$0xf] }
  0xc4   :  { %715 = vst [vmem:[#allocation2 + $0x4f8] sm:$0xf] %v714_v23  ;;  %717 = vst [vmem:[#allocation2 + $0x4fc] sm:$0xff] %v716_v24   ;;  %v722_v26 = vld [vmem:[%s11978_s8 + $0x504] sm:$0xf]  ;;  %v732_v31 = vld [vmem:[%s11978_s8 + $0x51c] sm:$0xff]  }
  0xc5   :  { %721 = vst [vmem:[#allocation2 + $0x504] sm:$0xf] %v720_v25  ;;  %v724_v27 = vld [vmem:[%s11978_s8 + $0x514] sm:$0xf]  ;;  %v726_v28 = vld [vmem:[%s11978_s8 + $0x508] sm:$0xf] }
  0xc6   :  { %723 = vst [vmem:[#allocation2 + $0x508] sm:$0xf] %v722_v26  ;;  %725 = vst [vmem:[#allocation2 + $0x50c] sm:$0xf] %v724_v27  ;;  %v728_v29 = vld [vmem:[%s11978_s8 + $0x518] sm:$0xf] }
  0xc7   :  { %727 = vst [vmem:[#allocation2 + $0x510] sm:$0xf] %v726_v28  ;;  %v730_v30 = vld [vmem:[%s11978_s8 + $0x50c] sm:$0xf]  ;;  %729 = vst [vmem:[#allocation2 + $0x514] sm:$0xf] %v728_v29 }
  0xc8   :  { %731 = vst [vmem:[#allocation2 + $0x518] sm:$0xf] %v730_v30  ;;  %733 = vst [vmem:[#allocation2 + $0x51c] sm:$0xff] %v732_v31   ;;  %v736_v32 = vld [vmem:[%s11978_s8 + $0x530] sm:$0xf]  ;;  %v748_v38 = vld [vmem:[%s11978_s8 + $0x53c] sm:$0xff]  }
  0xc9   :  { %v738_v33 = vld [vmem:[%s11978_s8 + $0x524] sm:$0xf]  ;;  %v740_v34 = vld [vmem:[%s11978_s8 + $0x534] sm:$0xf]  ;;  %737 = vst [vmem:[#allocation2 + $0x524] sm:$0xf] %v736_v32 }
  0xca   :  { %739 = vst [vmem:[#allocation2 + $0x528] sm:$0xf] %v738_v33  ;;  %741 = vst [vmem:[#allocation2 + $0x52c] sm:$0xf] %v740_v34  ;;  %v742_v35 = vld [vmem:[%s11978_s8 + $0x528] sm:$0xf] }
  0xcb   :  { %v744_v36 = vld [vmem:[%s11978_s8 + $0x538] sm:$0xf]  ;;  %v746_v37 = vld [vmem:[%s11978_s8 + $0x52c] sm:$0xf]  ;;  %743 = vst [vmem:[#allocation2 + $0x530] sm:$0xf] %v742_v35 }
  0xcc   :  { %745 = vst [vmem:[#allocation2 + $0x534] sm:$0xf] %v744_v36  ;;  %747 = vst [vmem:[#allocation2 + $0x538] sm:$0xf] %v746_v37  ;;  %v752_v39 = vld [vmem:[%s11978_s8 + $0x550] sm:$0xf] }
  0xcd   :  { %v754_v40 = vld [vmem:[%s11978_s8 + $0x544] sm:$0xf]  ;;  %749 = vst [vmem:[#allocation2 + $0x53c] sm:$0xff] %v748_v38   ;;  %753 = vst [vmem:[#allocation2 + $0x544] sm:$0xf] %v752_v39  ;;  %v764_v45 = vld [vmem:[%s11978_s8 + $0x55c] sm:$0xff]  }
  0xce   :  { %755 = vst [vmem:[#allocation2 + $0x548] sm:$0xf] %v754_v40  ;;  %v756_v41 = vld [vmem:[%s11978_s8 + $0x554] sm:$0xf]  ;;  %v758_v42 = vld [vmem:[%s11978_s8 + $0x548] sm:$0xf] }
  0xcf   :  { %v760_v43 = vld [vmem:[%s11978_s8 + $0x558] sm:$0xf]  ;;  %757 = vst [vmem:[#allocation2 + $0x54c] sm:$0xf] %v756_v41  ;;  %759 = vst [vmem:[#allocation2 + $0x550] sm:$0xf] %v758_v42 }
  0xd0   :  { %761 = vst [vmem:[#allocation2 + $0x554] sm:$0xf] %v760_v43  ;;  %v762_v44 = vld [vmem:[%s11978_s8 + $0x54c] sm:$0xf]  ;;  %v768_v46 = vld [vmem:[%s11978_s8 + $0x570] sm:$0xf] }
  0xd1   :  { %763 = vst [vmem:[#allocation2 + $0x558] sm:$0xf] %v762_v44  ;;  %765 = vst [vmem:[#allocation2 + $0x55c] sm:$0xff] %v764_v45   ;;  %v770_v47 = vld [vmem:[%s11978_s8 + $0x564] sm:$0xf]  ;;  %v780_v52 = vld [vmem:[%s11978_s8 + $0x57c] sm:$0xff]  }
  0xd2   :  { %769 = vst [vmem:[#allocation2 + $0x564] sm:$0xf] %v768_v46  ;;  %v772_v48 = vld [vmem:[%s11978_s8 + $0x574] sm:$0xf]  ;;  %v774_v49 = vld [vmem:[%s11978_s8 + $0x568] sm:$0xf] }
  0xd3   :  { %771 = vst [vmem:[#allocation2 + $0x568] sm:$0xf] %v770_v47  ;;  %773 = vst [vmem:[#allocation2 + $0x56c] sm:$0xf] %v772_v48  ;;  %v776_v50 = vld [vmem:[%s11978_s8 + $0x578] sm:$0xf] }
  0xd4   :  { %775 = vst [vmem:[#allocation2 + $0x570] sm:$0xf] %v774_v49  ;;  %v778_v51 = vld [vmem:[%s11978_s8 + $0x56c] sm:$0xf]  ;;  %777 = vst [vmem:[#allocation2 + $0x574] sm:$0xf] %v776_v50 }
  0xd5   :  { %779 = vst [vmem:[#allocation2 + $0x578] sm:$0xf] %v778_v51  ;;  %781 = vst [vmem:[#allocation2 + $0x57c] sm:$0xff] %v780_v52   ;;  %v784_v53 = vld [vmem:[%s11978_s8 + $0x590] sm:$0xf]  ;;  %v796_v59 = vld [vmem:[%s11978_s8 + $0x59c] sm:$0xff]  }
  0xd6   :  { %v786_v54 = vld [vmem:[%s11978_s8 + $0x584] sm:$0xf]  ;;  %v788_v55 = vld [vmem:[%s11978_s8 + $0x594] sm:$0xf]  ;;  %785 = vst [vmem:[#allocation2 + $0x584] sm:$0xf] %v784_v53 }
  0xd7   :  { %787 = vst [vmem:[#allocation2 + $0x588] sm:$0xf] %v786_v54  ;;  %789 = vst [vmem:[#allocation2 + $0x58c] sm:$0xf] %v788_v55  ;;  %v790_v56 = vld [vmem:[%s11978_s8 + $0x588] sm:$0xf] }
  0xd8   :  { %v792_v57 = vld [vmem:[%s11978_s8 + $0x598] sm:$0xf]  ;;  %v794_v58 = vld [vmem:[%s11978_s8 + $0x58c] sm:$0xf]  ;;  %791 = vst [vmem:[#allocation2 + $0x590] sm:$0xf] %v790_v56 }
  0xd9   :  { %793 = vst [vmem:[#allocation2 + $0x594] sm:$0xf] %v792_v57  ;;  %795 = vst [vmem:[#allocation2 + $0x598] sm:$0xf] %v794_v58  ;;  %v800_v60 = vld [vmem:[%s11978_s8 + $0x5b0] sm:$0xf] }
  0xda   :  { %v802_v61 = vld [vmem:[%s11978_s8 + $0x5a4] sm:$0xf]  ;;  %797 = vst [vmem:[#allocation2 + $0x59c] sm:$0xff] %v796_v59   ;;  %801 = vst [vmem:[#allocation2 + $0x5a4] sm:$0xf] %v800_v60  ;;  %v812_v2 = vld [vmem:[%s11978_s8 + $0x5bc] sm:$0xff]  }
  0xdb   :  { %803 = vst [vmem:[#allocation2 + $0x5a8] sm:$0xf] %v802_v61  ;;  %v804_v62 = vld [vmem:[%s11978_s8 + $0x5b4] sm:$0xf]  ;;  %v806_v63 = vld [vmem:[%s11978_s8 + $0x5a8] sm:$0xf] }
  0xdc   :  { %v808_v0 = vld [vmem:[%s11978_s8 + $0x5b8] sm:$0xf]  ;;  %805 = vst [vmem:[#allocation2 + $0x5ac] sm:$0xf] %v804_v62  ;;  %807 = vst [vmem:[#allocation2 + $0x5b0] sm:$0xf] %v806_v63 }
  0xdd   :  { %809 = vst [vmem:[#allocation2 + $0x5b4] sm:$0xf] %v808_v0  ;;  %v810_v1 = vld [vmem:[%s11978_s8 + $0x5ac] sm:$0xf]  ;;  %v816_v3 = vld [vmem:[%s11978_s8 + $0x5d0] sm:$0xf] }
  0xde   :  { %811 = vst [vmem:[#allocation2 + $0x5b8] sm:$0xf] %v810_v1  ;;  %813 = vst [vmem:[#allocation2 + $0x5bc] sm:$0xff] %v812_v2   ;;  %v818_v4 = vld [vmem:[%s11978_s8 + $0x5c4] sm:$0xf]  ;;  %v828_v9 = vld [vmem:[%s11978_s8 + $0x5dc] sm:$0xff]  }
  0xdf   :  { %817 = vst [vmem:[#allocation2 + $0x5c4] sm:$0xf] %v816_v3  ;;  %v820_v5 = vld [vmem:[%s11978_s8 + $0x5d4] sm:$0xf]  ;;  %v822_v6 = vld [vmem:[%s11978_s8 + $0x5c8] sm:$0xf] }
  0xe0   :  { %819 = vst [vmem:[#allocation2 + $0x5c8] sm:$0xf] %v818_v4  ;;  %821 = vst [vmem:[#allocation2 + $0x5cc] sm:$0xf] %v820_v5  ;;  %v824_v7 = vld [vmem:[%s11978_s8 + $0x5d8] sm:$0xf] }
  0xe1   :  { %823 = vst [vmem:[#allocation2 + $0x5d0] sm:$0xf] %v822_v6  ;;  %v826_v8 = vld [vmem:[%s11978_s8 + $0x5cc] sm:$0xf]  ;;  %825 = vst [vmem:[#allocation2 + $0x5d4] sm:$0xf] %v824_v7 }
  0xe2   :  { %827 = vst [vmem:[#allocation2 + $0x5d8] sm:$0xf] %v826_v8  ;;  %829 = vst [vmem:[#allocation2 + $0x5dc] sm:$0xff] %v828_v9   ;;  %v832_v10 = vld [vmem:[%s11978_s8 + $0x5f0] sm:$0xf]  ;;  %v844_v16 = vld [vmem:[%s11978_s8 + $0x5fc] sm:$0xff]  }
  0xe3   :  { %v834_v11 = vld [vmem:[%s11978_s8 + $0x5e4] sm:$0xf]  ;;  %v836_v12 = vld [vmem:[%s11978_s8 + $0x5f4] sm:$0xf]  ;;  %833 = vst [vmem:[#allocation2 + $0x5e4] sm:$0xf] %v832_v10 }
  0xe4   :  { %835 = vst [vmem:[#allocation2 + $0x5e8] sm:$0xf] %v834_v11  ;;  %837 = vst [vmem:[#allocation2 + $0x5ec] sm:$0xf] %v836_v12  ;;  %v838_v13 = vld [vmem:[%s11978_s8 + $0x5e8] sm:$0xf] }
  0xe5   :  { %v840_v14 = vld [vmem:[%s11978_s8 + $0x5f8] sm:$0xf]  ;;  %v842_v15 = vld [vmem:[%s11978_s8 + $0x5ec] sm:$0xf]  ;;  %839 = vst [vmem:[#allocation2 + $0x5f0] sm:$0xf] %v838_v13 }
  0xe6   :  { %841 = vst [vmem:[#allocation2 + $0x5f4] sm:$0xf] %v840_v14  ;;  %843 = vst [vmem:[#allocation2 + $0x5f8] sm:$0xf] %v842_v15  ;;  %v848_v17 = vld [vmem:[%s11978_s8 + $0x610] sm:$0xf] }
  0xe7   :  { %v850_v18 = vld [vmem:[%s11978_s8 + $0x604] sm:$0xf]  ;;  %845 = vst [vmem:[#allocation2 + $0x5fc] sm:$0xff] %v844_v16   ;;  %849 = vst [vmem:[#allocation2 + $0x604] sm:$0xf] %v848_v17  ;;  %v860_v23 = vld [vmem:[%s11978_s8 + $0x61c] sm:$0xff]  }
  0xe8   :  { %851 = vst [vmem:[#allocation2 + $0x608] sm:$0xf] %v850_v18  ;;  %v852_v19 = vld [vmem:[%s11978_s8 + $0x614] sm:$0xf]  ;;  %v854_v20 = vld [vmem:[%s11978_s8 + $0x608] sm:$0xf] }
  0xe9   :  { %v856_v21 = vld [vmem:[%s11978_s8 + $0x618] sm:$0xf]  ;;  %853 = vst [vmem:[#allocation2 + $0x60c] sm:$0xf] %v852_v19  ;;  %855 = vst [vmem:[#allocation2 + $0x610] sm:$0xf] %v854_v20 }
  0xea   :  { %857 = vst [vmem:[#allocation2 + $0x614] sm:$0xf] %v856_v21  ;;  %v858_v22 = vld [vmem:[%s11978_s8 + $0x60c] sm:$0xf]  ;;  %v864_v24 = vld [vmem:[%s11978_s8 + $0x630] sm:$0xf] }
  0xeb   :  { %859 = vst [vmem:[#allocation2 + $0x618] sm:$0xf] %v858_v22  ;;  %861 = vst [vmem:[#allocation2 + $0x61c] sm:$0xff] %v860_v23   ;;  %v866_v25 = vld [vmem:[%s11978_s8 + $0x624] sm:$0xf]  ;;  %v876_v30 = vld [vmem:[%s11978_s8 + $0x63c] sm:$0xff]  }
  0xec   :  { %865 = vst [vmem:[#allocation2 + $0x624] sm:$0xf] %v864_v24  ;;  %v868_v26 = vld [vmem:[%s11978_s8 + $0x634] sm:$0xf]  ;;  %v870_v27 = vld [vmem:[%s11978_s8 + $0x628] sm:$0xf] }
  0xed   :  { %867 = vst [vmem:[#allocation2 + $0x628] sm:$0xf] %v866_v25  ;;  %869 = vst [vmem:[#allocation2 + $0x62c] sm:$0xf] %v868_v26  ;;  %v872_v28 = vld [vmem:[%s11978_s8 + $0x638] sm:$0xf] }
  0xee   :  { %871 = vst [vmem:[#allocation2 + $0x630] sm:$0xf] %v870_v27  ;;  %v874_v29 = vld [vmem:[%s11978_s8 + $0x62c] sm:$0xf]  ;;  %873 = vst [vmem:[#allocation2 + $0x634] sm:$0xf] %v872_v28 }
  0xef   :  { %875 = vst [vmem:[#allocation2 + $0x638] sm:$0xf] %v874_v29  ;;  %877 = vst [vmem:[#allocation2 + $0x63c] sm:$0xff] %v876_v30   ;;  %v880_v31 = vld [vmem:[%s11978_s8 + $0x650] sm:$0xf]  ;;  %v892_v37 = vld [vmem:[%s11978_s8 + $0x65c] sm:$0xff]  }
  0xf0   :  { %v882_v32 = vld [vmem:[%s11978_s8 + $0x644] sm:$0xf]  ;;  %v884_v33 = vld [vmem:[%s11978_s8 + $0x654] sm:$0xf]  ;;  %881 = vst [vmem:[#allocation2 + $0x644] sm:$0xf] %v880_v31 }
  0xf1   :  { %883 = vst [vmem:[#allocation2 + $0x648] sm:$0xf] %v882_v32  ;;  %885 = vst [vmem:[#allocation2 + $0x64c] sm:$0xf] %v884_v33  ;;  %v886_v34 = vld [vmem:[%s11978_s8 + $0x648] sm:$0xf] }
  0xf2   :  { %v888_v35 = vld [vmem:[%s11978_s8 + $0x658] sm:$0xf]  ;;  %v890_v36 = vld [vmem:[%s11978_s8 + $0x64c] sm:$0xf]  ;;  %887 = vst [vmem:[#allocation2 + $0x650] sm:$0xf] %v886_v34 }
  0xf3   :  { %889 = vst [vmem:[#allocation2 + $0x654] sm:$0xf] %v888_v35  ;;  %891 = vst [vmem:[#allocation2 + $0x658] sm:$0xf] %v890_v36  ;;  %v896_v38 = vld [vmem:[%s11978_s8 + $0x670] sm:$0xf] }
  0xf4   :  { %v898_v39 = vld [vmem:[%s11978_s8 + $0x664] sm:$0xf]  ;;  %893 = vst [vmem:[#allocation2 + $0x65c] sm:$0xff] %v892_v37   ;;  %897 = vst [vmem:[#allocation2 + $0x664] sm:$0xf] %v896_v38  ;;  %v908_v44 = vld [vmem:[%s11978_s8 + $0x67c] sm:$0xff]  }
  0xf5   :  { %899 = vst [vmem:[#allocation2 + $0x668] sm:$0xf] %v898_v39  ;;  %v900_v40 = vld [vmem:[%s11978_s8 + $0x674] sm:$0xf]  ;;  %v902_v41 = vld [vmem:[%s11978_s8 + $0x668] sm:$0xf] }
  0xf6   :  { %v904_v42 = vld [vmem:[%s11978_s8 + $0x678] sm:$0xf]  ;;  %901 = vst [vmem:[#allocation2 + $0x66c] sm:$0xf] %v900_v40  ;;  %903 = vst [vmem:[#allocation2 + $0x670] sm:$0xf] %v902_v41 }
  0xf7   :  { %905 = vst [vmem:[#allocation2 + $0x674] sm:$0xf] %v904_v42  ;;  %v906_v43 = vld [vmem:[%s11978_s8 + $0x66c] sm:$0xf]  ;;  %v912_v45 = vld [vmem:[%s11978_s8 + $0x690] sm:$0xf] }
  0xf8   :  { %907 = vst [vmem:[#allocation2 + $0x678] sm:$0xf] %v906_v43  ;;  %909 = vst [vmem:[#allocation2 + $0x67c] sm:$0xff] %v908_v44   ;;  %v914_v46 = vld [vmem:[%s11978_s8 + $0x684] sm:$0xf]  ;;  %v924_v51 = vld [vmem:[%s11978_s8 + $0x69c] sm:$0xff]  }
  0xf9   :  { %913 = vst [vmem:[#allocation2 + $0x684] sm:$0xf] %v912_v45  ;;  %v916_v47 = vld [vmem:[%s11978_s8 + $0x694] sm:$0xf]  ;;  %v918_v48 = vld [vmem:[%s11978_s8 + $0x688] sm:$0xf] }
  0xfa   :  { %915 = vst [vmem:[#allocation2 + $0x688] sm:$0xf] %v914_v46  ;;  %917 = vst [vmem:[#allocation2 + $0x68c] sm:$0xf] %v916_v47  ;;  %v920_v49 = vld [vmem:[%s11978_s8 + $0x698] sm:$0xf] }
  0xfb   :  { %919 = vst [vmem:[#allocation2 + $0x690] sm:$0xf] %v918_v48  ;;  %v922_v50 = vld [vmem:[%s11978_s8 + $0x68c] sm:$0xf]  ;;  %921 = vst [vmem:[#allocation2 + $0x694] sm:$0xf] %v920_v49 }
  0xfc   :  { %923 = vst [vmem:[#allocation2 + $0x698] sm:$0xf] %v922_v50  ;;  %925 = vst [vmem:[#allocation2 + $0x69c] sm:$0xff] %v924_v51   ;;  %v928_v52 = vld [vmem:[%s11978_s8 + $0x6b0] sm:$0xf]  ;;  %v940_v58 = vld [vmem:[%s11978_s8 + $0x6bc] sm:$0xff]  }
  0xfd   :  { %v930_v53 = vld [vmem:[%s11978_s8 + $0x6a4] sm:$0xf]  ;;  %v932_v54 = vld [vmem:[%s11978_s8 + $0x6b4] sm:$0xf]  ;;  %929 = vst [vmem:[#allocation2 + $0x6a4] sm:$0xf] %v928_v52 }
  0xfe   :  { %931 = vst [vmem:[#allocation2 + $0x6a8] sm:$0xf] %v930_v53  ;;  %933 = vst [vmem:[#allocation2 + $0x6ac] sm:$0xf] %v932_v54  ;;  %v934_v55 = vld [vmem:[%s11978_s8 + $0x6a8] sm:$0xf] }
  0xff   :  { %v936_v56 = vld [vmem:[%s11978_s8 + $0x6b8] sm:$0xf]  ;;  %v938_v57 = vld [vmem:[%s11978_s8 + $0x6ac] sm:$0xf]  ;;  %935 = vst [vmem:[#allocation2 + $0x6b0] sm:$0xf] %v934_v55 }
 0x100   :  { %937 = vst [vmem:[#allocation2 + $0x6b4] sm:$0xf] %v936_v56  ;;  %939 = vst [vmem:[#allocation2 + $0x6b8] sm:$0xf] %v938_v57  ;;  %v944_v59 = vld [vmem:[%s11978_s8 + $0x6d0] sm:$0xf] }
 0x101   :  { %v946_v60 = vld [vmem:[%s11978_s8 + $0x6c4] sm:$0xf]  ;;  %941 = vst [vmem:[#allocation2 + $0x6bc] sm:$0xff] %v940_v58   ;;  %945 = vst [vmem:[#allocation2 + $0x6c4] sm:$0xf] %v944_v59  ;;  %v956_v1 = vld [vmem:[%s11978_s8 + $0x6dc] sm:$0xff]  }
 0x102   :  { %947 = vst [vmem:[#allocation2 + $0x6c8] sm:$0xf] %v946_v60  ;;  %v948_v61 = vld [vmem:[%s11978_s8 + $0x6d4] sm:$0xf]  ;;  %v950_v62 = vld [vmem:[%s11978_s8 + $0x6c8] sm:$0xf] }
 0x103   :  { %v952_v63 = vld [vmem:[%s11978_s8 + $0x6d8] sm:$0xf]  ;;  %949 = vst [vmem:[#allocation2 + $0x6cc] sm:$0xf] %v948_v61  ;;  %951 = vst [vmem:[#allocation2 + $0x6d0] sm:$0xf] %v950_v62 }
 0x104   :  { %953 = vst [vmem:[#allocation2 + $0x6d4] sm:$0xf] %v952_v63  ;;  %v954_v0 = vld [vmem:[%s11978_s8 + $0x6cc] sm:$0xf]  ;;  %v960_v2 = vld [vmem:[%s11978_s8 + $0x6f0] sm:$0xf] }
 0x105   :  { %955 = vst [vmem:[#allocation2 + $0x6d8] sm:$0xf] %v954_v0  ;;  %957 = vst [vmem:[#allocation2 + $0x6dc] sm:$0xff] %v956_v1   ;;  %v962_v3 = vld [vmem:[%s11978_s8 + $0x6e4] sm:$0xf]  ;;  %v972_v8 = vld [vmem:[%s11978_s8 + $0x6fc] sm:$0xff]  }
 0x106   :  { %961 = vst [vmem:[#allocation2 + $0x6e4] sm:$0xf] %v960_v2  ;;  %v964_v4 = vld [vmem:[%s11978_s8 + $0x6f4] sm:$0xf]  ;;  %v966_v5 = vld [vmem:[%s11978_s8 + $0x6e8] sm:$0xf] }
 0x107   :  { %963 = vst [vmem:[#allocation2 + $0x6e8] sm:$0xf] %v962_v3  ;;  %965 = vst [vmem:[#allocation2 + $0x6ec] sm:$0xf] %v964_v4  ;;  %v968_v6 = vld [vmem:[%s11978_s8 + $0x6f8] sm:$0xf] }
 0x108   :  { %967 = vst [vmem:[#allocation2 + $0x6f0] sm:$0xf] %v966_v5  ;;  %v970_v7 = vld [vmem:[%s11978_s8 + $0x6ec] sm:$0xf]  ;;  %969 = vst [vmem:[#allocation2 + $0x6f4] sm:$0xf] %v968_v6 }
 0x109   :  { %971 = vst [vmem:[#allocation2 + $0x6f8] sm:$0xf] %v970_v7  ;;  %973 = vst [vmem:[#allocation2 + $0x6fc] sm:$0xff] %v972_v8   ;;  %v976_v9 = vld [vmem:[%s11978_s8 + $0x710] sm:$0xf]  ;;  %v988_v15 = vld [vmem:[%s11978_s8 + $0x71c] sm:$0xff]  }
 0x10a   :  { %v978_v10 = vld [vmem:[%s11978_s8 + $0x704] sm:$0xf]  ;;  %v980_v11 = vld [vmem:[%s11978_s8 + $0x714] sm:$0xf]  ;;  %977 = vst [vmem:[#allocation2 + $0x704] sm:$0xf] %v976_v9 }
 0x10b   :  { %979 = vst [vmem:[#allocation2 + $0x708] sm:$0xf] %v978_v10  ;;  %981 = vst [vmem:[#allocation2 + $0x70c] sm:$0xf] %v980_v11  ;;  %v982_v12 = vld [vmem:[%s11978_s8 + $0x708] sm:$0xf] }
 0x10c   :  { %v984_v13 = vld [vmem:[%s11978_s8 + $0x718] sm:$0xf]  ;;  %v986_v14 = vld [vmem:[%s11978_s8 + $0x70c] sm:$0xf]  ;;  %983 = vst [vmem:[#allocation2 + $0x710] sm:$0xf] %v982_v12 }
 0x10d   :  { %985 = vst [vmem:[#allocation2 + $0x714] sm:$0xf] %v984_v13  ;;  %987 = vst [vmem:[#allocation2 + $0x718] sm:$0xf] %v986_v14  ;;  %v992_v16 = vld [vmem:[%s11978_s8 + $0x730] sm:$0xf] }
 0x10e   :  { %v994_v17 = vld [vmem:[%s11978_s8 + $0x724] sm:$0xf]  ;;  %989 = vst [vmem:[#allocation2 + $0x71c] sm:$0xff] %v988_v15   ;;  %993 = vst [vmem:[#allocation2 + $0x724] sm:$0xf] %v992_v16  ;;  %v1004_v22 = vld [vmem:[%s11978_s8 + $0x73c] sm:$0xff]  }
 0x10f   :  { %995 = vst [vmem:[#allocation2 + $0x728] sm:$0xf] %v994_v17  ;;  %v996_v18 = vld [vmem:[%s11978_s8 + $0x734] sm:$0xf]  ;;  %v998_v19 = vld [vmem:[%s11978_s8 + $0x728] sm:$0xf] }
 0x110   :  { %v1000_v20 = vld [vmem:[%s11978_s8 + $0x738] sm:$0xf]  ;;  %997 = vst [vmem:[#allocation2 + $0x72c] sm:$0xf] %v996_v18  ;;  %999 = vst [vmem:[#allocation2 + $0x730] sm:$0xf] %v998_v19 }
 0x111   :  { %1001 = vst [vmem:[#allocation2 + $0x734] sm:$0xf] %v1000_v20  ;;  %v1002_v21 = vld [vmem:[%s11978_s8 + $0x72c] sm:$0xf]  ;;  %v1008_v23 = vld [vmem:[%s11978_s8 + $0x750] sm:$0xf] }
 0x112   :  { %1003 = vst [vmem:[#allocation2 + $0x738] sm:$0xf] %v1002_v21  ;;  %1005 = vst [vmem:[#allocation2 + $0x73c] sm:$0xff] %v1004_v22   ;;  %v1010_v24 = vld [vmem:[%s11978_s8 + $0x744] sm:$0xf]  ;;  %v1020_v29 = vld [vmem:[%s11978_s8 + $0x75c] sm:$0xff]  }
 0x113   :  { %1009 = vst [vmem:[#allocation2 + $0x744] sm:$0xf] %v1008_v23  ;;  %v1012_v25 = vld [vmem:[%s11978_s8 + $0x754] sm:$0xf]  ;;  %v1014_v26 = vld [vmem:[%s11978_s8 + $0x748] sm:$0xf] }
 0x114   :  { %1011 = vst [vmem:[#allocation2 + $0x748] sm:$0xf] %v1010_v24  ;;  %1013 = vst [vmem:[#allocation2 + $0x74c] sm:$0xf] %v1012_v25  ;;  %v1016_v27 = vld [vmem:[%s11978_s8 + $0x758] sm:$0xf] }
 0x115   :  { %1015 = vst [vmem:[#allocation2 + $0x750] sm:$0xf] %v1014_v26  ;;  %v1018_v28 = vld [vmem:[%s11978_s8 + $0x74c] sm:$0xf]  ;;  %1017 = vst [vmem:[#allocation2 + $0x754] sm:$0xf] %v1016_v27 }
 0x116   :  { %1019 = vst [vmem:[#allocation2 + $0x758] sm:$0xf] %v1018_v28  ;;  %1021 = vst [vmem:[#allocation2 + $0x75c] sm:$0xff] %v1020_v29   ;;  %v1024_v30 = vld [vmem:[%s11978_s8 + $0x770] sm:$0xf]  ;;  %v1036_v36 = vld [vmem:[%s11978_s8 + $0x77c] sm:$0xff]  }
 0x117   :  { %v1026_v31 = vld [vmem:[%s11978_s8 + $0x764] sm:$0xf]  ;;  %v1028_v32 = vld [vmem:[%s11978_s8 + $0x774] sm:$0xf]  ;;  %1025 = vst [vmem:[#allocation2 + $0x764] sm:$0xf] %v1024_v30 }
 0x118   :  { %1027 = vst [vmem:[#allocation2 + $0x768] sm:$0xf] %v1026_v31  ;;  %1029 = vst [vmem:[#allocation2 + $0x76c] sm:$0xf] %v1028_v32  ;;  %v1030_v33 = vld [vmem:[%s11978_s8 + $0x768] sm:$0xf] }
 0x119   :  { %v1032_v34 = vld [vmem:[%s11978_s8 + $0x778] sm:$0xf]  ;;  %v1034_v35 = vld [vmem:[%s11978_s8 + $0x76c] sm:$0xf]  ;;  %1031 = vst [vmem:[#allocation2 + $0x770] sm:$0xf] %v1030_v33 }
 0x11a   :  { %1033 = vst [vmem:[#allocation2 + $0x774] sm:$0xf] %v1032_v34  ;;  %1035 = vst [vmem:[#allocation2 + $0x778] sm:$0xf] %v1034_v35  ;;  %v1040_v37 = vld [vmem:[%s11978_s8 + $0x790] sm:$0xf] }
 0x11b   :  { %v1042_v38 = vld [vmem:[%s11978_s8 + $0x784] sm:$0xf]  ;;  %1037 = vst [vmem:[#allocation2 + $0x77c] sm:$0xff] %v1036_v36   ;;  %1041 = vst [vmem:[#allocation2 + $0x784] sm:$0xf] %v1040_v37  ;;  %v1052_v43 = vld [vmem:[%s11978_s8 + $0x79c] sm:$0xff]  }
 0x11c   :  { %1043 = vst [vmem:[#allocation2 + $0x788] sm:$0xf] %v1042_v38  ;;  %v1044_v39 = vld [vmem:[%s11978_s8 + $0x794] sm:$0xf]  ;;  %v1046_v40 = vld [vmem:[%s11978_s8 + $0x788] sm:$0xf] }
 0x11d   :  { %v1048_v41 = vld [vmem:[%s11978_s8 + $0x798] sm:$0xf]  ;;  %1045 = vst [vmem:[#allocation2 + $0x78c] sm:$0xf] %v1044_v39  ;;  %1047 = vst [vmem:[#allocation2 + $0x790] sm:$0xf] %v1046_v40 }
 0x11e   :  { %1049 = vst [vmem:[#allocation2 + $0x794] sm:$0xf] %v1048_v41  ;;  %v1050_v42 = vld [vmem:[%s11978_s8 + $0x78c] sm:$0xf]  ;;  %v1056_v44 = vld [vmem:[%s11978_s8 + $0x7b0] sm:$0xf] }
 0x11f   :  { %1051 = vst [vmem:[#allocation2 + $0x798] sm:$0xf] %v1050_v42  ;;  %1053 = vst [vmem:[#allocation2 + $0x79c] sm:$0xff] %v1052_v43   ;;  %v1058_v45 = vld [vmem:[%s11978_s8 + $0x7a4] sm:$0xf]  ;;  %v1068_v50 = vld [vmem:[%s11978_s8 + $0x7bc] sm:$0xff]  }
 0x120   :  { %1057 = vst [vmem:[#allocation2 + $0x7a4] sm:$0xf] %v1056_v44  ;;  %v1060_v46 = vld [vmem:[%s11978_s8 + $0x7b4] sm:$0xf]  ;;  %v1062_v47 = vld [vmem:[%s11978_s8 + $0x7a8] sm:$0xf] }
 0x121   :  { %1059 = vst [vmem:[#allocation2 + $0x7a8] sm:$0xf] %v1058_v45  ;;  %1061 = vst [vmem:[#allocation2 + $0x7ac] sm:$0xf] %v1060_v46  ;;  %v1064_v48 = vld [vmem:[%s11978_s8 + $0x7b8] sm:$0xf] }
 0x122   :  { %1063 = vst [vmem:[#allocation2 + $0x7b0] sm:$0xf] %v1062_v47  ;;  %v1066_v49 = vld [vmem:[%s11978_s8 + $0x7ac] sm:$0xf]  ;;  %1065 = vst [vmem:[#allocation2 + $0x7b4] sm:$0xf] %v1064_v48 }
 0x123   :  { %1067 = vst [vmem:[#allocation2 + $0x7b8] sm:$0xf] %v1066_v49  ;;  %1069 = vst [vmem:[#allocation2 + $0x7bc] sm:$0xff] %v1068_v50   ;;  %v1072_v51 = vld [vmem:[%s11978_s8 + $0x7d0] sm:$0xf]  ;;  %v1084_v57 = vld [vmem:[%s11978_s8 + $0x7dc] sm:$0xff]  }
 0x124   :  { %v1074_v52 = vld [vmem:[%s11978_s8 + $0x7c4] sm:$0xf]  ;;  %v1076_v53 = vld [vmem:[%s11978_s8 + $0x7d4] sm:$0xf]  ;;  %1073 = vst [vmem:[#allocation2 + $0x7c4] sm:$0xf] %v1072_v51 }
 0x125   :  { %1075 = vst [vmem:[#allocation2 + $0x7c8] sm:$0xf] %v1074_v52  ;;  %1077 = vst [vmem:[#allocation2 + $0x7cc] sm:$0xf] %v1076_v53  ;;  %v1078_v54 = vld [vmem:[%s11978_s8 + $0x7c8] sm:$0xf] }
 0x126   :  { %v1080_v55 = vld [vmem:[%s11978_s8 + $0x7d8] sm:$0xf]  ;;  %v1082_v56 = vld [vmem:[%s11978_s8 + $0x7cc] sm:$0xf]  ;;  %1079 = vst [vmem:[#allocation2 + $0x7d0] sm:$0xf] %v1078_v54 }
 0x127   :  { %1081 = vst [vmem:[#allocation2 + $0x7d4] sm:$0xf] %v1080_v55  ;;  %1083 = vst [vmem:[#allocation2 + $0x7d8] sm:$0xf] %v1082_v56  ;;  %v1088_v58 = vld [vmem:[%s11978_s8 + $0x7f0] sm:$0xf] }
 0x128   :  { %v1090_v59 = vld [vmem:[%s11978_s8 + $0x7e4] sm:$0xf]  ;;  %1085 = vst [vmem:[#allocation2 + $0x7dc] sm:$0xff] %v1084_v57   ;;  %1089 = vst [vmem:[#allocation2 + $0x7e4] sm:$0xf] %v1088_v58 }
 0x129   :  { %1091 = vst [vmem:[#allocation2 + $0x7e8] sm:$0xf] %v1090_v59  ;;  %v1092_v60 = vld [vmem:[%s11978_s8 + $0x7f4] sm:$0xf]  ;;  %v1094_v61 = vld [vmem:[%s11978_s8 + $0x7e8] sm:$0xf] }
 0x12a   :  { %v1096_v62 = vld [vmem:[%s11978_s8 + $0x7f8] sm:$0xf]  ;;  %1093 = vst [vmem:[#allocation2 + $0x7ec] sm:$0xf] %v1092_v60  ;;  %1095 = vst [vmem:[#allocation2 + $0x7f0] sm:$0xf] %v1094_v61 }
 0x12b   :  { %1097 = vst [vmem:[#allocation2 + $0x7f4] sm:$0xf] %v1096_v62  ;;  %v1098_v63 = vld [vmem:[%s11978_s8 + $0x7ec] sm:$0xf]  ;;  %v1100_v0 = vld [vmem:[%s11978_s8 + $0x7fc] sm:$0xf] }
 0x12c   :  { %1099 = vst [vmem:[#allocation2 + $0x7f8] sm:$0xf] %v1098_v63  ;;  %1101 = vst [vmem:[#allocation2 + $0x7fc] sm:$0xf] %v1100_v0 }
 0x12d   :  { %4237 = vsyncadd [#allocation5], 32768  ;;  %v4256_v1 = vld [vmem:[%s11980_s10] sm:$0xf]  ;;  %v4258_v2 = vld [vmem:[%s11980_s10 + $0x8] sm:$0xf] }
 0x12e   :  { %4257 = vst [vmem:[#allocation3] sm:$0xf] %v4256_v1  ;;  %4259 = vst [vmem:[#allocation3 + $0x4] sm:$0xf] %v4258_v2  ;;  %v4260_v3 = vld [vmem:[%s11980_s10 + $0x4] sm:$0xf] }
 0x12f   :  { %v4262_v4 = vld [vmem:[%s11980_s10 + $0xc] sm:$0xff]   ;;  %v4266_v5 = vld [vmem:[%s11980_s10 + $0x18] sm:$0xf]  ;;  %4261 = vst [vmem:[#allocation3 + $0x8] sm:$0xf] %v4260_v3  ;;  %v4270_v7 = vld [vmem:[%s11980_s10 + $0x1c] sm:$0xff]  }
 0x130   :  { %4263 = vst [vmem:[#allocation3 + $0xc] sm:$0xff] %v4262_v4   ;;  %4267 = vst [vmem:[#allocation3 + $0x14] sm:$0xf] %v4266_v5  ;;  %v4268_v6 = vld [vmem:[%s11980_s10 + $0x14] sm:$0xf]  ;;  %v4278_v10 = vld [vmem:[%s11980_s10 + $0x2c] sm:$0xff]  }
 0x131   :  { %v4274_v8 = vld [vmem:[%s11980_s10 + $0x28] sm:$0xf]  ;;  %4269 = vst [vmem:[#allocation3 + $0x18] sm:$0xf] %v4268_v6  ;;  %4271 = vst [vmem:[#allocation3 + $0x1c] sm:$0xff] %v4270_v7   ;;  %v4286_v13 = vld [vmem:[%s11980_s10 + $0x3c] sm:$0xff]  }
 0x132   :  { %4275 = vst [vmem:[#allocation3 + $0x24] sm:$0xf] %v4274_v8  ;;  %v4276_v9 = vld [vmem:[%s11980_s10 + $0x24] sm:$0xf]  ;;  %v4282_v11 = vld [vmem:[%s11980_s10 + $0x38] sm:$0xf] }
 0x133   :  { %4277 = vst [vmem:[#allocation3 + $0x28] sm:$0xf] %v4276_v9  ;;  %4279 = vst [vmem:[#allocation3 + $0x2c] sm:$0xff] %v4278_v10   ;;  %v4284_v12 = vld [vmem:[%s11980_s10 + $0x34] sm:$0xf]  ;;  %v4294_v16 = vld [vmem:[%s11980_s10 + $0x4c] sm:$0xff]  }
 0x134   :  { %4283 = vst [vmem:[#allocation3 + $0x34] sm:$0xf] %v4282_v11  ;;  %v4290_v14 = vld [vmem:[%s11980_s10 + $0x48] sm:$0xf]  ;;  %4285 = vst [vmem:[#allocation3 + $0x38] sm:$0xf] %v4284_v12 }
 0x135   :  { %4287 = vst [vmem:[#allocation3 + $0x3c] sm:$0xff] %v4286_v13   ;;  %4291 = vst [vmem:[#allocation3 + $0x44] sm:$0xf] %v4290_v14  ;;  %v4292_v15 = vld [vmem:[%s11980_s10 + $0x44] sm:$0xf]  ;;  %v4302_v19 = vld [vmem:[%s11980_s10 + $0x5c] sm:$0xff]  }
 0x136   :  { %v4298_v17 = vld [vmem:[%s11980_s10 + $0x58] sm:$0xf]  ;;  %4293 = vst [vmem:[#allocation3 + $0x48] sm:$0xf] %v4292_v15  ;;  %4295 = vst [vmem:[#allocation3 + $0x4c] sm:$0xff] %v4294_v16   ;;  %v4310_v22 = vld [vmem:[%s11980_s10 + $0x6c] sm:$0xff]  }
 0x137   :  { %4299 = vst [vmem:[#allocation3 + $0x54] sm:$0xf] %v4298_v17  ;;  %v4300_v18 = vld [vmem:[%s11980_s10 + $0x54] sm:$0xf]  ;;  %v4306_v20 = vld [vmem:[%s11980_s10 + $0x68] sm:$0xf] }
 0x138   :  { %4301 = vst [vmem:[#allocation3 + $0x58] sm:$0xf] %v4300_v18  ;;  %4303 = vst [vmem:[#allocation3 + $0x5c] sm:$0xff] %v4302_v19   ;;  %v4308_v21 = vld [vmem:[%s11980_s10 + $0x64] sm:$0xf]  ;;  %v4318_v25 = vld [vmem:[%s11980_s10 + $0x7c] sm:$0xff]  }
 0x139   :  { %4307 = vst [vmem:[#allocation3 + $0x64] sm:$0xf] %v4306_v20  ;;  %v4314_v23 = vld [vmem:[%s11980_s10 + $0x78] sm:$0xf]  ;;  %4309 = vst [vmem:[#allocation3 + $0x68] sm:$0xf] %v4308_v21 }
 0x13a   :  { %4311 = vst [vmem:[#allocation3 + $0x6c] sm:$0xff] %v4310_v22   ;;  %4315 = vst [vmem:[#allocation3 + $0x74] sm:$0xf] %v4314_v23  ;;  %v4316_v24 = vld [vmem:[%s11980_s10 + $0x74] sm:$0xf]  ;;  %v4326_v28 = vld [vmem:[%s11980_s10 + $0x8c] sm:$0xff]  }
 0x13b   :  { %v4322_v26 = vld [vmem:[%s11980_s10 + $0x88] sm:$0xf]  ;;  %4317 = vst [vmem:[#allocation3 + $0x78] sm:$0xf] %v4316_v24  ;;  %4319 = vst [vmem:[#allocation3 + $0x7c] sm:$0xff] %v4318_v25   ;;  %v4334_v31 = vld [vmem:[%s11980_s10 + $0x9c] sm:$0xff]  }
 0x13c   :  { %4323 = vst [vmem:[#allocation3 + $0x84] sm:$0xf] %v4322_v26  ;;  %v4324_v27 = vld [vmem:[%s11980_s10 + $0x84] sm:$0xf]  ;;  %v4330_v29 = vld [vmem:[%s11980_s10 + $0x98] sm:$0xf] }
 0x13d   :  { %4325 = vst [vmem:[#allocation3 + $0x88] sm:$0xf] %v4324_v27  ;;  %4327 = vst [vmem:[#allocation3 + $0x8c] sm:$0xff] %v4326_v28   ;;  %v4332_v30 = vld [vmem:[%s11980_s10 + $0x94] sm:$0xf]  ;;  %v4342_v34 = vld [vmem:[%s11980_s10 + $0xac] sm:$0xff]  }
 0x13e   :  { %4331 = vst [vmem:[#allocation3 + $0x94] sm:$0xf] %v4330_v29  ;;  %v4338_v32 = vld [vmem:[%s11980_s10 + $0xa8] sm:$0xf]  ;;  %4333 = vst [vmem:[#allocation3 + $0x98] sm:$0xf] %v4332_v30 }
 0x13f   :  { %4335 = vst [vmem:[#allocation3 + $0x9c] sm:$0xff] %v4334_v31   ;;  %4339 = vst [vmem:[#allocation3 + $0xa4] sm:$0xf] %v4338_v32  ;;  %v4340_v33 = vld [vmem:[%s11980_s10 + $0xa4] sm:$0xf]  ;;  %v4350_v37 = vld [vmem:[%s11980_s10 + $0xbc] sm:$0xff]  }
 0x140   :  { %v4346_v35 = vld [vmem:[%s11980_s10 + $0xb8] sm:$0xf]  ;;  %4341 = vst [vmem:[#allocation3 + $0xa8] sm:$0xf] %v4340_v33  ;;  %4343 = vst [vmem:[#allocation3 + $0xac] sm:$0xff] %v4342_v34   ;;  %v4358_v40 = vld [vmem:[%s11980_s10 + $0xcc] sm:$0xff]  }
 0x141   :  { %4347 = vst [vmem:[#allocation3 + $0xb4] sm:$0xf] %v4346_v35  ;;  %v4348_v36 = vld [vmem:[%s11980_s10 + $0xb4] sm:$0xf]  ;;  %v4354_v38 = vld [vmem:[%s11980_s10 + $0xc8] sm:$0xf] }
 0x142   :  { %4349 = vst [vmem:[#allocation3 + $0xb8] sm:$0xf] %v4348_v36  ;;  %4351 = vst [vmem:[#allocation3 + $0xbc] sm:$0xff] %v4350_v37   ;;  %v4356_v39 = vld [vmem:[%s11980_s10 + $0xc4] sm:$0xf]  ;;  %v4366_v43 = vld [vmem:[%s11980_s10 + $0xdc] sm:$0xff]  }
 0x143   :  { %4355 = vst [vmem:[#allocation3 + $0xc4] sm:$0xf] %v4354_v38  ;;  %v4362_v41 = vld [vmem:[%s11980_s10 + $0xd8] sm:$0xf]  ;;  %4357 = vst [vmem:[#allocation3 + $0xc8] sm:$0xf] %v4356_v39 }
 0x144   :  { %4359 = vst [vmem:[#allocation3 + $0xcc] sm:$0xff] %v4358_v40   ;;  %4363 = vst [vmem:[#allocation3 + $0xd4] sm:$0xf] %v4362_v41  ;;  %v4364_v42 = vld [vmem:[%s11980_s10 + $0xd4] sm:$0xf]  ;;  %v4374_v46 = vld [vmem:[%s11980_s10 + $0xec] sm:$0xff]  }
 0x145   :  { %v4370_v44 = vld [vmem:[%s11980_s10 + $0xe8] sm:$0xf]  ;;  %4365 = vst [vmem:[#allocation3 + $0xd8] sm:$0xf] %v4364_v42  ;;  %4367 = vst [vmem:[#allocation3 + $0xdc] sm:$0xff] %v4366_v43   ;;  %v4382_v49 = vld [vmem:[%s11980_s10 + $0xfc] sm:$0xff]  }
 0x146   :  { %4371 = vst [vmem:[#allocation3 + $0xe4] sm:$0xf] %v4370_v44  ;;  %v4372_v45 = vld [vmem:[%s11980_s10 + $0xe4] sm:$0xf]  ;;  %v4378_v47 = vld [vmem:[%s11980_s10 + $0xf8] sm:$0xf] }
 0x147   :  { %4373 = vst [vmem:[#allocation3 + $0xe8] sm:$0xf] %v4372_v45  ;;  %4375 = vst [vmem:[#allocation3 + $0xec] sm:$0xff] %v4374_v46   ;;  %v4380_v48 = vld [vmem:[%s11980_s10 + $0xf4] sm:$0xf]  ;;  %v4390_v52 = vld [vmem:[%s11980_s10 + $0x10c] sm:$0xff]  }
 0x148   :  { %4379 = vst [vmem:[#allocation3 + $0xf4] sm:$0xf] %v4378_v47  ;;  %v4386_v50 = vld [vmem:[%s11980_s10 + $0x108] sm:$0xf]  ;;  %4381 = vst [vmem:[#allocation3 + $0xf8] sm:$0xf] %v4380_v48 }
 0x149   :  { %4383 = vst [vmem:[#allocation3 + $0xfc] sm:$0xff] %v4382_v49   ;;  %4387 = vst [vmem:[#allocation3 + $0x104] sm:$0xf] %v4386_v50  ;;  %v4388_v51 = vld [vmem:[%s11980_s10 + $0x104] sm:$0xf]  ;;  %v4398_v55 = vld [vmem:[%s11980_s10 + $0x11c] sm:$0xff]  }
 0x14a   :  { %v4394_v53 = vld [vmem:[%s11980_s10 + $0x118] sm:$0xf]  ;;  %4389 = vst [vmem:[#allocation3 + $0x108] sm:$0xf] %v4388_v51  ;;  %4391 = vst [vmem:[#allocation3 + $0x10c] sm:$0xff] %v4390_v52   ;;  %v4406_v58 = vld [vmem:[%s11980_s10 + $0x12c] sm:$0xff]  }
 0x14b   :  { %4395 = vst [vmem:[#allocation3 + $0x114] sm:$0xf] %v4394_v53  ;;  %v4396_v54 = vld [vmem:[%s11980_s10 + $0x114] sm:$0xf]  ;;  %v4402_v56 = vld [vmem:[%s11980_s10 + $0x128] sm:$0xf] }
 0x14c   :  { %4397 = vst [vmem:[#allocation3 + $0x118] sm:$0xf] %v4396_v54  ;;  %4399 = vst [vmem:[#allocation3 + $0x11c] sm:$0xff] %v4398_v55   ;;  %v4404_v57 = vld [vmem:[%s11980_s10 + $0x124] sm:$0xf]  ;;  %v4414_v61 = vld [vmem:[%s11980_s10 + $0x13c] sm:$0xff]  }
 0x14d   :  { %4403 = vst [vmem:[#allocation3 + $0x124] sm:$0xf] %v4402_v56  ;;  %v4410_v59 = vld [vmem:[%s11980_s10 + $0x138] sm:$0xf]  ;;  %4405 = vst [vmem:[#allocation3 + $0x128] sm:$0xf] %v4404_v57 }
 0x14e   :  { %4407 = vst [vmem:[#allocation3 + $0x12c] sm:$0xff] %v4406_v58   ;;  %4411 = vst [vmem:[#allocation3 + $0x134] sm:$0xf] %v4410_v59  ;;  %v4412_v60 = vld [vmem:[%s11980_s10 + $0x134] sm:$0xf]  ;;  %v4422_v0 = vld [vmem:[%s11980_s10 + $0x14c] sm:$0xff]  }
 0x14f   :  { %v4418_v62 = vld [vmem:[%s11980_s10 + $0x148] sm:$0xf]  ;;  %4413 = vst [vmem:[#allocation3 + $0x138] sm:$0xf] %v4412_v60  ;;  %4415 = vst [vmem:[#allocation3 + $0x13c] sm:$0xff] %v4414_v61   ;;  %v4430_v3 = vld [vmem:[%s11980_s10 + $0x15c] sm:$0xff]  }
 0x150   :  { %4419 = vst [vmem:[#allocation3 + $0x144] sm:$0xf] %v4418_v62  ;;  %v4420_v63 = vld [vmem:[%s11980_s10 + $0x144] sm:$0xf]  ;;  %v4426_v1 = vld [vmem:[%s11980_s10 + $0x158] sm:$0xf] }
 0x151   :  { %4421 = vst [vmem:[#allocation3 + $0x148] sm:$0xf] %v4420_v63  ;;  %4423 = vst [vmem:[#allocation3 + $0x14c] sm:$0xff] %v4422_v0   ;;  %v4428_v2 = vld [vmem:[%s11980_s10 + $0x154] sm:$0xf]  ;;  %v4438_v6 = vld [vmem:[%s11980_s10 + $0x16c] sm:$0xff]  }
 0x152   :  { %4427 = vst [vmem:[#allocation3 + $0x154] sm:$0xf] %v4426_v1  ;;  %v4434_v4 = vld [vmem:[%s11980_s10 + $0x168] sm:$0xf]  ;;  %4429 = vst [vmem:[#allocation3 + $0x158] sm:$0xf] %v4428_v2 }
 0x153   :  { %4431 = vst [vmem:[#allocation3 + $0x15c] sm:$0xff] %v4430_v3   ;;  %4435 = vst [vmem:[#allocation3 + $0x164] sm:$0xf] %v4434_v4  ;;  %v4436_v5 = vld [vmem:[%s11980_s10 + $0x164] sm:$0xf]  ;;  %v4446_v9 = vld [vmem:[%s11980_s10 + $0x17c] sm:$0xff]  }
 0x154   :  { %v4442_v7 = vld [vmem:[%s11980_s10 + $0x178] sm:$0xf]  ;;  %4437 = vst [vmem:[#allocation3 + $0x168] sm:$0xf] %v4436_v5  ;;  %4439 = vst [vmem:[#allocation3 + $0x16c] sm:$0xff] %v4438_v6   ;;  %v4454_v12 = vld [vmem:[%s11980_s10 + $0x18c] sm:$0xff]  }
 0x155   :  { %4443 = vst [vmem:[#allocation3 + $0x174] sm:$0xf] %v4442_v7  ;;  %v4444_v8 = vld [vmem:[%s11980_s10 + $0x174] sm:$0xf]  ;;  %v4450_v10 = vld [vmem:[%s11980_s10 + $0x188] sm:$0xf] }
 0x156   :  { %4445 = vst [vmem:[#allocation3 + $0x178] sm:$0xf] %v4444_v8  ;;  %4447 = vst [vmem:[#allocation3 + $0x17c] sm:$0xff] %v4446_v9   ;;  %v4452_v11 = vld [vmem:[%s11980_s10 + $0x184] sm:$0xf]  ;;  %v4462_v15 = vld [vmem:[%s11980_s10 + $0x19c] sm:$0xff]  }
 0x157   :  { %4451 = vst [vmem:[#allocation3 + $0x184] sm:$0xf] %v4450_v10  ;;  %v4458_v13 = vld [vmem:[%s11980_s10 + $0x198] sm:$0xf]  ;;  %4453 = vst [vmem:[#allocation3 + $0x188] sm:$0xf] %v4452_v11 }
 0x158   :  { %4455 = vst [vmem:[#allocation3 + $0x18c] sm:$0xff] %v4454_v12   ;;  %4459 = vst [vmem:[#allocation3 + $0x194] sm:$0xf] %v4458_v13  ;;  %v4460_v14 = vld [vmem:[%s11980_s10 + $0x194] sm:$0xf]  ;;  %v4470_v18 = vld [vmem:[%s11980_s10 + $0x1ac] sm:$0xff]  }
 0x159   :  { %v4466_v16 = vld [vmem:[%s11980_s10 + $0x1a8] sm:$0xf]  ;;  %4461 = vst [vmem:[#allocation3 + $0x198] sm:$0xf] %v4460_v14  ;;  %4463 = vst [vmem:[#allocation3 + $0x19c] sm:$0xff] %v4462_v15   ;;  %v4478_v21 = vld [vmem:[%s11980_s10 + $0x1bc] sm:$0xff]  }
 0x15a   :  { %4467 = vst [vmem:[#allocation3 + $0x1a4] sm:$0xf] %v4466_v16  ;;  %v4468_v17 = vld [vmem:[%s11980_s10 + $0x1a4] sm:$0xf]  ;;  %v4474_v19 = vld [vmem:[%s11980_s10 + $0x1b8] sm:$0xf] }
 0x15b   :  { %4469 = vst [vmem:[#allocation3 + $0x1a8] sm:$0xf] %v4468_v17  ;;  %4471 = vst [vmem:[#allocation3 + $0x1ac] sm:$0xff] %v4470_v18   ;;  %v4476_v20 = vld [vmem:[%s11980_s10 + $0x1b4] sm:$0xf]  ;;  %v4486_v24 = vld [vmem:[%s11980_s10 + $0x1cc] sm:$0xff]  }
 0x15c   :  { %4475 = vst [vmem:[#allocation3 + $0x1b4] sm:$0xf] %v4474_v19  ;;  %v4482_v22 = vld [vmem:[%s11980_s10 + $0x1c8] sm:$0xf]  ;;  %4477 = vst [vmem:[#allocation3 + $0x1b8] sm:$0xf] %v4476_v20 }
 0x15d   :  { %4479 = vst [vmem:[#allocation3 + $0x1bc] sm:$0xff] %v4478_v21   ;;  %4483 = vst [vmem:[#allocation3 + $0x1c4] sm:$0xf] %v4482_v22  ;;  %v4484_v23 = vld [vmem:[%s11980_s10 + $0x1c4] sm:$0xf]  ;;  %v4494_v27 = vld [vmem:[%s11980_s10 + $0x1dc] sm:$0xff]  }
 0x15e   :  { %v4490_v25 = vld [vmem:[%s11980_s10 + $0x1d8] sm:$0xf]  ;;  %4485 = vst [vmem:[#allocation3 + $0x1c8] sm:$0xf] %v4484_v23  ;;  %4487 = vst [vmem:[#allocation3 + $0x1cc] sm:$0xff] %v4486_v24   ;;  %v4502_v30 = vld [vmem:[%s11980_s10 + $0x1ec] sm:$0xff]  }
 0x15f   :  { %4491 = vst [vmem:[#allocation3 + $0x1d4] sm:$0xf] %v4490_v25  ;;  %v4492_v26 = vld [vmem:[%s11980_s10 + $0x1d4] sm:$0xf]  ;;  %v4498_v28 = vld [vmem:[%s11980_s10 + $0x1e8] sm:$0xf] }
 0x160   :  { %4493 = vst [vmem:[#allocation3 + $0x1d8] sm:$0xf] %v4492_v26  ;;  %4495 = vst [vmem:[#allocation3 + $0x1dc] sm:$0xff] %v4494_v27   ;;  %v4500_v29 = vld [vmem:[%s11980_s10 + $0x1e4] sm:$0xf] }
 0x161   :  { %4499 = vst [vmem:[#allocation3 + $0x1e4] sm:$0xf] %v4498_v28  ;;  %v4506_v31 = vld [vmem:[%s11980_s10 + $0x1f8] sm:$0xf]  ;;  %4501 = vst [vmem:[#allocation3 + $0x1e8] sm:$0xf] %v4500_v29 }
 0x162   :  { %4503 = vst [vmem:[#allocation3 + $0x1ec] sm:$0xff] %v4502_v30   ;;  %4507 = vst [vmem:[#allocation3 + $0x1f4] sm:$0xf] %v4506_v31  ;;  %v4508_v32 = vld [vmem:[%s11980_s10 + $0x1f4] sm:$0xf] }
 0x163   :  { %v4510_v33 = vld [vmem:[%s11980_s10 + $0x1fc] sm:$0xf]  ;;  %4509 = vst [vmem:[#allocation3 + $0x1f8] sm:$0xf] %v4508_v32 }
 0x164   :  { %4511 = vst [vmem:[#allocation3 + $0x1fc] sm:$0xf] %v4510_v33 }
 0x165   :  { %4798 = vsyncadd [#allocation5 + $0x1], 8192  ;;  %v10779_v34 = vld [vmem:[%s11982_s12] sm:$0xff]  ;;  %v10784_v35 = vld [vmem:[%s11982_s12 + $0x8] sm:$0xff] }
 0x166   :  { %v10789_v36 = vld [vmem:[%s11982_s12 + $0x10] sm:$0xff]  ;;  %v10794_v37 = vld [vmem:[%s11982_s12 + $0x18] sm:$0xff]  ;;  %v10799_v38 = vld [vmem:[%s11982_s12 + $0x20] sm:$0xff] }
 0x167   :  { %v10804_v39 = vld [vmem:[%s11982_s12 + $0x28] sm:$0xff]  ;;  %v10809_v40 = vld [vmem:[%s11982_s12 + $0x30] sm:$0xff]  ;;  %v10814_v41 = vld [vmem:[%s11982_s12 + $0x38] sm:$0xff] }
 0x168   :  { %v10819_v42 = vld [vmem:[%s11982_s12 + $0x40] sm:$0xff]  ;;  %v10824_v43 = vld [vmem:[%s11982_s12 + $0x48] sm:$0xff]  ;;  %v10829_v44 = vld [vmem:[%s11982_s12 + $0x50] sm:$0xff] }
 0x169   :  { %v10834_v45 = vld [vmem:[%s11982_s12 + $0x58] sm:$0xff]  ;;  %v10839_v46 = vld [vmem:[%s11982_s12 + $0x60] sm:$0xff]  ;;  %v10844_v47 = vld [vmem:[%s11982_s12 + $0x68] sm:$0xff] }
 0x16a   :  { %v10849_v48 = vld [vmem:[%s11982_s12 + $0x70] sm:$0xff]  ;;  %v10854_v49 = vld [vmem:[%s11982_s12 + $0x78] sm:$0xff] }
 0x16b   :  { %4871 = vsyncadd [#allocation5 + $0x2], 2048  ;;  %v4911_v50 = vld [vmem:[%s11972_s2] sm:$0xff]  ;;  %v4912_v51 = vld [vmem:[%s11972_s2 + $0x8] sm:$0x1]  ;;  %vm5029_vm0 = vcmask 1040384  }
 0x16c   :  { %v8664_v52 = vpack.c.bf16 %v4912_v51, %v4911_v50  ;;  %v4875_v53 = vld [vmem:[%s11971_s1] sm:$0xff]  ;;  %vm4920_vm1 = vcmask 72704   ;;  %vm9045_vm2 = vmmov 1   ;;  %v4876_v54 = vld [vmem:[%s11971_s1 + $0x8] sm:$0xff]  ;;  %v4877_v55 = vld [vmem:[%s11971_s1 + $0x10] sm:$0xff]  ;;  %v9046_v26 = vmov 0.0  }
 0x16d   :  { %vm8665_vm3 = vmpackc.low %vm5029_vm0, %vm9045_vm2  ;;  %8515 = vmatprep.mubr.msk.f32.mxu0 %vm4920_vm1, %v4875_v53  ;;  %v4878_v56 = vld [vmem:[%s11971_s1 + $0x18] sm:$0xff]  ;;  %v4879_v57 = vld [vmem:[%s11971_s1 + $0x20] sm:$0xff]  ;;  %vm9047_vm4 = vmmov 0   ;;  %s4872_s0 = sld [smem:[#allocation6]]  ;;  %vm5539_vm15 = vcmask 523264   ;;  %s8203_s8 = sld [smem:[#allocation6 + $0x1]] }
 0x16e   :  { %8666 = vmatprep.subr.msk.bf16.mxu0 %vm8665_vm3, %v8664_v52  ;;  %8694 = vmatprep.subr.msk.bf16.mxu1 %vm8665_vm3, %v8664_v52  ;;  %v4880_v58 = vld [vmem:[%s11971_s1 + $0x28] sm:$0xff]  ;;  %v4881_v59 = vld [vmem:[%s11971_s1 + $0x30] sm:$0xff]  ;;  %v4907_v60 = vld [vmem:[%s11971_s1 + $0x100] sm:$0xff]  ;;  %s8204_s30 = sld [smem:[#allocation6 + $0x2]] }
 0x16f   :  { %8669 = vmatpush3.bf16.msk.msra.mxu0 %vm8665_vm3, %v8664_v52  ;;  %8695 = vmatpush3.bf16.msk.msra.mxu1 %vm8665_vm3, %v8664_v52  ;;  %v4908_v61 = vld [vmem:[%s11971_s1 + $0x108] sm:$0xff]  ;;  %v4909_v62 = vld [vmem:[%s11971_s1 + $0x110] sm:$0xff]  ;;  %v4910_v63 = vld [vmem:[%s11971_s1 + $0x118] sm:$0xff] }
 0x170   :  { %8563 = vmatprep.mubr.msk.f32.mxu1 %vm4920_vm1, %v4907_v60  ;;  %v4882_v0 = vld [vmem:[%s11971_s1 + $0x38] sm:$0xff]  ;;  %v4883_v1 = vld [vmem:[%s11971_s1 + $0x40] sm:$0xff]  ;;  %v4884_v2 = vld [vmem:[%s11971_s1 + $0x48] sm:$0xff]  ;;  %8569 = vmatprep.subr.bf16.mxu1 %v9046_v26 }
 0x171   :  { %v4885_v3 = vld [vmem:[%s11971_s1 + $0x50] sm:$0xff]  ;;  %v4886_v4 = vld [vmem:[%s11971_s1 + $0x58] sm:$0xff]  ;;  %v4887_v5 = vld [vmem:[%s11971_s1 + $0x60] sm:$0xff] }
 0x172   :  { %8516 = vmatmul.mubr.msk.f32.vlgmr.msra.gmra.mrb[0].mxu0 %vm4920_vm1, %v4876_v54  ;;  %8564 = vmatmul.mubr.msk.f32.vlgmr.msra.gmra.mrb[0].mxu1 %vm4920_vm1, %v4908_v61  ;;  %v4888_v6 = vld [vmem:[%s11971_s1 + $0x68] sm:$0xff]  ;;  %v4889_v7 = vld [vmem:[%s11971_s1 + $0x70] sm:$0xff]  ;;  %v4890_v8 = vld [vmem:[%s11971_s1 + $0x78] sm:$0xff] }
 0x173   :  { %8518 = vmatprep.mubr.msk.f32.mxu0 %vm4920_vm1, %v4877_v55  ;;  %8566 = vmatprep.mubr.msk.f32.mxu1 %vm4920_vm1, %v4909_v62  ;;  %v4891_v9 = vld [vmem:[%s11971_s1 + $0x80] sm:$0xff]  ;;  %v4892_v10 = vld [vmem:[%s11971_s1 + $0x88] sm:$0xff]  ;;  %v4893_v11 = vld [vmem:[%s11971_s1 + $0x90] sm:$0xff]  ;;  %v11045_v55 = vstv %s4872_s0 }
 0x174   :  { %v4894_v12 = vld [vmem:[%s11971_s1 + $0x98] sm:$0xff]  ;;  %v4895_v13 = vld [vmem:[%s11971_s1 + $0xa0] sm:$0xff]  ;;  %v4896_v14 = vld [vmem:[%s11971_s1 + $0xa8] sm:$0xff] }
 0x175   :  { %v4897_v15 = vld [vmem:[%s11971_s1 + $0xb0] sm:$0xff]  ;;  %v4898_v16 = vld [vmem:[%s11971_s1 + $0xb8] sm:$0xff]  ;;  %v4899_v17 = vld [vmem:[%s11971_s1 + $0xc0] sm:$0xff] }
 0x176   :  { %8519 = vmatmul.mubr.msk.f32.gmra.mrb[2].mxu0 %vm4920_vm1, %v4878_v56  ;;  %8567 = vmatmul.mubr.msk.f32.gmra.mrb[2].mxu1 %vm4920_vm1, %v4910_v63  ;;  %v4900_v18 = vld [vmem:[%s11971_s1 + $0xc8] sm:$0xff]  ;;  %v4901_v19 = vld [vmem:[%s11971_s1 + $0xd0] sm:$0xff]  ;;  %v4902_v20 = vld [vmem:[%s11971_s1 + $0xd8] sm:$0xff] }
 0x177   :  { %8521 = vmatprep.mubr.msk.f32.mxu0 %vm4920_vm1, %v4879_v57  ;;  %v4903_v21 = vld [vmem:[%s11971_s1 + $0xe0] sm:$0xff]  ;;  %v4904_v22 = vld [vmem:[%s11971_s1 + $0xe8] sm:$0xff]  ;;  %v4905_v23 = vld [vmem:[%s11971_s1 + $0xf0] sm:$0xff]  ;;  %8577 = vmatprep.mubr.msk.bf16.mxu1 %vm9047_vm4, %v9046_v26 }
 0x178   :  { %v4906_v24 = vld [vmem:[%s11971_s1 + $0xf8] sm:$0xff]  ;;  %v8776_v25 = vld [vmem:[%s11974_s4] sm:$0xff]   ;;  %v8777_v27 = vld [vmem:[%s11974_s4 + $0x8] sm:$0xff]  }
 0x179   :  { %8570 = vmatpush3.bf16.msra.mxu1 %v8776_v25  ;;  %v8778_v28 = vld [vmem:[%s11974_s4 + $0x10] sm:$0xff]   ;;  %v8779_v29 = vld [vmem:[%s11974_s4 + $0x18] sm:$0xff]   ;;  %v8780_v30 = vld [vmem:[%s11976_s6] ss:$8 sps:$4 sm:$0xff]  }
 0x17a   :  { %8522 = vmatmul.mubr.msk.f32.gmra.mrb[4].mxu0 %vm4920_vm1, %v4880_v58  ;;  %8571 = vmatprep.subr.bf16.mxu1 %v9046_v26  ;;  %v8782_v31 = vld [vmem:[%s11976_s6 + $0x4] ss:$8 sps:$4 sm:$0xff]   ;;  %v8785_v32 = vld [vmem:[%s11976_s6 + $0x14] ss:$8 sps:$4 sm:$0xff]   ;;  %v11036_v33 = vld [vmem:[%s11973_s3] ss:$0 sm:$0xff] }
 0x17b   :  { %8524 = vmatprep.mubr.msk.f32.mxu0 %vm4920_vm1, %v4881_v59  ;;  %6820 = vmatprep.subr.bf16.mxu0 %v8782_v31  ;;  %v8783_v51 = vld [vmem:[%s11976_s6 + $0x10] ss:$8 sps:$4 sm:$0xff]   ;;  %v8788_v53 = vld [vmem:[%s11976_s6 + $0x24] ss:$8 sps:$4 sm:$0xff]   ;;  %v8786_v58 = vld [vmem:[%s11976_s6 + $0x20] ss:$8 sps:$4 sm:$0xff]  }
 0x17c   :  { %6821 = vmatpush1.bf16.msra.mxu0 %v8780_v30  ;;  %v8791_v60 = vld [vmem:[%s11976_s6 + $0x34] ss:$8 sps:$4 sm:$0xff]  }
 0x17d   :  { %8572 = vmatpush3.bf16.msra.mxu1 %v8777_v27  ;;  %6822 = vmatprep.subr.bf16.mxu0 %v8785_v32 }
 0x17e   :  { %8525 = vmatmul.mubr.msk.f32.gmra.mrb[6].mxu0 %vm4920_vm1, %v4882_v0  ;;  %8573 = vmatprep.subr.bf16.mxu1 %v9046_v26 }
 0x17f   :  { %8527 = vmatprep.mubr.msk.f32.mxu0 %vm4920_vm1, %v4883_v1 }
 0x180   :  { %6823 = vmatpush1.bf16.msra.mxu0 %v8783_v51 }
 0x181   :  { %8574 = vmatpush3.bf16.msra.mxu1 %v8778_v28  ;;  %6824 = vmatprep.subr.bf16.mxu0 %v8788_v53 }
 0x182   :  { %8528 = vmatmul.mubr.msk.f32.gmra.mrb[8].mxu0 %vm4920_vm1, %v4884_v2  ;;  %8575 = vmatprep.subr.bf16.mxu1 %v9046_v26 }
 0x183   :  { %8530 = vmatprep.mubr.msk.f32.mxu0 %vm4920_vm1, %v4885_v3 }
 0x184   :  { %6825 = vmatpush1.bf16.msra.mxu0 %v8786_v58 }
 0x185   :  { %8576 = vmatpush3.bf16.msra.mxu1 %v8779_v29  ;;  %6826 = vmatprep.subr.bf16.mxu0 %v8791_v60 }
 0x186   :  { %8531 = vmatmul.mubr.msk.f32.gmra.mrb[10].mxu0 %vm4920_vm1, %v4886_v4 }
 0x187   :  { %8533 = vmatprep.mubr.msk.f32.mxu0 %vm4920_vm1, %v4887_v5  ;;  %v8789_v5 = vld [vmem:[%s11976_s6 + $0x30] ss:$8 sps:$4 sm:$0xff]  }
 0x188   :  { %6827 = vmatpush1.bf16.msra.mxu0 %v8789_v5 }
 0x18a   :  { %8534 = vmatmul.mubr.msk.f32.gmra.mrb[12].mxu0 %vm4920_vm1, %v4888_v6 }
 0x18b   :  { %8536 = vmatprep.mubr.msk.f32.mxu0 %vm4920_vm1, %v4889_v7 }
 0x18e   :  { %8537 = vmatmul.mubr.msk.f32.gmra.mrb[14].mxu0 %vm4920_vm1, %v4890_v8  ;;  %v8794_v8 = vld [vmem:[%s11976_s6 + $0x44] ss:$8 sps:$4 sm:$0xff]  }
 0x18f   :  { %8539 = vmatprep.mubr.msk.f32.mxu0 %vm4920_vm1, %v4891_v9  ;;  %6828 = vmatprep.subr.bf16.mxu0 %v8794_v8 }
 0x192   :  { %8540 = vmatmul.mubr.msk.f32.gmra.mrb[16].mxu0 %vm4920_vm1, %v4892_v10 }
 0x193   :  { %8542 = vmatprep.mubr.msk.f32.mxu0 %vm4920_vm1, %v4893_v11 }
 0x196   :  { %8543 = vmatmul.mubr.msk.f32.gmra.mrb[18].mxu0 %vm4920_vm1, %v4894_v12 }
 0x197   :  { %8545 = vmatprep.mubr.msk.f32.mxu0 %vm4920_vm1, %v4895_v13 }
 0x19a   :  { %8546 = vmatmul.mubr.msk.f32.gmra.mrb[20].mxu0 %vm4920_vm1, %v4896_v14 }
 0x19b   :  { %8548 = vmatprep.mubr.msk.f32.mxu0 %vm4920_vm1, %v4897_v15 }
 0x19e   :  { %8549 = vmatmul.mubr.msk.f32.gmra.mrb[22].mxu0 %vm4920_vm1, %v4898_v16 }
 0x19f   :  { %8551 = vmatprep.mubr.msk.f32.mxu0 %vm4920_vm1, %v4899_v17 }
 0x1a2   :  { %8552 = vmatmul.mubr.msk.f32.gmra.mrb[24].mxu0 %vm4920_vm1, %v4900_v18 }
 0x1a3   :  { %8554 = vmatprep.mubr.msk.f32.mxu0 %vm4920_vm1, %v4901_v19  ;;  %v8792_v19 = vld [vmem:[%s11976_s6 + $0x40] ss:$8 sps:$4 sm:$0xff]  }
 0x1a4   :  { %6829 = vmatpush1.bf16.msra.mxu0 %v8792_v19 }
 0x1a6   :  { %8555 = vmatmul.mubr.msk.f32.gmra.mrb[26].mxu0 %vm4920_vm1, %v4902_v20 }
 0x1a7   :  { %8557 = vmatprep.mubr.msk.f32.mxu0 %vm4920_vm1, %v4903_v21 }
 0x1aa   :  { %8558 = vmatmul.mubr.msk.f32.gmra.mrb[28].mxu0 %vm4920_vm1, %v4904_v22 }
 0x1ab   :  { %8560 = vmatprep.mubr.msk.f32.mxu0 %vm4920_vm1, %v4905_v23 }
 0x1ae   :  { %8561 = vmatmul.mubr.msk.f32.gmra.mrb[30].mxu0 %vm4920_vm1, %v4906_v24 }
 0x245   :  { %v8517_v50 = vpop.f32.mrb[0].mxu0  ;;  %v8565_v0 = vpop.f32.mrb[0].mxu1 }
 0x246   :  { %v5099_v52 = vpop.f32.mrb[1].mxu0  ;;  %v5105_v54 = vadd.f32 %v8517_v50, %v11036_v33  ;;  %v5265_v3 = vadd.f32 %v8565_v0, %v11036_v33  ;;  %v5259_v4 = vpop.f32.mrb[1].mxu1 }
 0x247   :  { %v5100_v56 = vadd.f32 %v11036_v33, %v5099_v52  ;;  %v5260_v7 = vadd.f32 %v11036_v33, %v5259_v4 }
 0x248   :  { %v5316_v61 = vmul.f32 %v11045_v55, %v5105_v54  ;;  %vm5279_vm5 = vcmp.gt.f32.partialorder %v5105_v54, 0.0  ;;  %vm5311_vm7 = vcmp.gt.f32.partialorder %v5265_v3, 0.0  ;;  %v5348_v10 = vmul.f32 %v11045_v55, %v5265_v3 }
 0x249   :  { %v8520_v57 = vpop.f32.mrb[2].mxu0  ;;  %v5315_v62 = vmul.f32 %v11045_v55, %v5100_v56  ;;  %vm5278_vm6 = vcmp.gt.f32.partialorder %v5100_v56, 0.0  ;;  %vm5310_vm9 = vcmp.gt.f32.partialorder %v5260_v7, 0.0  ;;  %v5347_v12 = vmul.f32 %v11045_v55, %v5260_v7  ;;  %v8568_v13 = vpop.f32.mrb[2].mxu1 }
 0x24a   :  { %v5109_v59 = vpop.f32.mrb[3].mxu0  ;;  %v5115_v63 = vadd.f32 %v8520_v57, %v11036_v33  ;;  %v5352_v9 = vsel %vm5279_vm5, %v5105_v54, %v5316_v61  ;;  %v11069_v16 = vsel %vm5311_vm7, %v5265_v3, %v5348_v10  ;;  %v5275_v17 = vadd.f32 %v8568_v13, %v11036_v33  ;;  %v5269_v18 = vpop.f32.mrb[3].mxu1 }
 0x24b   :  { %v5110_v1 = vadd.f32 %v11036_v33, %v5109_v59  ;;  %v5351_v11 = vsel %vm5278_vm6, %v5100_v56, %v5315_v62  ;;  %v11077_v23 = vsel %vm5310_vm9, %v5260_v7, %v5347_v12  ;;  %v5270_v24 = vadd.f32 %v11036_v33, %v5269_v18 }
 0x24c   :  { %vm5281_vm8 = vcmp.gt.f32.partialorder %v5115_v63, 0.0  ;;  %v5318_v14 = vmul.f32 %v11045_v55, %v5115_v63  ;;  %vm5313_vm11 = vcmp.gt.f32.partialorder %v5275_v17, 0.0  ;;  %v5350_v28 = vmul.f32 %v11045_v55, %v5275_v17 }
 0x24d   :  { %v8523_v2 = vpop.f32.mrb[4].mxu0  ;;  %vm5280_vm10 = vcmp.gt.f32.partialorder %v5110_v1, 0.0  ;;  %v5317_v20 = vmul.f32 %v11045_v55, %v5110_v1  ;;  %vm5312_vm13 = vcmp.gt.f32.partialorder %v5270_v24, 0.0  ;;  %v5349_v30 = vmul.f32 %v11045_v55, %v5270_v24 }
 0x24e   :  { %v5119_v6 = vpop.f32.mrb[5].mxu0  ;;  %v5354_v31 = vsel %vm5281_vm8, %v5115_v63, %v5318_v14  ;;  %v11087_v51 = vsel %vm5313_vm11, %v5275_v17, %v5350_v28  ;;  %v5125_v52 = vadd.f32 %v8523_v2, %v11036_v33 }
 0x24f   :  { %v5120_v25 = vadd.f32 %v11036_v33, %v5119_v6  ;;  %v11093_v57 = vsel %vm5312_vm13, %v5270_v24, %v5349_v30  ;;  %v5353_v58 = vsel %vm5280_vm10, %v5110_v1, %v5317_v20 }
 0x250   :  { %vm5283_vm3 = vcmp.gt.f32.partialorder %v5125_v52, 0.0  ;;  %v5320_v8 = vmul.f32 %v11045_v55, %v5125_v52 }
 0x251   :  { %v8526_v15 = vpop.f32.mrb[6].mxu0  ;;  %v5319_v62 = vmul.f32 %v11045_v55, %v5120_v25  ;;  %vm5282_vm1 = vcmp.gt.f32.partialorder %v5120_v25, 0.0 }
 0x252   :  { %v5135_v21 = vadd.f32 %v8526_v15, %v11036_v33  ;;  %v5129_v22 = vpop.f32.mrb[7].mxu0 }
 0x253   :  { %v5130_v27 = vadd.f32 %v11036_v33, %v5129_v22  ;;  %v5355_v13 = vsel %vm5282_vm1, %v5120_v25, %v5319_v62 }
 0x254   :  { %vm5285_vm12 = vcmp.gt.f32.partialorder %v5135_v21, 0.0  ;;  %v5322_v29 = vmul.f32 %v11045_v55, %v5135_v21 }
 0x255   :  { %vm5284_vm14 = vcmp.gt.f32.partialorder %v5130_v27, 0.0  ;;  %v5321_v32 = vmul.f32 %v11045_v55, %v5130_v27  ;;  %v8529_v50 = vpop.f32.mrb[8].mxu0 }
 0x256   :  { %v11090_v53 = vsel %vm5285_vm12, %v5135_v21, %v5322_v29  ;;  %v5145_v54 = vadd.f32 %v8529_v50, %v11036_v33  ;;  %v5139_v56 = vpop.f32.mrb[9].mxu0  ;;  %v5356_v29 = vsel %vm5283_vm3, %v5125_v52, %v5320_v8 }
 0x257   :  { %v5388_v59 = vadd.f32 %v11090_v53, %v5352_v9  ;;  %v5357_v60 = vsel %vm5284_vm14, %v5130_v27, %v5321_v32  ;;  %v5140_v61 = vadd.f32 %v11036_v33, %v5139_v56 }
 0x258   :  { %v5387_v63 = vadd.f32 %v5357_v60, %v5351_v11  ;;  %vm5287_vm0 = vcmp.gt.f32.partialorder %v5145_v54, 0.0  ;;  %v5324_v0 = vmul.f32 %v11045_v55, %v5145_v54 }
 0x259   :  { %vm5286_vm2 = vcmp.gt.f32.partialorder %v5140_v61, 0.0  ;;  %v5323_v2 = vmul.f32 %v11045_v55, %v5140_v61  ;;  %v5413_v3 = vadd.f32 %v5388_v59, %v5353_v58  ;;  %v8532_v4 = vpop.f32.mrb[10].mxu0 }
 0x25a   :  { %v5412_v1 = vadd.f32 %v5387_v63, %v5352_v9  ;;  %v11101_v5 = vsel %vm5287_vm0, %v5145_v54, %v5324_v0  ;;  %v5155_v6 = vadd.f32 %v8532_v4, %v11036_v33  ;;  %v5149_v7 = vpop.f32.mrb[11].mxu0 }
 0x25b   :  { %v5390_v10 = vadd.f32 %v11101_v5, %v5354_v31  ;;  %v5359_v11 = vsel %vm5286_vm2, %v5140_v61, %v5323_v2  ;;  %v5150_v12 = vadd.f32 %v11036_v33, %v5149_v7 }
 0x25c   :  { %v5437_v14 = vadd.f32 %v5412_v1, %v11090_v53  ;;  %v5389_v15 = vadd.f32 %v5359_v11, %v5353_v58  ;;  %v5438_v17 = vadd.f32 %v5413_v3, %v5359_v11  ;;  %v5326_v18 = vmul.f32 %v11045_v55, %v5155_v6 }
 0x25d   :  { %vm5288_vm5 = vcmp.gt.f32.partialorder %v5150_v12, 0.0  ;;  %v5325_v9 = vmul.f32 %v11045_v55, %v5150_v12  ;;  %v5415_v19 = vadd.f32 %v5390_v10, %v5355_v13  ;;  %v8535_v20 = vpop.f32.mrb[12].mxu0  ;;  %vm5289_vm6 = vcmp.gt.f32.partialorder %v5155_v6, 0.0 }
 0x25e   :  { %v5462_v21 = vmul.f32 0.25, %v5437_v14  ;;  %v5414_v22 = vadd.f32 %v5389_v15, %v5354_v31  ;;  %v5463_v24 = vmul.f32 0.25, %v5438_v17  ;;  %v5165_v27 = vadd.f32 %v8535_v20, %v11036_v33  ;;  %v5159_v28 = vpop.f32.mrb[13].mxu0 }
 0x25f   :  { %v5361_v25 = vsel %vm5288_vm5, %v5150_v12, %v5325_v9  ;;  %v5160_v30 = vadd.f32 %v11036_v33, %v5159_v28  ;;  %v5362_v61 = vsel %vm5289_vm6, %v5155_v6, %v5326_v18 }
 0x260   :  { %v5487_v32 = vpack.c.bf16 %v5463_v24, %v5462_v21  ;;  %v5391_v50 = vadd.f32 %v5361_v25, %v5355_v13  ;;  %v5440_v54 = vadd.f32 %v5415_v19, %v5361_v25  ;;  %vm5291_vm7 = vcmp.gt.f32.partialorder %v5165_v27, 0.0 }
 0x261   :  { %v5328_v56 = vmul.f32 %v11045_v55, %v5165_v27  ;;  %vm5290_vm8 = vcmp.gt.f32.partialorder %v5160_v30, 0.0  ;;  %v5327_v58 = vmul.f32 %v11045_v55, %v5160_v30  ;;  %v8538_v31 = vpop.f32.mrb[14].mxu0  ;;  %v5439_v59 = vadd.f32 %v5414_v22, %v11101_v5 }
 0x262   :  { %v5416_v62 = vadd.f32 %v5391_v50, %v5356_v29  ;;  %v5175_v52 = vadd.f32 %v8538_v31, %v11036_v33  ;;  %v5169_v63 = vpop.f32.mrb[15].mxu0  ;;  %8578 = vmatmul.mubr.msk.bf16.vlgmr.msra.gmra.mrb[4].mxu1 %vm5539_vm15, %v5487_v32  ;;  %v5465_v0 = vmul.f32 0.25, %v5440_v54 }
 0x263   :  { %v11118_v2 = vsel %vm5291_vm7, %v5165_v27, %v5328_v56  ;;  %v5363_v3 = vsel %vm5290_vm8, %v5160_v30, %v5327_v58  ;;  %v5170_v4 = vadd.f32 %v11036_v33, %v5169_v63  ;;  %8581 = vmatprep.mubr.msk.bf16.mxu1 %vm9047_vm4, %v9046_v26  ;;  %v5464_v1 = vmul.f32 0.25, %v5439_v59 }
 0x264   :  { %v5393_v7 = vadd.f32 %v11118_v2, %v11090_v53  ;;  %v5392_v6 = vadd.f32 %v5363_v3, %v5357_v60  ;;  %vm5293_vm9 = vcmp.gt.f32.partialorder %v5175_v52, 0.0  ;;  %v5330_v8 = vmul.f32 %v11045_v55, %v5175_v52 }
 0x265   :  { %vm5292_vm10 = vcmp.gt.f32.partialorder %v5170_v4, 0.0  ;;  %v5329_v10 = vmul.f32 %v11045_v55, %v5170_v4  ;;  %v8541_v12 = vpop.f32.mrb[16].mxu0  ;;  %v5488_v13 = vpack.c.bf16 %v5465_v0, %v5464_v1  ;;  %v5441_v14 = vadd.f32 %v5416_v62, %v5362_v61 }
 0x266   :  { %v5417_v15 = vadd.f32 %v5392_v6, %v11090_v53  ;;  %v11128_v17 = vsel %vm5293_vm9, %v5175_v52, %v5330_v8  ;;  %v5418_v18 = vadd.f32 %v5393_v7, %v5359_v11  ;;  %v5185_v9 = vadd.f32 %v8541_v12, %v11036_v33  ;;  %v5179_v19 = vpop.f32.mrb[17].mxu0 }
 0x267   :  { %v5395_v60 = vadd.f32 %v11128_v17, %v11101_v5  ;;  %v5365_v20 = vsel %vm5292_vm10, %v5170_v4, %v5329_v10  ;;  %v5180_v21 = vadd.f32 %v11036_v33, %v5179_v19  ;;  %v5466_v56 = vmul.f32 0.25, %v5441_v14 }
 0x268   :  { %v5394_v22 = vadd.f32 %v5365_v20, %v5359_v11  ;;  %v5443_v24 = vadd.f32 %v5418_v18, %v5365_v20  ;;  %vm5295_vm11 = vcmp.gt.f32.partialorder %v5185_v9, 0.0  ;;  %v5332_v27 = vmul.f32 %v11045_v55, %v5185_v9 }
 0x269   :  { %vm5294_vm12 = vcmp.gt.f32.partialorder %v5180_v21, 0.0  ;;  %v5331_v53 = vmul.f32 %v11045_v55, %v5180_v21  ;;  %v5420_v28 = vadd.f32 %v5395_v60, %v5361_v25  ;;  %v8544_v29 = vpop.f32.mrb[18].mxu0  ;;  %v5442_v30 = vadd.f32 %v5417_v15, %v11118_v2 }
 0x26a   :  { %v5419_v32 = vadd.f32 %v5394_v22, %v11101_v5  ;;  %v5195_v50 = vadd.f32 %v8544_v29, %v11036_v33  ;;  %v5189_v54 = vpop.f32.mrb[19].mxu0  ;;  %8582 = vmatmul.mubr.msk.bf16.gmra.mrb[8].mxu1 %vm5539_vm15, %v5488_v13  ;;  %v11140_v11 = vsel %vm5295_vm11, %v5185_v9, %v5332_v27  ;;  %v5468_v12 = vmul.f32 0.25, %v5443_v24 }
 0x26b   :  { %v5367_v58 = vsel %vm5294_vm12, %v5180_v21, %v5331_v53  ;;  %v5190_v31 = vadd.f32 %v11036_v33, %v5189_v54  ;;  %8585 = vmatprep.mubr.msk.bf16.mxu1 %vm9047_vm4, %v9046_v26  ;;  %v5467_v59 = vmul.f32 0.25, %v5442_v30 }
 0x26c   :  { %v5396_v62 = vadd.f32 %v5367_v58, %v5361_v25  ;;  %v5445_v52 = vadd.f32 %v5420_v28, %v5367_v58  ;;  %vm5297_vm13 = vcmp.gt.f32.partialorder %v5195_v50, 0.0  ;;  %v5334_v5 = vmul.f32 %v11045_v55, %v5195_v50 }
 0x26d   :  { %vm5296_vm14 = vcmp.gt.f32.partialorder %v5190_v31, 0.0  ;;  %v5333_v63 = vmul.f32 %v11045_v55, %v5190_v31  ;;  %v8547_v0 = vpop.f32.mrb[20].mxu0  ;;  %v5489_v4 = vpack.c.bf16 %v5467_v59, %v5466_v56  ;;  %v5444_v1 = vadd.f32 %v5419_v32, %v11128_v17 }
 0x26e   :  { %v5421_v7 = vadd.f32 %v5396_v62, %v5362_v61  ;;  %v11148_v6 = vsel %vm5297_vm13, %v5195_v50, %v5334_v5  ;;  %v5205_v8 = vadd.f32 %v8547_v0, %v11036_v33  ;;  %v5199_v10 = vpop.f32.mrb[21].mxu0  ;;  %v11169_v50 = vmul.f32 0.25, %v5445_v52 }
 0x26f   :  { %v5398_v25 = vadd.f32 %v11148_v6, %v11118_v2  ;;  %v5369_v13 = vsel %vm5296_vm14, %v5190_v31, %v5333_v63  ;;  %v5200_v14 = vadd.f32 %v11036_v33, %v5199_v10  ;;  %v5469_v15 = vmul.f32 0.25, %v5444_v1 }
 0x270   :  { %v5397_v18 = vadd.f32 %v5369_v13, %v5363_v3  ;;  %vm5299_vm0 = vcmp.gt.f32.partialorder %v5205_v8, 0.0  ;;  %v5336_v9 = vmul.f32 %v11045_v55, %v5205_v8  ;;  %v5446_v19 = vadd.f32 %v5421_v7, %v11140_v11 }
 0x271   :  { %vm5298_vm1 = vcmp.gt.f32.partialorder %v5200_v14, 0.0  ;;  %v5335_v61 = vmul.f32 %v11045_v55, %v5200_v14  ;;  %v5423_v60 = vadd.f32 %v5398_v25, %v5365_v20  ;;  %v8550_v21 = vpop.f32.mrb[22].mxu0  ;;  %v5490_v22 = vpack.c.bf16 %v5469_v15, %v5468_v12 }
 0x272   :  { %v5422_v24 = vadd.f32 %v5397_v18, %v11118_v2  ;;  %v11158_v27 = vsel %vm5299_vm0, %v5205_v8, %v5336_v9  ;;  %v5215_v53 = vadd.f32 %v8550_v21, %v11036_v33  ;;  %v5209_v28 = vpop.f32.mrb[23].mxu0  ;;  %8586 = vmatmul.mubr.msk.bf16.gmra.mrb[12].mxu1 %vm5539_vm15, %v5489_v4  ;;  %v11162_v3 = vmul.f32 0.25, %v5446_v19 }
 0x273   :  { %v5400_v29 = vadd.f32 %v11158_v27, %v11128_v17  ;;  %v5371_v30 = vsel %vm5298_vm1, %v5200_v14, %v5335_v61  ;;  %v5210_v32 = vadd.f32 %v11036_v33, %v5209_v28  ;;  %8589 = vmatprep.mubr.msk.bf16.mxu1 %vm9047_vm4, %v9046_v26 }
 0x274   :  { %v5399_v2 = vadd.f32 %v5371_v30, %v5365_v20  ;;  %v5448_v54 = vadd.f32 %v5423_v60, %v5371_v30  ;;  %vm5301_vm2 = vcmp.gt.f32.partialorder %v5215_v53, 0.0  ;;  %v5338_v56 = vmul.f32 %v11045_v55, %v5215_v53 }
 0x275   :  { %vm5300_vm3 = vcmp.gt.f32.partialorder %v5210_v32, 0.0  ;;  %v5337_v31 = vmul.f32 %v11045_v55, %v5210_v32  ;;  %v5425_v59 = vadd.f32 %v5400_v29, %v5367_v58  ;;  %v8553_v62 = vpop.f32.mrb[24].mxu0  ;;  %v5491_v5 = vpack.c.bf16 %v11162_v3, %v11169_v50 }
 0x276   :  { %v5424_v63 = vadd.f32 %v5399_v2, %v11128_v17  ;;  %v5225_v0 = vadd.f32 %v8553_v62, %v11036_v33  ;;  %v5219_v4 = vpop.f32.mrb[25].mxu0  ;;  %v5447_v52 = vadd.f32 %v5422_v24, %v11148_v6  ;;  %v11178_v20 = vsel %vm5301_vm2, %v5215_v53, %v5338_v56 }
 0x277   :  { %v5373_v1 = vsel %vm5300_vm3, %v5210_v32, %v5337_v31  ;;  %v5220_v7 = vadd.f32 %v11036_v33, %v5219_v4  ;;  %v11181_v8 = vmul.f32 0.25, %v5448_v54 }
 0x278   :  { %v5401_v10 = vadd.f32 %v5373_v1, %v5367_v58  ;;  %v5450_v12 = vadd.f32 %v5425_v59, %v5373_v1  ;;  %vm5303_vm5 = vcmp.gt.f32.partialorder %v5225_v0, 0.0  ;;  %v5340_v25 = vmul.f32 %v11045_v55, %v5225_v0 }
 0x279   :  { %vm5302_vm6 = vcmp.gt.f32.partialorder %v5220_v7, 0.0  ;;  %v5339_v17 = vmul.f32 %v11045_v55, %v5220_v7  ;;  %v11185_v14 = vmul.f32 0.25, %v5447_v52  ;;  %v8556_v15 = vpop.f32.mrb[26].mxu0  ;;  %v5449_v18 = vadd.f32 %v5424_v63, %v11158_v27 }
 0x27a   :  { %v5426_v9 = vadd.f32 %v5401_v10, %v11140_v11  ;;  %v11189_v19 = vsel %vm5303_vm5, %v5225_v0, %v5340_v25  ;;  %8590 = vmatmul.mubr.msk.bf16.gmra.mrb[16].mxu1 %vm5539_vm15, %v5490_v22  ;;  %v5235_v58 = vadd.f32 %v8556_v15, %v11036_v33  ;;  %v5229_v61 = vpop.f32.mrb[27].mxu0  ;;  %v11193_v60 = vmul.f32 0.25, %v5450_v12 }
 0x27b   :  { %v5403_v21 = vadd.f32 %v11189_v19, %v11148_v6  ;;  %v5375_v24 = vsel %vm5302_vm6, %v5220_v7, %v5339_v17  ;;  %8593 = vmatprep.mubr.msk.bf16.mxu1 %vm9047_vm4, %v9046_v26  ;;  %v5492_v53 = vpack.c.bf16 %v11181_v8, %v11185_v14  ;;  %v5230_v11 = vadd.f32 %v11036_v33, %v5229_v61 }
 0x27c   :  { %v5402_v28 = vadd.f32 %v5375_v24, %v5369_v13  ;;  %vm5305_vm7 = vcmp.gt.f32.partialorder %v5235_v58, 0.0  ;;  %v5342_v22 = vmul.f32 %v11045_v55, %v5235_v58  ;;  %v11203_v3 = vmul.f32 0.25, %v5449_v18 }
 0x27d   :  { %vm5304_vm8 = vcmp.gt.f32.partialorder %v5230_v11, 0.0  ;;  %v5341_v29 = vmul.f32 %v11045_v55, %v5230_v11  ;;  %v5428_v32 = vadd.f32 %v5403_v21, %v5371_v30  ;;  %v8559_v50 = vpop.f32.mrb[28].mxu0  ;;  %v5451_v2 = vadd.f32 %v5426_v9, %v11178_v20 }
 0x27e   :  { %v5427_v54 = vadd.f32 %v5402_v28, %v11148_v6  ;;  %v5378_v56 = vsel %vm5305_vm7, %v5235_v58, %v5342_v22  ;;  %v5493_v31 = vpack.c.bf16 %v11193_v60, %v11203_v3  ;;  %v5245_v13 = vadd.f32 %v8559_v50, %v11036_v33  ;;  %v5239_v59 = vpop.f32.mrb[29].mxu0  ;;  %v8800_v60 = vld [vmem:[%s11976_s6 + $0x64] ss:$8 sps:$4 sm:$0xff]  }
 0x27f   :  { %v5405_v62 = vadd.f32 %v5378_v56, %v11158_v27  ;;  %v5377_v63 = vsel %vm5304_vm8, %v5230_v11, %v5341_v29  ;;  %v5240_v0 = vadd.f32 %v11036_v33, %v5239_v59  ;;  %v11213_v4 = vmul.f32 0.25, %v5451_v2 }
 0x280   :  { %v5404_v52 = vadd.f32 %v5377_v63, %v5371_v30  ;;  %v5453_v7 = vadd.f32 %v5428_v32, %v5377_v63  ;;  %vm5307_vm9 = vcmp.gt.f32.partialorder %v5245_v13, 0.0  ;;  %v5344_v10 = vmul.f32 %v11045_v55, %v5245_v13 }
 0x281   :  { %vm5306_vm10 = vcmp.gt.f32.partialorder %v5240_v0, 0.0  ;;  %v5343_v6 = vmul.f32 %v11045_v55, %v5240_v0  ;;  %v5430_v12 = vadd.f32 %v5405_v62, %v5373_v1  ;;  %v5452_v25 = vadd.f32 %v5427_v54, %v11189_v19  ;;  %v8562_v17 = vpop.f32.mrb[30].mxu0 }
 0x282   :  { %8594 = vmatmul.mubr.msk.bf16.gmra.mrb[20].mxu1 %vm5539_vm15, %v5491_v5  ;;  %v5429_v15 = vadd.f32 %v5404_v52, %v11158_v27  ;;  %v5380_v18 = vsel %vm5307_vm9, %v5245_v13, %v5344_v10  ;;  %v5255_v9 = vadd.f32 %v8562_v17, %v11036_v33  ;;  %v5249_v58 = vpop.f32.mrb[31].mxu0  ;;  %v5478_v30 = vmul.f32 0.25, %v5453_v7 }
 0x283   :  { %8597 = vmatprep.mubr.msk.bf16.mxu1 %vm9047_vm4, %v9046_v26  ;;  %v5379_v61 = vsel %vm5306_vm10, %v5240_v0, %v5343_v6  ;;  %v5477_v21 = vmul.f32 0.25, %v5452_v25  ;;  %v5250_v11 = vadd.f32 %v11036_v33, %v5249_v58  ;;  %v5410_v28 = vadd.f32 %v11069_v16, %v5378_v56 }
 0x284   :  { %v5406_v22 = vadd.f32 %v5379_v61, %v5373_v1  ;;  %v5455_v29 = vadd.f32 %v5430_v12, %v5379_v61  ;;  %vm5309_vm11 = vcmp.gt.f32.partialorder %v5255_v9, 0.0  ;;  %v5346_v5 = vmul.f32 %v11045_v55, %v5255_v9 }
 0x285   :  { %v5494_v27 = vpack.c.bf16 %v5477_v21, %v11213_v4  ;;  %vm5308_vm12 = vcmp.gt.f32.partialorder %v5250_v11, 0.0  ;;  %v5345_v32 = vmul.f32 %v11045_v55, %v5250_v11  ;;  %v5454_v50 = vadd.f32 %v5429_v15, %v5378_v56  ;;  %v8806_v21 = vld [vmem:[%s11976_s6 + $0x84] ss:$8 sps:$4 sm:$0xff]  }
 0x286   :  { %v5431_v2 = vadd.f32 %v5406_v22, %v11178_v20  ;;  %v5382_v54 = vsel %vm5309_vm11, %v5255_v9, %v5346_v5  ;;  %v5409_v13 = vadd.f32 %v11077_v23, %v5377_v63  ;;  %v5480_v59 = vmul.f32 0.25, %v5455_v29  ;;  %v8812_v22 = vld [vmem:[%s11976_s6 + $0xa4] ss:$8 sps:$4 sm:$0xff]   ;;  %v8810_v29 = vld [vmem:[%s11976_s6 + $0xa0] ss:$8 sps:$4 sm:$0xff]  }
 0x287   :  { %v5408_v33 = vadd.f32 %v5382_v54, %v11189_v19  ;;  %v5381_v62 = vsel %vm5308_vm12, %v5250_v11, %v5345_v32  ;;  %v5479_v1 = vmul.f32 0.25, %v5454_v50  ;;  %v5411_v0 = vadd.f32 %v11093_v57, %v5379_v61  ;;  %v8809_v11 = vld [vmem:[%s11976_s6 + $0x94] ss:$8 sps:$4 sm:$0xff]   ;;  %v8818_v32 = vld [vmem:[%s11976_s6 + $0xc4] ss:$8 sps:$4 sm:$0xff]  }
 0x288   :  { %v5407_v52 = vadd.f32 %v5381_v62, %v5375_v24  ;;  %v5434_v7 = vadd.f32 %v5409_v13, %v5378_v56  ;;  %v5456_v10 = vadd.f32 %v5431_v2, %v5380_v18  ;;  %v5435_v4 = vadd.f32 %v5410_v28, %v5379_v61  ;;  %v8804_v61 = vld [vmem:[%s11976_s6 + $0x80] ss:$8 sps:$4 sm:$0xff]   ;;  %v8807_v28 = vld [vmem:[%s11976_s6 + $0x90] ss:$8 sps:$4 sm:$0xff]   ;;  %v8815_v5 = vld [vmem:[%s11976_s6 + $0xb4] ss:$8 sps:$4 sm:$0xff]  }
 0x289   :  { %v5495_v6 = vpack.c.bf16 %v5479_v1, %v5478_v30  ;;  %v5433_v12 = vadd.f32 %v5408_v33, %v5377_v63  ;;  %v5436_v55 = vadd.f32 %v5411_v0, %v5380_v18  ;;  %v8801_v30 = vld [vmem:[%s11976_s6 + $0x70] ss:$8 sps:$4 sm:$0xff]   ;;  %v8816_v50 = vld [vmem:[%s11976_s6 + $0xc0] ss:$8 sps:$4 sm:$0xff]   ;;  %v8821_v2 = vld [vmem:[%s11976_s6 + $0xd4] ss:$8 sps:$4 sm:$0xff]  }
 0x28a   :  { %8598 = vmatmul.mubr.msk.bf16.gmra.mrb[24].mxu1 %vm5539_vm15, %v5492_v53  ;;  %v5432_v20 = vadd.f32 %v5407_v52, %v11189_v19  ;;  %v5481_v25 = vmul.f32 0.25, %v5456_v10  ;;  %v5460_v17 = vadd.f32 %v5435_v4, %v11093_v57  ;;  %v5459_v15 = vadd.f32 %v5434_v7, %v11069_v16  ;;  %v8797_v16 = vld [vmem:[%s11976_s6 + $0x54] ss:$8 sps:$4 sm:$0xff]   ;;  %v8798_v57 = vld [vmem:[%s11976_s6 + $0x60] ss:$8 sps:$4 sm:$0xff]  }
 0x28b   :  { %8601 = vmatprep.mubr.msk.bf16.mxu1 %vm9047_vm4, %v9046_v26  ;;  %v5458_v24 = vadd.f32 %v5433_v12, %v11077_v23  ;;  %v5461_v56 = vadd.f32 %v5436_v55, %v11087_v51  ;;  %v8795_v51 = vld [vmem:[%s11976_s6 + $0x50] ss:$8 sps:$4 sm:$0xff]   ;;  %6830 = vmatprep.subr.bf16.mxu0 %v8797_v16  ;;  %v8824_v13 = vld [vmem:[%s11976_s6 + $0xe4] ss:$8 sps:$4 sm:$0xff]   ;;  %v8827_v33 = vld [vmem:[%s11976_s6 + $0xf4] ss:$8 sps:$4 sm:$0xff]  }
 0x28c   :  { %v5496_v63 = vpack.c.bf16 %v5481_v25, %v5480_v59  ;;  %v5485_v18 = vmul.f32 0.25, %v5460_v17  ;;  %v5457_v9 = vadd.f32 %v5432_v20, %v5382_v54  ;;  %v5484_v8 = vmul.f32 0.25, %v5459_v15  ;;  %6831 = vmatpush1.bf16.msra.mxu0 %v8795_v51  ;;  %v8819_v54 = vld [vmem:[%s11976_s6 + $0xd0] ss:$8 sps:$4 sm:$0xff]   ;;  %v8822_v59 = vld [vmem:[%s11976_s6 + $0xe0] ss:$8 sps:$4 sm:$0xff]  }
 0x28d   :  { %v5483_v14 = vmul.f32 0.25, %v5458_v24  ;;  %v5486_v23 = vmul.f32 0.25, %v5461_v56  ;;  %6832 = vmatprep.subr.bf16.mxu0 %v8800_v60  ;;  %v8825_v62 = vld [vmem:[%s11976_s6 + $0xf0] ss:$8 sps:$4 sm:$0xff]   ;;  %v8830_v1 = vld [vmem:[%s11976_s6 + $0x104] ss:$8 sps:$4 sm:$0xff]   ;;  %v11340_v17 = vstv %s8203_s8 }
 0x28e   :  { %v5482_v53 = vmul.f32 0.25, %v5457_v9  ;;  %v5498_v58 = vpack.c.bf16 %v5485_v18, %v5484_v8  ;;  %v11337_v20 = vld [vmem:[%s11975_s5] ss:$0 sm:$0xff]  ;;  %vm5895_vm8 = vcmask 1043456  }
 0x28f   :  { %v5499_v3 = vpack.c.bf16 %v5486_v23, %v5486_v23 }
 0x290   :  { %v5497_v19 = vpack.c.bf16 %v5483_v14, %v5482_v53  ;;  %6833 = vmatpush1.bf16.msra.mxu0 %v8798_v57 }
 0x292   :  { %8602 = vmatmul.mubr.msk.bf16.gmra.mrb[28].mxu1 %vm5539_vm15, %v5493_v31  ;;  %v8803_v31 = vld [vmem:[%s11976_s6 + $0x74] ss:$8 sps:$4 sm:$0xff]  }
 0x293   :  { %8605 = vmatprep.mubr.msk.bf16.mxu1 %vm9047_vm4, %v9046_v26  ;;  %6834 = vmatprep.subr.bf16.mxu0 %v8803_v31 }
 0x294   :  { %6835 = vmatpush1.bf16.msra.mxu0 %v8801_v30 }
 0x295   :  { %6836 = vmatprep.subr.bf16.mxu0 %v8806_v21 }
 0x298   :  { %6837 = vmatpush1.bf16.msra.mxu0 %v8804_v61 }
 0x299   :  { %6838 = vmatprep.subr.bf16.mxu0 %v8809_v11 }
 0x29a   :  { %8606 = vmatmul.mubr.msk.bf16.gmra.mrb[32].mxu1 %vm5539_vm15, %v5494_v27  ;;  %v8813_v27 = vld [vmem:[%s11976_s6 + $0xb0] ss:$8 sps:$4 sm:$0xff]  }
 0x29b   :  { %8609 = vmatprep.mubr.msk.bf16.mxu1 %vm9047_vm4, %v9046_v26 }
 0x29c   :  { %6839 = vmatpush1.bf16.msra.mxu0 %v8807_v28 }
 0x29d   :  { %6840 = vmatprep.subr.bf16.mxu0 %v8812_v22 }
 0x2a0   :  { %6841 = vmatpush1.bf16.msra.mxu0 %v8810_v29 }
 0x2a1   :  { %6842 = vmatprep.subr.bf16.mxu0 %v8815_v5 }
 0x2a2   :  { %8610 = vmatmul.mubr.msk.bf16.gmra.mrb[36].mxu1 %vm5539_vm15, %v5495_v6 }
 0x2a3   :  { %8613 = vmatprep.mubr.msk.bf16.mxu1 %vm9047_vm4, %v9046_v26 }
 0x2a4   :  { %6843 = vmatpush1.bf16.msra.mxu0 %v8813_v27 }
 0x2a5   :  { %6844 = vmatprep.subr.bf16.mxu0 %v8818_v32 }
 0x2a8   :  { %6845 = vmatpush1.bf16.msra.mxu0 %v8816_v50 }
 0x2a9   :  { %6846 = vmatprep.subr.bf16.mxu0 %v8821_v2 }
 0x2aa   :  { %8614 = vmatmul.mubr.msk.bf16.gmra.mrb[40].mxu1 %vm5539_vm15, %v5496_v63 }
 0x2ab   :  { %8617 = vmatprep.mubr.msk.bf16.mxu1 %vm9047_vm4, %v9046_v26 }
 0x2ac   :  { %6847 = vmatpush1.bf16.msra.mxu0 %v8819_v54 }
 0x2ad   :  { %6848 = vmatprep.subr.bf16.mxu0 %v8824_v13 }
 0x2b0   :  { %6849 = vmatpush1.bf16.msra.mxu0 %v8822_v59 }
 0x2b1   :  { %6850 = vmatprep.subr.bf16.mxu0 %v8827_v33 }
 0x2b2   :  { %8618 = vmatmul.mubr.msk.bf16.gmra.mrb[44].mxu1 %vm5539_vm15, %v5497_v19 }
 0x2b3   :  { %8621 = vmatprep.mubr.msk.bf16.mxu1 %vm9047_vm4, %v9046_v26 }
 0x2b4   :  { %6851 = vmatpush1.bf16.msra.mxu0 %v8825_v62 }
 0x2b5   :  { %6873 = vmatprep.subr.bf16.mxu0 %v8830_v1 }
 0x2ba   :  { %8622 = vmatmul.mubr.msk.bf16.gmra.mrb[48].mxu1 %vm5539_vm15, %v5498_v58 }
 0x2bb   :  { %8625 = vmatprep.mubr.msk.bf16.mxu1 %vm9047_vm4, %v9046_v26 }
 0x2c2   :  { %8626 = vmatmul.mubr.msk.bf16.gmra.mrb[52].mxu1 %vm5539_vm15, %v5499_v3 }
 0x335   :  { %v5613_v0 = vpop.f32.mrb[4].mxu1 }
 0x336   :  { %v8579_v52 = vpop.f32.mrb[5].mxu1  ;;  %v5614_v25 = vadd.f32 %v11337_v20, %v5613_v0 }
 0x337   :  { %v5616_v7 = vpop.f32.mrb[6].mxu1 }
 0x338   :  { %v8580_v10 = vpop.f32.mrb[7].mxu1  ;;  %v5617_v24 = vadd.f32 %v11337_v20, %v5616_v7  ;;  %v5741_v18 = vmul.f32 %v11340_v17, %v5614_v25  ;;  %vm5715_vm15 = vcmp.gt.f32.partialorder %v5614_v25, 0.0 }
 0x33a   :  { %v5742_v14 = vmul.f32 %v11340_v17, %v5617_v24  ;;  %vm5716_vm14 = vcmp.gt.f32.partialorder %v5617_v24, 0.0  ;;  %v5766_v58 = vsel %vm5715_vm15, %v5614_v25, %v5741_v18 }
 0x33c   :  { %v5767_v57 = vsel %vm5716_vm14, %v5617_v24, %v5742_v14 }
 0x33d   :  { %v5621_v4 = vpop.f32.mrb[8].mxu1 }
 0x33e   :  { %v8583_v6 = vpop.f32.mrb[9].mxu1  ;;  %v5622_v19 = vadd.f32 %v11337_v20, %v5621_v4 }
 0x33f   :  { %v5624_v12 = vpop.f32.mrb[10].mxu1 }
 0x340   :  { %v8584_v55 = vpop.f32.mrb[11].mxu1  ;;  %v5625_v60 = vadd.f32 %v11337_v20, %v5624_v12  ;;  %v5743_v21 = vmul.f32 %v11340_v17, %v5622_v19  ;;  %vm5717_vm1 = vcmp.gt.f32.partialorder %v5622_v19, 0.0 }
 0x342   :  { %v5744_v29 = vmul.f32 %v11340_v17, %v5625_v60  ;;  %vm5718_vm3 = vcmp.gt.f32.partialorder %v5625_v60, 0.0  ;;  %v5768_v2 = vsel %vm5717_vm1, %v5622_v19, %v5743_v21 }
 0x344   :  { %v5769_v1 = vsel %vm5718_vm3, %v5625_v60, %v5744_v29 }
 0x345   :  { %v5629_v15 = vpop.f32.mrb[12].mxu1 }
 0x346   :  { %v8587_v56 = vpop.f32.mrb[13].mxu1  ;;  %v5630_v54 = vadd.f32 %v11337_v20, %v5629_v15 }
 0x347   :  { %v5632_v63 = vpop.f32.mrb[14].mxu1 }
 0x348   :  { %v5633_v9 = vadd.f32 %v11337_v20, %v5632_v63  ;;  %v8588_v8 = vpop.f32.mrb[15].mxu1  ;;  %v5745_v6 = vmul.f32 %v11340_v17, %v5630_v54  ;;  %vm5719_vm6 = vcmp.gt.f32.partialorder %v5630_v54, 0.0 }
 0x34a   :  { %vm5720_vm13 = vcmp.gt.f32.partialorder %v5633_v9, 0.0  ;;  %v5746_v53 = vmul.f32 %v11340_v17, %v5633_v9  ;;  %v5770_v14 = vsel %vm5719_vm6, %v5630_v54, %v5745_v6  ;;  %v8831_v6 = vld [vmem:[%s11976_s6 + $0x110] ss:$8 sps:$4 sm:$0xff]  }
 0x34c   :  { %v11348_v16 = vsel %vm5720_vm13, %v5633_v9, %v5746_v53 }
 0x34d   :  { %v5791_v23 = vadd.f32 %v11348_v16, %v5766_v58  ;;  %v5637_v51 = vpop.f32.mrb[16].mxu1 }
 0x34e   :  { %v5638_v3 = vadd.f32 %v11337_v20, %v5637_v51  ;;  %v8591_v31 = vpop.f32.mrb[17].mxu1 }
 0x34f   :  { %v5807_v30 = vadd.f32 %v5791_v23, %v5767_v57  ;;  %v5640_v61 = vpop.f32.mrb[18].mxu1 }
 0x350   :  { %vm5721_vm0 = vcmp.gt.f32.partialorder %v5638_v3, 0.0  ;;  %v5747_v11 = vmul.f32 %v11340_v17, %v5638_v3  ;;  %v5641_v28 = vadd.f32 %v11337_v20, %v5640_v61  ;;  %v8592_v22 = vpop.f32.mrb[19].mxu1 }
 0x352   :  { %v11357_v5 = vsel %vm5721_vm0, %v5638_v3, %v5747_v11  ;;  %vm5722_vm2 = vcmp.gt.f32.partialorder %v5641_v28, 0.0  ;;  %v5748_v27 = vmul.f32 %v11340_v17, %v5641_v28 }
 0x353   :  { %v5792_v32 = vadd.f32 %v11357_v5, %v5767_v57  ;;  %v5823_v50 = vadd.f32 %v5807_v30, %v11357_v5 }
 0x354   :  { %v11363_v13 = vsel %vm5722_vm2, %v5641_v28, %v5748_v27 }
 0x355   :  { %v5793_v59 = vadd.f32 %v11363_v13, %v5768_v2  ;;  %v5645_v33 = vpop.f32.mrb[20].mxu1  ;;  %v5808_v62 = vadd.f32 %v5792_v32, %v5768_v2  ;;  %v5839_v15 = vmul.f32 0.25, %v5823_v50  ;;  %v8828_v2 = vld [vmem:[%s11976_s6 + $0x100] ss:$8 sps:$4 sm:$0xff]  }
 0x356   :  { %v5646_v0 = vadd.f32 %v11337_v20, %v5645_v33  ;;  %v8595_v52 = vpop.f32.mrb[21].mxu1 }
 0x357   :  { %v5809_v7 = vadd.f32 %v5793_v59, %v5769_v1  ;;  %v5648_v10 = vpop.f32.mrb[22].mxu1  ;;  %v5824_v4 = vadd.f32 %v5808_v62, %v11363_v13  ;;  %v5855_v53 = vpack.c.bf16 %v5839_v15, %v5839_v15  ;;  %v8833_v62 = vld [vmem:[%s11976_s6 + $0x114] ss:$8 sps:$4 sm:$0xff]  }
 0x358   :  { %vm5723_vm5 = vcmp.gt.f32.partialorder %v5646_v0, 0.0  ;;  %v5749_v12 = vmul.f32 %v11340_v17, %v5646_v0  ;;  %v5649_v55 = vadd.f32 %v11337_v20, %v5648_v10  ;;  %v8596_v25 = vpop.f32.mrb[23].mxu1 }
 0x359   :  { %v5840_v24 = vmul.f32 0.25, %v5824_v4 }
 0x35a   :  { %v11371_v56 = vsel %vm5723_vm5, %v5646_v0, %v5749_v12  ;;  %v5750_v63 = vmul.f32 %v11340_v17, %v5649_v55  ;;  %vm5724_vm7 = vcmp.gt.f32.partialorder %v5649_v55, 0.0 }
 0x35b   :  { %v5794_v18 = vadd.f32 %v11371_v56, %v5769_v1  ;;  %v5825_v9 = vadd.f32 %v5809_v7, %v11371_v56  ;;  %v5856_v8 = vpack.c.bf16 %v5840_v24, %v5840_v24 }
 0x35c   :  { %v5775_v57 = vsel %vm5724_vm7, %v5649_v55, %v5750_v63  ;;  %v8836_v55 = vld [vmem:[%s11976_s6 + $0x124] ss:$8 sps:$4 sm:$0xff]  }
 0x35d   :  { %v5810_v58 = vadd.f32 %v5794_v18, %v5770_v14  ;;  %v5653_v19 = vpop.f32.mrb[24].mxu1  ;;  %v5841_v23 = vmul.f32 0.25, %v5825_v9  ;;  %v5880_v51 = vrot.slane %v5856_v8, 4  ;;  %v8834_v14 = vld [vmem:[%s11976_s6 + $0x120] ss:$8 sps:$4 sm:$0xff]  }
 0x35e   :  { %v5654_v60 = vadd.f32 %v11337_v20, %v5653_v19  ;;  %v8599_v3 = vpop.f32.mrb[25].mxu1 }
 0x35f   :  { %v5826_v31 = vadd.f32 %v5810_v58, %v5775_v57  ;;  %v5656_v30 = vpop.f32.mrb[26].mxu1  ;;  %v5857_v61 = vpack.c.bf16 %v5841_v23, %v5841_v23  ;;  %v5898_v21 = vsel %vm5895_vm8, %v5855_v53, %v5880_v51  ;;  %v8839_v58 = vld [vmem:[%s11976_s6 + $0x134] ss:$8 sps:$4 sm:$0xff]  }
 0x360   :  { %vm5725_vm9 = vcmp.gt.f32.partialorder %v5654_v60, 0.0  ;;  %v5751_v11 = vmul.f32 %v11340_v17, %v5654_v60  ;;  %v5657_v28 = vadd.f32 %v11337_v20, %v5656_v30  ;;  %v8600_v22 = vpop.f32.mrb[27].mxu1 }
 0x361   :  { %v5842_v29 = vmul.f32 0.25, %v5826_v31  ;;  %v5881_v27 = vrot.slane %v5857_v61, 4 }
 0x362   :  { %v11380_v32 = vsel %vm5725_vm9, %v5654_v60, %v5751_v11  ;;  %vm5726_vm10 = vcmp.gt.f32.partialorder %v5657_v28, 0.0  ;;  %v5752_v50 = vmul.f32 %v11340_v17, %v5657_v28 }
 0x363   :  { %v5858_v54 = vpack.c.bf16 %v5842_v29, %v5842_v29  ;;  %v5795_v59 = vadd.f32 %v11380_v32, %v11348_v16  ;;  %v5902_v33 = vsel %vm5895_vm8, %v5856_v8, %v5881_v27 }
 0x364   :  { %v11392_v1 = vsel %vm5726_vm10, %v5657_v28, %v5752_v50  ;;  %6852 = vmatprep.mubr.bf16.mxu0 %v5902_v33 }
 0x365   :  { %v5882_v0 = vrot.slane %v5858_v54, 4  ;;  %v5811_v52 = vadd.f32 %v5795_v59, %v11357_v5  ;;  %v5796_v7 = vadd.f32 %v11392_v1, %v11357_v5  ;;  %v5661_v10 = vpop.f32.mrb[28].mxu1  ;;  %6853 = vmatmul.mubr.bf16.vlgmr.msra.gmra.mrb[32].mxu0 %v5898_v21  ;;  %v8837_v21 = vld [vmem:[%s11976_s6 + $0x130] ss:$8 sps:$4 sm:$0xff]  }
 0x366   :  { %v5662_v4 = vadd.f32 %v11337_v20, %v5661_v10  ;;  %6874 = vmatpush1.bf16.msra.mxu0 %v8828_v2  ;;  %v8603_v16 = vpop.f32.mrb[29].mxu1  ;;  %v8845_v10 = vld [vmem:[%s11976_s6 + $0x154] ss:$8 sps:$4 sm:$0xff]  }
 0x367   :  { %v5664_v12 = vpop.f32.mrb[30].mxu1  ;;  %6875 = vmatprep.subr.bf16.mxu0 %v8833_v62  ;;  %v5812_v25 = vadd.f32 %v5796_v7, %v11363_v13  ;;  %v5827_v5 = vadd.f32 %v5811_v52, %v11392_v1  ;;  %v11407_v15 = vsel %vm5895_vm8, %v5857_v61, %v5882_v0  ;;  %v8840_v0 = vld [vmem:[%s11976_s6 + $0x140] ss:$8 sps:$4 sm:$0xff]  }
 0x368   :  { %vm5727_vm11 = vcmp.gt.f32.partialorder %v5662_v4, 0.0  ;;  %v5753_v24 = vmul.f32 %v11340_v17, %v5662_v4  ;;  %v5665_v63 = vadd.f32 %v11337_v20, %v5664_v12  ;;  %v8604_v18 = vpop.f32.mrb[31].mxu1 }
 0x369   :  { %v5843_v30 = vmul.f32 0.25, %v5827_v5 }
 0x36a   :  { %v11411_v9 = vsel %vm5727_vm11, %v5662_v4, %v5753_v24  ;;  %vm5728_vm12 = vcmp.gt.f32.partialorder %v5665_v63, 0.0  ;;  %v5754_v8 = vmul.f32 %v11340_v17, %v5665_v63  ;;  %6876 = vmatpush1.bf16.msra.mxu0 %v8831_v6 }
 0x36b   :  { %v5797_v53 = vadd.f32 %v11411_v9, %v11363_v13  ;;  %6877 = vmatprep.subr.bf16.mxu0 %v8836_v55  ;;  %v5828_v19 = vadd.f32 %v5812_v25, %v11411_v9  ;;  %v5859_v59 = vpack.c.bf16 %v5843_v30, %v5843_v30  ;;  %v8846_v30 = vld [vmem:[%s11976_s6 + $0x160] ss:$8 sps:$4 sm:$0xff]  }
 0x36c   :  { %v11423_v23 = vsel %vm5728_vm12, %v5665_v63, %v5754_v8  ;;  %v8843_v63 = vld [vmem:[%s11976_s6 + $0x150] ss:$8 sps:$4 sm:$0xff]  }
 0x36d   :  { %v5798_v51 = vadd.f32 %v11423_v23, %v11371_v56  ;;  %v5813_v60 = vadd.f32 %v5797_v53, %v11371_v56  ;;  %v5669_v3 = vpop.f32.mrb[32].mxu1  ;;  %v5844_v31 = vmul.f32 0.25, %v5828_v19  ;;  %v8842_v56 = vld [vmem:[%s11976_s6 + $0x144] ss:$8 sps:$4 sm:$0xff]  }
 0x36e   :  { %v5670_v61 = vadd.f32 %v11337_v20, %v5669_v3  ;;  %6878 = vmatpush1.bf16.msra.mxu0 %v8834_v14  ;;  %v8607_v13 = vpop.f32.mrb[33].mxu1 }
 0x36f   :  { %v5829_v11 = vadd.f32 %v5813_v60, %v11423_v23  ;;  %v5814_v28 = vadd.f32 %v5798_v51, %v5775_v57  ;;  %v5672_v22 = vpop.f32.mrb[34].mxu1  ;;  %6879 = vmatprep.subr.bf16.mxu0 %v8839_v58  ;;  %v5860_v29 = vpack.c.bf16 %v5844_v31, %v5844_v31  ;;  %v8851_v13 = vld [vmem:[%s11976_s6 + $0x174] ss:$8 sps:$4 sm:$0xff]  }
 0x370   :  { %vm5729_vm15 = vcmp.gt.f32.partialorder %v5670_v61, 0.0  ;;  %v5755_v27 = vmul.f32 %v11340_v17, %v5670_v61  ;;  %v5673_v50 = vadd.f32 %v11337_v20, %v5672_v22  ;;  %v8608_v2 = vpop.f32.mrb[35].mxu1 }
 0x371   :  { %v5845_v54 = vmul.f32 0.25, %v5829_v11  ;;  %v5883_v33 = vrot.slane %v5860_v29, 4 }
 0x372   :  { %v11438_v62 = vsel %vm5729_vm15, %v5670_v61, %v5755_v27  ;;  %vm5730_vm13 = vcmp.gt.f32.partialorder %v5673_v50, 0.0  ;;  %v5756_v57 = vmul.f32 %v11340_v17, %v5673_v50  ;;  %6880 = vmatpush1.bf16.msra.mxu0 %v8837_v21 }
 0x373   :  { %v5830_v52 = vadd.f32 %v5814_v28, %v11438_v62  ;;  %6881 = vmatprep.subr.bf16.mxu0 %v8842_v56  ;;  %v5861_v7 = vpack.c.bf16 %v5845_v54, %v5845_v54  ;;  %v5910_v4 = vsel %vm5895_vm8, %v5859_v59, %v5883_v33  ;;  %v8854_v59 = vld [vmem:[%s11976_s6 + $0x184] ss:$8 sps:$4 sm:$0xff]  }
 0x374   :  { %v11449_v16 = vsel %vm5730_vm13, %v5673_v50, %v5756_v57  ;;  %v8849_v50 = vld [vmem:[%s11976_s6 + $0x170] ss:$8 sps:$4 sm:$0xff]  }
 0x375   :  { %v5846_v6 = vmul.f32 0.25, %v5830_v52  ;;  %v5799_v12 = vadd.f32 %v11449_v16, %v11380_v32  ;;  %v5677_v55 = vpop.f32.mrb[36].mxu1  ;;  %v5884_v25 = vrot.slane %v5861_v7, 4  ;;  %v8848_v32 = vld [vmem:[%s11976_s6 + $0x164] ss:$8 sps:$4 sm:$0xff]  }
 0x376   :  { %v5678_v5 = vadd.f32 %v11337_v20, %v5677_v55  ;;  %6882 = vmatpush1.bf16.msra.mxu0 %v8840_v0  ;;  %v8611_v24 = vpop.f32.mrb[37].mxu1  ;;  %v8857_v55 = vld [vmem:[%s11976_s6 + $0x194] ss:$8 sps:$4 sm:$0xff]  }
 0x377   :  { %v5815_v18 = vadd.f32 %v5799_v12, %v11392_v1  ;;  %v5680_v8 = vpop.f32.mrb[38].mxu1  ;;  %v11459_v14 = vsel %vm5895_vm8, %v5860_v29, %v5884_v25  ;;  %6883 = vmatprep.subr.bf16.mxu0 %v8845_v10  ;;  %v5862_v53 = vpack.c.bf16 %v5846_v6, %v5846_v6  ;;  %v8852_v6 = vld [vmem:[%s11976_s6 + $0x180] ss:$8 sps:$4 sm:$0xff]  }
 0x378   :  { %vm5731_vm14 = vcmp.gt.f32.partialorder %v5678_v5, 0.0  ;;  %v5757_v58 = vmul.f32 %v11340_v17, %v5678_v5  ;;  %v5681_v19 = vadd.f32 %v11337_v20, %v5680_v8  ;;  %6862 = vmatprep.mubr.bf16.mxu0 %v11459_v14  ;;  %v8612_v51 = vpop.f32.mrb[39].mxu1 }
 0x379   :  { %6863 = vmatmul.mubr.bf16.gmra.mrb[36].mxu0 %v5910_v4  ;;  %v5885_v60 = vrot.slane %v5862_v53, 4 }
 0x37a   :  { %v11467_v3 = vsel %vm5731_vm14, %v5678_v5, %v5757_v58  ;;  %vm5732_vm0 = vcmp.gt.f32.partialorder %v5681_v19, 0.0  ;;  %v5758_v31 = vmul.f32 %v11340_v17, %v5681_v19  ;;  %6884 = vmatpush1.bf16.msra.mxu0 %v8843_v63  ;;  %6905 = vmatprep.mubr.bf16.mxu0 %v5910_v4 }
 0x37b   :  { %v5800_v61 = vadd.f32 %v11467_v3, %v11392_v1  ;;  %6885 = vmatprep.subr.bf16.mxu0 %v8848_v32  ;;  %v5831_v21 = vadd.f32 %v5815_v18, %v11467_v3  ;;  %v11480_v11 = vsel %vm5895_vm8, %v5861_v7, %v5885_v60 }
 0x37c   :  { %v11482_v28 = vsel %vm5732_vm0, %v5681_v19, %v5758_v31  ;;  %v8855_v19 = vld [vmem:[%s11976_s6 + $0x190] ss:$8 sps:$4 sm:$0xff]  }
 0x37d   :  { %v5801_v22 = vadd.f32 %v11482_v28, %v11411_v9  ;;  %v5816_v56 = vadd.f32 %v5800_v61, %v11411_v9  ;;  %v5685_v29 = vpop.f32.mrb[40].mxu1  ;;  %v5847_v52 = vmul.f32 0.25, %v5831_v21 }
 0x37e   :  { %v5686_v1 = vadd.f32 %v11337_v20, %v5685_v29  ;;  %6886 = vmatpush1.bf16.msra.mxu0 %v8846_v30  ;;  %v8615_v27 = vpop.f32.mrb[41].mxu1 }
 0x37f   :  { %v5832_v2 = vadd.f32 %v5816_v56, %v11482_v28  ;;  %v5688_v54 = vpop.f32.mrb[42].mxu1  ;;  %6887 = vmatprep.subr.bf16.mxu0 %v8851_v13  ;;  %v5817_v33 = vadd.f32 %v5801_v22, %v11423_v23  ;;  %v5863_v8 = vpack.c.bf16 %v5847_v52, %v5847_v52  ;;  %v8858_v27 = vld [vmem:[%s11976_s6 + $0x1a0] ss:$8 sps:$4 sm:$0xff]  }
 0x380   :  { %vm5733_vm1 = vcmp.gt.f32.partialorder %v5686_v1, 0.0  ;;  %v5759_v9 = vmul.f32 %v11340_v17, %v5686_v1  ;;  %v5689_v57 = vadd.f32 %v11337_v20, %v5688_v54  ;;  %v8616_v0 = vpop.f32.mrb[43].mxu1 }
 0x381   :  { %v5848_v7 = vmul.f32 0.25, %v5832_v2  ;;  %v8863_v2 = vld [vmem:[%s11976_s6 + $0x1b4] ss:$8 sps:$4 sm:$0xff]  }
 0x382   :  { %v11498_v10 = vsel %vm5733_vm1, %v5686_v1, %v5759_v9  ;;  %vm5734_vm2 = vcmp.gt.f32.partialorder %v5689_v57, 0.0  ;;  %v5760_v4 = vmul.f32 %v11340_v17, %v5689_v57  ;;  %6888 = vmatpush1.bf16.msra.mxu0 %v8849_v50 }
 0x383   :  { %v5802_v12 = vadd.f32 %v11498_v10, %v11423_v23  ;;  %6889 = vmatprep.subr.bf16.mxu0 %v8854_v59  ;;  %v5864_v25 = vpack.c.bf16 %v5848_v7, %v5848_v7  ;;  %v5833_v5 = vadd.f32 %v5817_v33, %v11498_v10 }
 0x384   :  { %v11510_v24 = vsel %vm5734_vm2, %v5689_v57, %v5760_v4  ;;  %v8861_v4 = vld [vmem:[%s11976_s6 + $0x1b0] ss:$8 sps:$4 sm:$0xff]  }
 0x385   :  { %v5818_v63 = vadd.f32 %v5802_v12, %v11438_v62  ;;  %v5693_v18 = vpop.f32.mrb[44].mxu1  ;;  %v5886_v32 = vrot.slane %v5864_v25, 4  ;;  %v5849_v53 = vmul.f32 0.25, %v5833_v5  ;;  %v8860_v62 = vld [vmem:[%s11976_s6 + $0x1a4] ss:$8 sps:$4 sm:$0xff]  }
 0x386   :  { %v5694_v58 = vadd.f32 %v11337_v20, %v5693_v18  ;;  %6890 = vmatpush1.bf16.msra.mxu0 %v8852_v6  ;;  %v8619_v23 = vpop.f32.mrb[45].mxu1 }
 0x387   :  { %v5834_v51 = vadd.f32 %v5818_v63, %v11510_v24  ;;  %v5696_v60 = vpop.f32.mrb[46].mxu1  ;;  %6891 = vmatprep.subr.bf16.mxu0 %v8857_v55  ;;  %v11522_v31 = vsel %vm5895_vm8, %v5863_v8, %v5886_v32  ;;  %v5865_v30 = vpack.c.bf16 %v5849_v53, %v5849_v53  ;;  %v8864_v53 = vld [vmem:[%s11976_s6 + $0x1c0] ss:$8 sps:$4 sm:$0xff]  }
 0x388   :  { %vm5735_vm3 = vcmp.gt.f32.partialorder %v5694_v58, 0.0  ;;  %v5761_v61 = vmul.f32 %v11340_v17, %v5694_v58  ;;  %v5697_v13 = vadd.f32 %v11337_v20, %v5696_v60  ;;  %v8620_v21 = vpop.f32.mrb[47].mxu1 }
 0x389   :  { %v5850_v22 = vmul.f32 0.25, %v5834_v51  ;;  %v5887_v56 = vrot.slane %v5865_v30, 4 }
 0x38a   :  { %v5786_v29 = vsel %vm5735_vm3, %v5694_v58, %v5761_v61  ;;  %vm5736_vm5 = vcmp.gt.f32.partialorder %v5697_v13, 0.0  ;;  %v5762_v1 = vmul.f32 %v11340_v17, %v5697_v13  ;;  %6892 = vmatpush1.bf16.msra.mxu0 %v8855_v19  ;;  %v8869_v19 = vld [vmem:[%s11976_s6 + $0x1d4] ss:$8 sps:$4 sm:$0xff]  }
 0x38b   :  { %v5803_v50 = vadd.f32 %v5786_v29, %v11449_v16  ;;  %6893 = vmatprep.subr.bf16.mxu0 %v8860_v62  ;;  %v5866_v54 = vpack.c.bf16 %v5850_v22, %v5850_v22  ;;  %v11535_v59 = vsel %vm5895_vm8, %v5864_v25, %v5887_v56  ;;  %v8866_v25 = vld [vmem:[%s11976_s6 + $0x1c4] ss:$8 sps:$4 sm:$0xff]  }
 0x38c   :  { %v5787_v33 = vsel %vm5736_vm5, %v5697_v13, %v5762_v1  ;;  %v8872_v1 = vld [vmem:[%s11976_s6 + $0x1e4] ss:$8 sps:$4 sm:$0xff]  }
 0x38d   :  { %v5804_v9 = vadd.f32 %v5787_v33, %v11467_v3  ;;  %v5819_v57 = vadd.f32 %v5803_v50, %v11467_v3  ;;  %v5701_v0 = vpop.f32.mrb[48].mxu1  ;;  %v5888_v52 = vrot.slane %v5866_v54, 4 }
 0x38e   :  { %v5702_v7 = vadd.f32 %v11337_v20, %v5701_v0  ;;  %6894 = vmatpush1.bf16.msra.mxu0 %v8858_v27  ;;  %v8623_v16 = vpop.f32.mrb[49].mxu1 }
 0x38f   :  { %v5835_v6 = vadd.f32 %v5819_v57, %v5787_v33  ;;  %v5820_v12 = vadd.f32 %v5804_v9, %v11482_v28  ;;  %v5704_v55 = vpop.f32.mrb[50].mxu1  ;;  %6895 = vmatprep.subr.bf16.mxu0 %v8863_v2  ;;  %v11548_v3 = vsel %vm5895_vm8, %v5865_v30, %v5888_v52  ;;  %v8875_v52 = vld [vmem:[%s11976_s6 + $0x1f4] ss:$8 sps:$4 sm:$0xff]  }
 0x390   :  { %vm5737_vm6 = vcmp.gt.f32.partialorder %v5702_v7, 0.0  ;;  %v5763_v5 = vmul.f32 %v11340_v17, %v5702_v7  ;;  %v5705_v63 = vadd.f32 %v11337_v20, %v5704_v55  ;;  %v8624_v18 = vpop.f32.mrb[51].mxu1 }
 0x391   :  { %v5851_v60 = vmul.f32 0.25, %v5835_v6  ;;  %v8878_v6 = vld [vmem:[%s11976_s6 + $0x204] ss:$8 sps:$4 sm:$0xff]  }
 0x392   :  { %v5788_v8 = vsel %vm5737_vm6, %v5702_v7, %v5763_v5  ;;  %vm5738_vm7 = vcmp.gt.f32.partialorder %v5705_v63, 0.0  ;;  %v5764_v32 = vmul.f32 %v11340_v17, %v5705_v63  ;;  %6896 = vmatpush1.bf16.msra.mxu0 %v8861_v4  ;;  %v8873_v4 = vld [vmem:[%s11976_s6 + $0x1f0] ss:$8 sps:$4 sm:$0xff]   ;;  %v8876_v5 = vld [vmem:[%s11976_s6 + $0x200] ss:$8 sps:$4 sm:$0xff]  }
 0x393   :  { %v5805_v58 = vadd.f32 %v5788_v8, %v11482_v28  ;;  %v5836_v23 = vadd.f32 %v5820_v12, %v5788_v8  ;;  %6897 = vmatprep.subr.bf16.mxu0 %v8866_v25  ;;  %v8867_v28 = vld [vmem:[%s11976_s6 + $0x1d0] ss:$8 sps:$4 sm:$0xff]   ;;  %v5867_v54 = vpack.c.bf16 %v5851_v60, %v5851_v60  ;;  %v8896_v60 = vld [vmem:[%s11976_s6 + $0x264] ss:$8 sps:$4 sm:$0xff]  }
 0x394   :  { %v5789_v51 = vsel %vm5738_vm7, %v5705_v63, %v5764_v32  ;;  %v8881_v63 = vld [vmem:[%s11976_s6 + $0x214] ss:$8 sps:$4 sm:$0xff]   ;;  %v8879_v8 = vld [vmem:[%s11976_s6 + $0x210] ss:$8 sps:$4 sm:$0xff]   ;;  %v8884_v32 = vld [vmem:[%s11976_s6 + $0x224] ss:$8 sps:$4 sm:$0xff]  }
 0x395   :  { %v5852_v62 = vmul.f32 0.25, %v5836_v23  ;;  %v5806_v30 = vadd.f32 %v5789_v51, %v11498_v10  ;;  %v5821_v61 = vadd.f32 %v5805_v58, %v11498_v10  ;;  %v5709_v13 = vpop.f32.mrb[52].mxu1  ;;  %v8885_v58 = vld [vmem:[%s11976_s6 + $0x230] ss:$8 sps:$4 sm:$0xff]   ;;  %v8890_v23 = vld [vmem:[%s11976_s6 + $0x244] ss:$8 sps:$4 sm:$0xff]  }
 0x396   :  { %v5710_v21 = vadd.f32 %v11337_v20, %v5709_v13  ;;  %6898 = vmatpush1.bf16.msra.mxu0 %v8864_v53  ;;  %v8627_v22 = vpop.f32.mrb[53].mxu1  ;;  %v8882_v53 = vld [vmem:[%s11976_s6 + $0x220] ss:$8 sps:$4 sm:$0xff]   ;;  %v8902_v13 = vld [vmem:[%s11976_s6 + $0x284] ss:$8 sps:$4 sm:$0xff]  }
 0x397   :  { %v5837_v56 = vadd.f32 %v5821_v61, %v5789_v51  ;;  %v5822_v29 = vadd.f32 %v5806_v30, %v11510_v24  ;;  %6899 = vmatprep.subr.bf16.mxu0 %v8869_v19  ;;  %v5712_v27 = vpop.f32.mrb[54].mxu1  ;;  %v5868_v50 = vpack.c.bf16 %v5852_v62, %v5852_v62  ;;  %v8870_v24 = vld [vmem:[%s11976_s6 + $0x1e0] ss:$8 sps:$4 sm:$0xff]   ;;  %v8893_v51 = vld [vmem:[%s11976_s6 + $0x254] ss:$8 sps:$4 sm:$0xff]  }
 0x398   :  { %vm5739_vm9 = vcmp.gt.f32.partialorder %v5710_v21, 0.0  ;;  %v5765_v10 = vmul.f32 %v11340_v17, %v5710_v21  ;;  %v8628_v20 = vpop.f32.mrb[55].mxu1  ;;  %v8888_v19 = vld [vmem:[%s11976_s6 + $0x240] ss:$8 sps:$4 sm:$0xff]   ;;  %v8899_v30 = vld [vmem:[%s11976_s6 + $0x274] ss:$8 sps:$4 sm:$0xff]  }
 0x399   :  { %v5853_v2 = vmul.f32 0.25, %v5837_v56  ;;  %v5892_v33 = vrot.slane %v5868_v50, 4  ;;  %v8894_v62 = vld [vmem:[%s11976_s6 + $0x260] ss:$8 sps:$4 sm:$0xff]   ;;  %v8897_v61 = vld [vmem:[%s11976_s6 + $0x270] ss:$8 sps:$4 sm:$0xff]  }
 0x39a   :  { %v5790_v9 = vsel %vm5739_vm9, %v5710_v21, %v5765_v10  ;;  %6900 = vmatpush1.bf16.msra.mxu0 %v8867_v28  ;;  %v8900_v21 = vld [vmem:[%s11976_s6 + $0x280] ss:$8 sps:$4 sm:$0xff]   ;;  %v8905_v28 = vld [vmem:[%s11976_s6 + $0x294] ss:$8 sps:$4 sm:$0xff]   ;;  %v8903_v22 = vld [vmem:[%s11976_s6 + $0x290] ss:$8 sps:$4 sm:$0xff]  }
 0x39b   :  { %v5869_v57 = vpack.c.bf16 %v5853_v2, %v5853_v2  ;;  %v5838_v0 = vadd.f32 %v5822_v29, %v5790_v9  ;;  %6901 = vmatprep.subr.bf16.mxu0 %v8872_v1  ;;  %v11578_v7 = vsel %vm5895_vm8, %v5867_v54, %v5892_v33  ;;  %v8908_v56 = vld [vmem:[%s11976_s6 + $0x2a4] ss:$8 sps:$4 sm:$0xff]   ;;  %v8906_v29 = vld [vmem:[%s11976_s6 + $0x2a0] ss:$8 sps:$4 sm:$0xff]   ;;  %v8911_v1 = vld [vmem:[%s11976_s6 + $0x2b4] ss:$8 sps:$4 sm:$0xff]  }
 0x39c   :  { %v8909_v27 = vld [vmem:[%s11976_s6 + $0x2b0] ss:$8 sps:$4 sm:$0xff]   ;;  %v8912_v10 = vld [vmem:[%s11976_s6 + $0x2c0] ss:$8 sps:$4 sm:$0xff]   ;;  %v8917_v20 = vld [vmem:[%s11976_s6 + $0x2d4] ss:$8 sps:$4 sm:$0xff]  }
 0x39d   :  { %v5854_v17 = vmul.f32 0.25, %v5838_v0  ;;  %v5893_v16 = vrot.slane %v5869_v57, 4  ;;  %v8915_v2 = vld [vmem:[%s11976_s6 + $0x2d0] ss:$8 sps:$4 sm:$0xff]   ;;  %v8920_v54 = vld [vmem:[%s11976_s6 + $0x2e4] ss:$8 sps:$4 sm:$0xff]  }
 0x39e   :  { %6902 = vmatpush1.bf16.msra.mxu0 %v8870_v24  ;;  %v8918_v33 = vld [vmem:[%s11976_s6 + $0x2e0] ss:$8 sps:$4 sm:$0xff]   ;;  %v8923_v9 = vld [vmem:[%s11976_s6 + $0x2f4] ss:$8 sps:$4 sm:$0xff]   ;;  %v8921_v24 = vld [vmem:[%s11976_s6 + $0x2f0] ss:$8 sps:$4 sm:$0xff]  }
 0x39f   :  { %6903 = vmatprep.subr.bf16.mxu0 %v8875_v52  ;;  %v11587_v12 = vsel %vm5895_vm8, %v5868_v50, %v5893_v16  ;;  %v5870_v55 = vpack.c.bf16 %v5854_v17, %v5854_v17  ;;  %v8914_v50 = vld [vmem:[%s11976_s6 + $0x2c4] ss:$8 sps:$4 sm:$0xff]   ;;  %v8924_v0 = vld [vmem:[%s11976_s6 + $0x300] ss:$8 sps:$4 sm:$0xff]   ;;  %v8929_v52 = vld [vmem:[%s11976_s6 + $0x314] ss:$8 sps:$4 sm:$0xff]  }
 0x3a0   :  { %v8927_v17 = vld [vmem:[%s11976_s6 + $0x310] ss:$8 sps:$4 sm:$0xff]   ;;  %v8932_v16 = vld [vmem:[%s11976_s6 + $0x324] ss:$8 sps:$4 sm:$0xff]  }
 0x3a1   :  { %v5894_v25 = vrot.slane %v5870_v55, 4  ;;  %v8938_v55 = vld [vmem:[%s11976_s6 + $0x344] ss:$8 sps:$4 sm:$0xff]  }
 0x3a2   :  { %6904 = vmatpush1.bf16.msra.mxu0 %v8873_v4  ;;  %v8930_v4 = vld [vmem:[%s11976_s6 + $0x320] ss:$8 sps:$4 sm:$0xff]  }
 0x3a3   :  { %6926 = vmatprep.subr.bf16.mxu0 %v8878_v6  ;;  %v11596_v18 = vsel %vm5895_vm8, %v5869_v57, %v5894_v25  ;;  %v8926_v57 = vld [vmem:[%s11976_s6 + $0x304] ss:$8 sps:$4 sm:$0xff]   ;;  %v8933_v6 = vld [vmem:[%s11976_s6 + $0x330] ss:$8 sps:$4 sm:$0xff]   ;;  %v8936_v25 = vld [vmem:[%s11976_s6 + $0x340] ss:$8 sps:$4 sm:$0xff]  }
 0x3a5   :  { %6906 = vmatmul.mubr.bf16.vlgmr.msra.gmra.mrb[32].mxu0 %v11407_v15  ;;  %v8887_v15 = vld [vmem:[%s11976_s6 + $0x234] ss:$8 sps:$4 sm:$0xff]  }
 0x3a6   :  { %6915 = vmatprep.mubr.bf16.mxu0 %v11522_v31  ;;  %6927 = vmatpush1.bf16.msra.mxu0 %v8876_v5  ;;  %v8941_v5 = vld [vmem:[%s11976_s6 + $0x354] ss:$8 sps:$4 sm:$0xff]  }
 0x3a7   :  { %6928 = vmatprep.subr.bf16.mxu0 %v8881_v63  ;;  %v8944_v63 = vld [vmem:[%s11976_s6 + $0x364] ss:$8 sps:$4 sm:$0xff]  }
 0x3aa   :  { %6929 = vmatpush1.bf16.msra.mxu0 %v8879_v8  ;;  %v8942_v8 = vld [vmem:[%s11976_s6 + $0x360] ss:$8 sps:$4 sm:$0xff]  }
 0x3ab   :  { %6930 = vmatprep.subr.bf16.mxu0 %v8884_v32  ;;  %v8947_v32 = vld [vmem:[%s11976_s6 + $0x374] ss:$8 sps:$4 sm:$0xff]  }
 0x3ad   :  { %6916 = vmatmul.mubr.bf16.gmra.mrb[36].mxu0 %v11480_v11 }
 0x3ae   :  { %6931 = vmatpush1.bf16.msra.mxu0 %v8882_v53  ;;  %6958 = vmatprep.mubr.bf16.mxu0 %v11480_v11  ;;  %v8891_v11 = vld [vmem:[%s11976_s6 + $0x250] ss:$8 sps:$4 sm:$0xff]  }
 0x3af   :  { %6932 = vmatprep.subr.bf16.mxu0 %v8887_v15  ;;  %v8945_v53 = vld [vmem:[%s11976_s6 + $0x370] ss:$8 sps:$4 sm:$0xff]   ;;  %v8950_v15 = vld [vmem:[%s11976_s6 + $0x384] ss:$8 sps:$4 sm:$0xff]  }
 0x3b2   :  { %6933 = vmatpush1.bf16.msra.mxu0 %v8885_v58  ;;  %v8948_v58 = vld [vmem:[%s11976_s6 + $0x380] ss:$8 sps:$4 sm:$0xff]  }
 0x3b3   :  { %6934 = vmatprep.subr.bf16.mxu0 %v8890_v23  ;;  %v8953_v23 = vld [vmem:[%s11976_s6 + $0x394] ss:$8 sps:$4 sm:$0xff]  }
 0x3b6   :  { %6935 = vmatpush1.bf16.msra.mxu0 %v8888_v19  ;;  %v8951_v19 = vld [vmem:[%s11976_s6 + $0x390] ss:$8 sps:$4 sm:$0xff]  }
 0x3b7   :  { %6936 = vmatprep.subr.bf16.mxu0 %v8893_v51  ;;  %v8956_v51 = vld [vmem:[%s11976_s6 + $0x3a4] ss:$8 sps:$4 sm:$0xff]  }
 0x3ba   :  { %6937 = vmatpush1.bf16.msra.mxu0 %v8891_v11  ;;  %v8954_v11 = vld [vmem:[%s11976_s6 + $0x3a0] ss:$8 sps:$4 sm:$0xff]  }
 0x3bb   :  { %6938 = vmatprep.subr.bf16.mxu0 %v8896_v60  ;;  %v8959_v60 = vld [vmem:[%s11976_s6 + $0x3b4] ss:$8 sps:$4 sm:$0xff]  }
 0x3be   :  { %6939 = vmatpush1.bf16.msra.mxu0 %v8894_v62  ;;  %v8957_v62 = vld [vmem:[%s11976_s6 + $0x3b0] ss:$8 sps:$4 sm:$0xff]  }
 0x3bf   :  { %6940 = vmatprep.subr.bf16.mxu0 %v8899_v30  ;;  %v8962_v30 = vld [vmem:[%s11976_s6 + $0x3c4] ss:$8 sps:$4 sm:$0xff]  }
 0x3c2   :  { %6941 = vmatpush1.bf16.msra.mxu0 %v8897_v61  ;;  %v8960_v61 = vld [vmem:[%s11976_s6 + $0x3c0] ss:$8 sps:$4 sm:$0xff]  }
 0x3c3   :  { %6942 = vmatprep.subr.bf16.mxu0 %v8902_v13  ;;  %v8965_v13 = vld [vmem:[%s11976_s6 + $0x3d4] ss:$8 sps:$4 sm:$0xff]  }
 0x3c6   :  { %6943 = vmatpush1.bf16.msra.mxu0 %v8900_v21  ;;  %v8963_v21 = vld [vmem:[%s11976_s6 + $0x3d0] ss:$8 sps:$4 sm:$0xff]  }
 0x3c7   :  { %6944 = vmatprep.subr.bf16.mxu0 %v8905_v28  ;;  %v8968_v28 = vld [vmem:[%s11976_s6 + $0x3e4] ss:$8 sps:$4 sm:$0xff]  }
 0x3ca   :  { %6945 = vmatpush1.bf16.msra.mxu0 %v8903_v22  ;;  %v8966_v22 = vld [vmem:[%s11976_s6 + $0x3e0] ss:$8 sps:$4 sm:$0xff]  }
 0x3cb   :  { %6946 = vmatprep.subr.bf16.mxu0 %v8908_v56  ;;  %v8971_v56 = vld [vmem:[%s11976_s6 + $0x3f4] ss:$8 sps:$4 sm:$0xff]  }
 0x3ce   :  { %6947 = vmatpush1.bf16.msra.mxu0 %v8906_v29  ;;  %v8969_v29 = vld [vmem:[%s11976_s6 + $0x3f0] ss:$8 sps:$4 sm:$0xff]  }
 0x3cf   :  { %6948 = vmatprep.subr.bf16.mxu0 %v8911_v1  ;;  %v8974_v1 = vld [vmem:[%s11976_s6 + $0x404] ss:$8 sps:$4 sm:$0xff]  }
 0x3d2   :  { %6949 = vmatpush1.bf16.msra.mxu0 %v8909_v27  ;;  %v8972_v27 = vld [vmem:[%s11976_s6 + $0x400] ss:$8 sps:$4 sm:$0xff]  }
 0x3d3   :  { %6950 = vmatprep.subr.bf16.mxu0 %v8914_v50  ;;  %v8977_v50 = vld [vmem:[%s11976_s6 + $0x414] ss:$8 sps:$4 sm:$0xff]  }
 0x3d6   :  { %6951 = vmatpush1.bf16.msra.mxu0 %v8912_v10  ;;  %v8975_v10 = vld [vmem:[%s11976_s6 + $0x410] ss:$8 sps:$4 sm:$0xff]  }
 0x3d7   :  { %6952 = vmatprep.subr.bf16.mxu0 %v8917_v20  ;;  %v8980_v20 = vld [vmem:[%s11976_s6 + $0x424] ss:$8 sps:$4 sm:$0xff]  }
 0x3da   :  { %6953 = vmatpush1.bf16.msra.mxu0 %v8915_v2  ;;  %v8978_v2 = vld [vmem:[%s11976_s6 + $0x420] ss:$8 sps:$4 sm:$0xff]  }
 0x3db   :  { %6954 = vmatprep.subr.bf16.mxu0 %v8920_v54  ;;  %v9048_v54 = vmov 0  }
 0x3de   :  { %6955 = vmatpush1.bf16.msra.mxu0 %v8918_v33  ;;  %v8986_v33 = vld [vmem:[%s11976_s6 + $0x444] ss:$8 sps:$4 sm:$0xff]  }
 0x3df   :  { %6956 = vmatprep.subr.bf16.mxu0 %v8923_v9  ;;  %v8984_v9 = vld [vmem:[%s11976_s6 + $0x440] ss:$8 sps:$4 sm:$0xff]  }
 0x3e2   :  { %6957 = vmatpush1.bf16.msra.mxu0 %v8921_v24  ;;  %v8987_v24 = vld [vmem:[%s11976_s6 + $0x450] ss:$8 sps:$4 sm:$0xff]  }
 0x3e3   :  { %6979 = vmatprep.subr.bf16.mxu0 %v8926_v57  ;;  %v8992_v57 = vld [vmem:[%s11976_s6 + $0x464] ss:$8 sps:$4 sm:$0xff]  }
 0x3e5   :  { %6959 = vmatmul.mubr.bf16.vlgmr.msra.gmra.mrb[32].mxu0 %v11459_v14  ;;  %v8935_v14 = vld [vmem:[%s11976_s6 + $0x334] ss:$8 sps:$4 sm:$0xff]  }
 0x3e6   :  { %6968 = vmatprep.mubr.bf16.mxu0 %v11548_v3  ;;  %6980 = vmatpush1.bf16.msra.mxu0 %v8924_v0  ;;  %v8990_v0 = vld [vmem:[%s11976_s6 + $0x460] ss:$8 sps:$4 sm:$0xff]  }
 0x3e7   :  { %6981 = vmatprep.subr.bf16.mxu0 %v8929_v52  ;;  %v8995_v52 = vld [vmem:[%s11976_s6 + $0x474] ss:$8 sps:$4 sm:$0xff]  }
 0x3ea   :  { %6982 = vmatpush1.bf16.msra.mxu0 %v8927_v17  ;;  %v8993_v17 = vld [vmem:[%s11976_s6 + $0x470] ss:$8 sps:$4 sm:$0xff]  }
 0x3eb   :  { %6983 = vmatprep.subr.bf16.mxu0 %v8932_v16  ;;  %v6090_v16 = vlaneseq }
 0x3ed   :  { %6969 = vmatmul.mubr.bf16.gmra.mrb[36].mxu0 %v11535_v59 }
 0x3ee   :  { %6984 = vmatpush1.bf16.msra.mxu0 %v8930_v4  ;;  %7011 = vmatprep.mubr.bf16.mxu0 %v11535_v59  ;;  %v8939_v59 = vld [vmem:[%s11976_s6 + $0x350] ss:$8 sps:$4 sm:$0xff]   ;;  %v11842_v4 = vshrl.u32 %v6090_v16, 7 }
 0x3ef   :  { %6985 = vmatprep.subr.bf16.mxu0 %v8935_v14 }
 0x3f0   :  { %v11845_v14 = vsub.s32 0, %v11842_v4 }
 0x3f2   :  { %6986 = vmatpush1.bf16.msra.mxu0 %v8933_v6  ;;  %v6088_v6 = vld [vmem:[%s11977_s7] sm:$0x3] }
 0x3f3   :  { %6987 = vmatprep.subr.bf16.mxu0 %v8938_v55  ;;  %v11851_v55 = vsub.s32 1, %v11842_v4 }
 0x3f6   :  { %6988 = vmatpush1.bf16.msra.mxu0 %v8936_v25  ;;  %v6093_v25 = vrot.slane %v6088_v6, %v11845_v14 }
 0x3f7   :  { %6989 = vmatprep.subr.bf16.mxu0 %v8941_v5 }
 0x3fa   :  { %6990 = vmatpush1.bf16.msra.mxu0 %v8939_v59 }
 0x3fb   :  { %6991 = vmatprep.subr.bf16.mxu0 %v8944_v63 }
 0x3fe   :  { %6992 = vmatpush1.bf16.msra.mxu0 %v8942_v8 }
 0x3ff   :  { %6993 = vmatprep.subr.bf16.mxu0 %v8947_v32 }
 0x402   :  { %6994 = vmatpush1.bf16.msra.mxu0 %v8945_v53 }
 0x403   :  { %6995 = vmatprep.subr.bf16.mxu0 %v8950_v15 }
 0x406   :  { %6996 = vmatpush1.bf16.msra.mxu0 %v8948_v58 }
 0x407   :  { %6997 = vmatprep.subr.bf16.mxu0 %v8953_v23 }
 0x40a   :  { %6998 = vmatpush1.bf16.msra.mxu0 %v8951_v19 }
 0x40b   :  { %6999 = vmatprep.subr.bf16.mxu0 %v8956_v51 }
 0x40e   :  { %7000 = vmatpush1.bf16.msra.mxu0 %v8954_v11 }
 0x40f   :  { %7001 = vmatprep.subr.bf16.mxu0 %v8959_v60 }
 0x412   :  { %7002 = vmatpush1.bf16.msra.mxu0 %v8957_v62 }
 0x413   :  { %7003 = vmatprep.subr.bf16.mxu0 %v8962_v30 }
 0x416   :  { %7004 = vmatpush1.bf16.msra.mxu0 %v8960_v61 }
 0x417   :  { %7005 = vmatprep.subr.bf16.mxu0 %v8965_v13 }
 0x41a   :  { %7006 = vmatpush1.bf16.msra.mxu0 %v8963_v21 }
 0x41b   :  { %7007 = vmatprep.subr.bf16.mxu0 %v8968_v28 }
 0x41e   :  { %7008 = vmatpush1.bf16.msra.mxu0 %v8966_v22 }
 0x41f   :  { %7009 = vmatprep.subr.bf16.mxu0 %v8971_v56 }
 0x422   :  { %7010 = vmatpush1.bf16.msra.mxu0 %v8969_v29 }
 0x423   :  { %7032 = vmatprep.subr.bf16.mxu0 %v8974_v1 }
 0x425   :  { %7012 = vmatmul.mubr.bf16.vlgmr.msra.gmra.mrb[32].mxu0 %v11522_v31  ;;  %v8983_v31 = vld [vmem:[%s11976_s6 + $0x434] ss:$8 sps:$4 sm:$0xff]  }
 0x426   :  { %7021 = vmatprep.mubr.bf16.mxu0 %v11587_v12  ;;  %7033 = vmatpush1.bf16.msra.mxu0 %v8972_v27  ;;  %v8981_v12 = vld [vmem:[%s11976_s6 + $0x430] ss:$8 sps:$4 sm:$0xff]  }
 0x427   :  { %7034 = vmatprep.subr.bf16.mxu0 %v8977_v50 }
 0x42a   :  { %7035 = vmatpush1.bf16.msra.mxu0 %v8975_v10 }
 0x42b   :  { %7036 = vmatprep.subr.bf16.mxu0 %v8980_v20 }
 0x42d   :  { %7022 = vmatmul.mubr.bf16.gmra.mrb[36].mxu0 %v11578_v7  ;;  %v8989_v7 = vld [vmem:[%s11976_s6 + $0x454] ss:$8 sps:$4 sm:$0xff]  }
 0x42e   :  { %7037 = vmatpush1.bf16.msra.mxu0 %v8978_v2  ;;  %7064 = vmatprep.mubr.bf16.mxu0 %v9048_v54 }
 0x42f   :  { %7038 = vmatprep.subr.bf16.mxu0 %v8983_v31 }
 0x432   :  { %7039 = vmatpush1.bf16.msra.mxu0 %v8981_v12 }
 0x433   :  { %7040 = vmatprep.subr.bf16.mxu0 %v8986_v33 }
 0x436   :  { %7041 = vmatpush1.bf16.msra.mxu0 %v8984_v9 }
 0x437   :  { %7042 = vmatprep.subr.bf16.mxu0 %v8989_v7 }
 0x43a   :  { %7043 = vmatpush1.bf16.msra.mxu0 %v8987_v24 }
 0x43b   :  { %7044 = vmatprep.subr.bf16.mxu0 %v8992_v57 }
 0x43e   :  { %7045 = vmatpush1.bf16.msra.mxu0 %v8990_v0 }
 0x43f   :  { %7046 = vmatprep.subr.bf16.mxu0 %v8995_v52 }
 0x442   :  { %7047 = vmatpush1.bf16.msra.mxu0 %v8993_v17 }
 0x445   :  { %7065 = vmatmul.mubr.bf16.vlgmr.msra.gmra.mrb[32].mxu0 %v11548_v3  ;;  %v6097_v3 = vrot.slane %v6088_v6, %v11851_v55 }
 0x446   :  { %7074 = vmatprep.mubr.bf16.mxu0 %v9048_v54 }
 0x44d   :  { %7075 = vmatmul.mubr.bf16.gmra.mrb[36].mxu0 %v11596_v18  ;;  %v7093_v18 = vstv %s8204_s30 }
 0x518   :  { %v7066_v5 = vpop.f32.mrb[32].mxu0 }
 0x519   :  { %v8696_v59 = vadd.f32 %v7066_v5, %v6093_v25  ;;  %v7068_v63 = vpop.f32.mrb[33].mxu0 }
 0x51a   :  { %v8697_v8 = vadd.f32 %v7068_v63, %v6097_v3  ;;  %v7070_v32 = vpop.f32.mrb[34].mxu0 }
 0x51b   :  { %vm7085_vm8 = vcmp.gt.f32.partialorder %v8696_v59, 0.0  ;;  %v7094_v53 = vmul.f32 %v8696_v59, %v7093_v18  ;;  %v8698_v15 = vadd.f32 %v7070_v32, %v6093_v25  ;;  %v7072_v58 = vpop.f32.mrb[35].mxu0 }
 0x51c   :  { %vm7086_vm10 = vcmp.gt.f32.partialorder %v8697_v8, 0.0  ;;  %v7095_v23 = vmul.f32 %v8697_v8, %v7093_v18  ;;  %v8699_v19 = vadd.f32 %v7072_v58, %v6097_v3 }
 0x51d   :  { %v7102_v51 = vsel %vm7085_vm8, %v8696_v59, %v7094_v53  ;;  %vm7087_vm11 = vcmp.gt.f32.partialorder %v8698_v15, 0.0  ;;  %v7096_v11 = vmul.f32 %v8698_v15, %v7093_v18 }
 0x51e   :  { %v11855_v60 = vpack.c.bf16 %v7102_v51, %v7102_v51  ;;  %v7103_v62 = vsel %vm7086_vm10, %v8697_v8, %v7095_v23  ;;  %vm7088_vm12 = vcmp.gt.f32.partialorder %v8699_v19, 0.0  ;;  %v7097_v30 = vmul.f32 %v8699_v19, %v7093_v18 }
 0x51f   :  { %v7111_v61 = vpack.c.bf16 %v7103_v62, %v7103_v62  ;;  %v7104_v13 = vsel %vm7087_vm11, %v8698_v15, %v7096_v11 }
 0x520   :  { %v11857_v21 = vpack.c.bf16 %v7104_v13, %v7104_v13  ;;  %v7105_v28 = vsel %vm7088_vm12, %v8699_v19, %v7097_v30  ;;  %v7076_v22 = vpop.f32.mrb[36].mxu0 }
 0x521   :  { %v11859_v56 = vpack.c.bf16 %v7105_v28, %v7105_v28  ;;  %v8700_v29 = vadd.f32 %v7076_v22, %v6093_v25  ;;  %v7078_v1 = vpop.f32.mrb[37].mxu0 }
 0x522   :  { %v8701_v27 = vadd.f32 %v7078_v1, %v6097_v3  ;;  %v7080_v50 = vpop.f32.mrb[38].mxu0 }
 0x523   :  { %vm7089_vm15 = vcmp.gt.f32.partialorder %v8700_v29, 0.0  ;;  %v7098_v10 = vmul.f32 %v8700_v29, %v7093_v18  ;;  %v8702_v20 = vadd.f32 %v7080_v50, %v6093_v25  ;;  %v7082_v2 = vpop.f32.mrb[39].mxu0 }
 0x524   :  { %vm7090_vm13 = vcmp.gt.f32.partialorder %v8701_v27, 0.0  ;;  %v7099_v31 = vmul.f32 %v8701_v27, %v7093_v18  ;;  %v8703_v12 = vadd.f32 %v7082_v2, %v6097_v3 }
 0x525   :  { %v7106_v54 = vsel %vm7089_vm15, %v8700_v29, %v7098_v10  ;;  %vm7091_vm14 = vcmp.gt.f32.partialorder %v8702_v20, 0.0  ;;  %v7100_v33 = vmul.f32 %v8702_v20, %v7093_v18 }
 0x526   :  { %v11861_v9 = vpack.c.bf16 %v7106_v54, %v7106_v54  ;;  %v7107_v7 = vsel %vm7090_vm13, %v8701_v27, %v7099_v31  ;;  %vm7092_vm0 = vcmp.gt.f32.partialorder %v8703_v12, 0.0  ;;  %v7101_v24 = vmul.f32 %v8703_v12, %v7093_v18 }
 0x527   :  { %v11863_v57 = vpack.c.bf16 %v7107_v7, %v7107_v7  ;;  %v7108_v0 = vsel %vm7091_vm14, %v8702_v20, %v7100_v33 }
 0x528   :  { %v11865_v52 = vpack.c.bf16 %v7108_v0, %v7108_v0  ;;  %v7109_v17 = vsel %vm7092_vm0, %v8703_v12, %v7101_v24 }
 0x529   :  { %v11867_v16 = vpack.c.bf16 %v7109_v17, %v7109_v17 }
 0x52a   :  { %9038 = dma.done.wait [#allocation5], 32768 }
 0x52b   :  { %9039 = vsyncadd [#allocation5], 4294934528 }
 0x52c   :  { %9040 = dma.done.wait [#allocation5 + $0x1], 8192 }
 0x52d   :  { %9041 = vsyncadd [#allocation5 + $0x1], 4294959104 }
 0x52e   :  { %9042 = dma.done.wait [#allocation5 + $0x2], 2048 }
 0x52f   :  { %9043 = vsyncadd [#allocation5 + $0x2], 4294965248  ;;  %7440 = vmatprep.mubr.bf16.mxu1 %v7111_v61  ;;  %7604 = vmatprep.mubr.bf16.mxu0 %v7111_v61  ;;  %v7131_v6 = vld [vmem:[#allocation2 + $0x8] sm:$0xff]  ;;  %v7133_v25 = vld [vmem:[#allocation2 + $0x18] sm:$0xff] }
 0x530   :  { %v7130_v3 = vld [vmem:[#allocation2] sm:$0xff]  ;;  %7408 = vmatprep.subr.bf16.mxu1 %v7131_v6  ;;  %7572 = vmatprep.subr.bf16.mxu0 %v7133_v25  ;;  %v7132_v5 = vld [vmem:[#allocation2 + $0x10] sm:$0xff]  ;;  %v7135_v18 = vld [vmem:[#allocation2 + $0x28] sm:$0xff] }
 0x531   :  { %v7137_v59 = vld [vmem:[#allocation2 + $0x38] sm:$0xff]  ;;  %7409 = vmatpush1.bf16.msra.mxu1 %v7130_v3  ;;  %7573 = vmatpush1.bf16.msra.mxu0 %v7132_v5  ;;  %v7134_v63 = vld [vmem:[#allocation2 + $0x20] sm:$0xff]  ;;  %v7136_v8 = vld [vmem:[#allocation2 + $0x30] sm:$0xff] }
 0x532   :  { %7410 = vmatprep.subr.bf16.mxu1 %v7135_v18  ;;  %7574 = vmatprep.subr.bf16.mxu0 %v7137_v59  ;;  %v7139_v32 = vld [vmem:[#allocation2 + $0x48] sm:$0xff]  ;;  %v7141_v53 = vld [vmem:[#allocation2 + $0x58] sm:$0xff]  ;;  %v7138_v15 = vld [vmem:[#allocation2 + $0x40] sm:$0xff] }
 0x533   :  { %v7140_v58 = vld [vmem:[#allocation2 + $0x50] sm:$0xff]  ;;  %v7143_v23 = vld [vmem:[#allocation2 + $0x68] sm:$0xff]  ;;  %v7145_v19 = vld [vmem:[#allocation2 + $0x78] sm:$0xff] }
 0x534   :  { %v7142_v51 = vld [vmem:[#allocation2 + $0x60] sm:$0xff]  ;;  %v7144_v11 = vld [vmem:[#allocation2 + $0x70] sm:$0xff]  ;;  %v7147_v62 = vld [vmem:[#allocation2 + $0x88] sm:$0xff] }
 0x535   :  { %7411 = vmatpush1.bf16.msra.mxu1 %v7134_v63  ;;  %7575 = vmatpush1.bf16.msra.mxu0 %v7136_v8  ;;  %v7149_v30 = vld [vmem:[#allocation2 + $0x98] sm:$0xff]  ;;  %v7146_v61 = vld [vmem:[#allocation2 + $0x80] sm:$0xff]  ;;  %v7148_v13 = vld [vmem:[#allocation2 + $0x90] sm:$0xff] }
 0x536   :  { %7412 = vmatprep.subr.bf16.mxu1 %v7139_v32  ;;  %7576 = vmatprep.subr.bf16.mxu0 %v7141_v53  ;;  %v7151_v28 = vld [vmem:[#allocation2 + $0xa8] sm:$0xff]  ;;  %v7153_v22 = vld [vmem:[#allocation2 + $0xb8] sm:$0xff]  ;;  %v7150_v29 = vld [vmem:[#allocation2 + $0xa0] sm:$0xff] }
 0x537   :  { %v7152_v1 = vld [vmem:[#allocation2 + $0xb0] sm:$0xff]  ;;  %v7155_v27 = vld [vmem:[#allocation2 + $0xc8] sm:$0xff]  ;;  %v7157_v50 = vld [vmem:[#allocation2 + $0xd8] sm:$0xff] }
 0x538   :  { %v7154_v10 = vld [vmem:[#allocation2 + $0xc0] sm:$0xff]  ;;  %v7156_v20 = vld [vmem:[#allocation2 + $0xd0] sm:$0xff]  ;;  %v7159_v2 = vld [vmem:[#allocation2 + $0xe8] sm:$0xff] }
 0x539   :  { %7413 = vmatpush1.bf16.msra.mxu1 %v7138_v15  ;;  %7577 = vmatpush1.bf16.msra.mxu0 %v7140_v58  ;;  %v7161_v31 = vld [vmem:[#allocation2 + $0xf8] sm:$0xff]  ;;  %v7158_v12 = vld [vmem:[#allocation2 + $0xe0] sm:$0xff]  ;;  %v7160_v54 = vld [vmem:[#allocation2 + $0xf0] sm:$0xff] }
 0x53a   :  { %7414 = vmatprep.subr.bf16.mxu1 %v7143_v23  ;;  %7578 = vmatprep.subr.bf16.mxu0 %v7145_v19  ;;  %v7163_v33 = vld [vmem:[#allocation2 + $0x108] sm:$0xff]  ;;  %v7165_v7 = vld [vmem:[#allocation2 + $0x118] sm:$0xff]  ;;  %v7162_v24 = vld [vmem:[#allocation2 + $0x100] sm:$0xff] }
 0x53b   :  { %v7164_v0 = vld [vmem:[#allocation2 + $0x110] sm:$0xff]  ;;  %v7167_v17 = vld [vmem:[#allocation2 + $0x128] sm:$0xff]  ;;  %v7169_v6 = vld [vmem:[#allocation2 + $0x138] sm:$0xff] }
 0x53c   :  { %v7166_v25 = vld [vmem:[#allocation2 + $0x120] sm:$0xff]  ;;  %v7168_v3 = vld [vmem:[#allocation2 + $0x130] sm:$0xff]  ;;  %v7171_v5 = vld [vmem:[#allocation2 + $0x148] sm:$0xff] }
 0x53d   :  { %7415 = vmatpush1.bf16.msra.mxu1 %v7142_v51  ;;  %7579 = vmatpush1.bf16.msra.mxu0 %v7144_v11  ;;  %v7173_v18 = vld [vmem:[#allocation2 + $0x158] sm:$0xff]  ;;  %v7170_v59 = vld [vmem:[#allocation2 + $0x140] sm:$0xff]  ;;  %v7172_v63 = vld [vmem:[#allocation2 + $0x150] sm:$0xff] }
 0x53e   :  { %7416 = vmatprep.subr.bf16.mxu1 %v7147_v62  ;;  %7580 = vmatprep.subr.bf16.mxu0 %v7149_v30  ;;  %v7175_v8 = vld [vmem:[#allocation2 + $0x168] sm:$0xff]  ;;  %v7177_v32 = vld [vmem:[#allocation2 + $0x178] sm:$0xff]  ;;  %v7174_v53 = vld [vmem:[#allocation2 + $0x160] sm:$0xff] }
 0x53f   :  { %v7176_v15 = vld [vmem:[#allocation2 + $0x170] sm:$0xff]  ;;  %v7179_v58 = vld [vmem:[#allocation2 + $0x188] sm:$0xff]  ;;  %v7181_v23 = vld [vmem:[#allocation2 + $0x198] sm:$0xff] }
 0x540   :  { %v7178_v19 = vld [vmem:[#allocation2 + $0x180] sm:$0xff]  ;;  %v7180_v51 = vld [vmem:[#allocation2 + $0x190] sm:$0xff]  ;;  %v7183_v11 = vld [vmem:[#allocation2 + $0x1a8] sm:$0xff] }
 0x541   :  { %7417 = vmatpush1.bf16.msra.mxu1 %v7146_v61  ;;  %7581 = vmatpush1.bf16.msra.mxu0 %v7148_v13  ;;  %v7185_v62 = vld [vmem:[#allocation2 + $0x1b8] sm:$0xff]  ;;  %v7182_v30 = vld [vmem:[#allocation2 + $0x1a0] sm:$0xff]  ;;  %v7184_v61 = vld [vmem:[#allocation2 + $0x1b0] sm:$0xff] }
 0x542   :  { %7418 = vmatprep.subr.bf16.mxu1 %v7151_v28  ;;  %7582 = vmatprep.subr.bf16.mxu0 %v7153_v22  ;;  %v7187_v13 = vld [vmem:[#allocation2 + $0x1c8] sm:$0xff]  ;;  %v7189_v28 = vld [vmem:[#allocation2 + $0x1d8] sm:$0xff]  ;;  %v7186_v22 = vld [vmem:[#allocation2 + $0x1c0] sm:$0xff] }
 0x545   :  { %7419 = vmatpush1.bf16.msra.mxu1 %v7150_v29  ;;  %7583 = vmatpush1.bf16.msra.mxu0 %v7152_v1  ;;  %v7188_v29 = vld [vmem:[#allocation2 + $0x1d0] sm:$0xff]  ;;  %v7191_v1 = vld [vmem:[#allocation2 + $0x1e8] sm:$0xff] }
 0x546   :  { %7420 = vmatprep.subr.bf16.mxu1 %v7155_v27  ;;  %7584 = vmatprep.subr.bf16.mxu0 %v7157_v50  ;;  %v7193_v27 = vld [vmem:[#allocation2 + $0x1f8] sm:$0xff]  ;;  %v7190_v50 = vld [vmem:[#allocation2 + $0x1e0] sm:$0xff] }
 0x549   :  { %7421 = vmatpush1.bf16.msra.mxu1 %v7154_v10  ;;  %7585 = vmatpush1.bf16.msra.mxu0 %v7156_v20  ;;  %v7192_v10 = vld [vmem:[#allocation2 + $0x1f0] sm:$0xff]  ;;  %v7195_v20 = vld [vmem:[#allocation2 + $0x208] sm:$0xff] }
 0x54a   :  { %7422 = vmatprep.subr.bf16.mxu1 %v7159_v2  ;;  %7586 = vmatprep.subr.bf16.mxu0 %v7161_v31  ;;  %v7197_v2 = vld [vmem:[#allocation2 + $0x218] sm:$0xff]  ;;  %v7194_v31 = vld [vmem:[#allocation2 + $0x200] sm:$0xff] }
 0x54d   :  { %7423 = vmatpush1.bf16.msra.mxu1 %v7158_v12  ;;  %7587 = vmatpush1.bf16.msra.mxu0 %v7160_v54  ;;  %v7196_v12 = vld [vmem:[#allocation2 + $0x210] sm:$0xff]  ;;  %v7199_v54 = vld [vmem:[#allocation2 + $0x228] sm:$0xff] }
 0x54e   :  { %7424 = vmatprep.subr.bf16.mxu1 %v7163_v33  ;;  %7588 = vmatprep.subr.bf16.mxu0 %v7165_v7  ;;  %v7201_v33 = vld [vmem:[#allocation2 + $0x238] sm:$0xff]  ;;  %v7198_v7 = vld [vmem:[#allocation2 + $0x220] sm:$0xff] }
 0x551   :  { %7425 = vmatpush1.bf16.msra.mxu1 %v7162_v24  ;;  %7589 = vmatpush1.bf16.msra.mxu0 %v7164_v0  ;;  %v7200_v24 = vld [vmem:[#allocation2 + $0x230] sm:$0xff]  ;;  %v7203_v0 = vld [vmem:[#allocation2 + $0x248] sm:$0xff] }
 0x552   :  { %7426 = vmatprep.subr.bf16.mxu1 %v7167_v17  ;;  %7590 = vmatprep.subr.bf16.mxu0 %v7169_v6  ;;  %v7205_v17 = vld [vmem:[#allocation2 + $0x258] sm:$0xff]  ;;  %v7202_v6 = vld [vmem:[#allocation2 + $0x240] sm:$0xff] }
 0x555   :  { %7427 = vmatpush1.bf16.msra.mxu1 %v7166_v25  ;;  %7591 = vmatpush1.bf16.msra.mxu0 %v7168_v3  ;;  %v7204_v25 = vld [vmem:[#allocation2 + $0x250] sm:$0xff]  ;;  %v7207_v3 = vld [vmem:[#allocation2 + $0x268] sm:$0xff] }
 0x556   :  { %7428 = vmatprep.subr.bf16.mxu1 %v7171_v5  ;;  %7592 = vmatprep.subr.bf16.mxu0 %v7173_v18  ;;  %v7206_v5 = vld [vmem:[#allocation2 + $0x260] sm:$0xff]  ;;  %v7208_v18 = vld [vmem:[#allocation2 + $0x270] sm:$0xff] }
 0x559   :  { %7429 = vmatpush1.bf16.msra.mxu1 %v7170_v59  ;;  %7593 = vmatpush1.bf16.msra.mxu0 %v7172_v63  ;;  %v7211_v59 = vld [vmem:[#allocation2 + $0x288] sm:$0xff]  ;;  %v7213_v63 = vld [vmem:[#allocation2 + $0x298] sm:$0xff] }
 0x55a   :  { %7430 = vmatprep.subr.bf16.mxu1 %v7175_v8  ;;  %7594 = vmatprep.subr.bf16.mxu0 %v7177_v32  ;;  %v7212_v8 = vld [vmem:[#allocation2 + $0x290] sm:$0xff]  ;;  %v7215_v32 = vld [vmem:[#allocation2 + $0x2a8] sm:$0xff] }
 0x55d   :  { %7431 = vmatpush1.bf16.msra.mxu1 %v7174_v53  ;;  %7595 = vmatpush1.bf16.msra.mxu0 %v7176_v15  ;;  %v7217_v53 = vld [vmem:[#allocation2 + $0x2b8] sm:$0xff]  ;;  %v7214_v15 = vld [vmem:[#allocation2 + $0x2a0] sm:$0xff] }
 0x55e   :  { %7432 = vmatprep.subr.bf16.mxu1 %v7179_v58  ;;  %7596 = vmatprep.subr.bf16.mxu0 %v7181_v23  ;;  %v7216_v58 = vld [vmem:[#allocation2 + $0x2b0] sm:$0xff]  ;;  %v7219_v23 = vld [vmem:[#allocation2 + $0x2c8] sm:$0xff] }
 0x561   :  { %7433 = vmatpush1.bf16.msra.mxu1 %v7178_v19  ;;  %7597 = vmatpush1.bf16.msra.mxu0 %v7180_v51  ;;  %v7221_v19 = vld [vmem:[#allocation2 + $0x2d8] sm:$0xff]  ;;  %v7218_v51 = vld [vmem:[#allocation2 + $0x2c0] sm:$0xff] }
 0x562   :  { %7434 = vmatprep.subr.bf16.mxu1 %v7183_v11  ;;  %7598 = vmatprep.subr.bf16.mxu0 %v7185_v62  ;;  %v7220_v11 = vld [vmem:[#allocation2 + $0x2d0] sm:$0xff]  ;;  %v7223_v62 = vld [vmem:[#allocation2 + $0x2e8] sm:$0xff] }
 0x565   :  { %7435 = vmatpush1.bf16.msra.mxu1 %v7182_v30  ;;  %7599 = vmatpush1.bf16.msra.mxu0 %v7184_v61  ;;  %v7225_v30 = vld [vmem:[#allocation2 + $0x2f8] sm:$0xff]  ;;  %v7222_v61 = vld [vmem:[#allocation2 + $0x2e0] sm:$0xff] }
 0x566   :  { %7436 = vmatprep.subr.bf16.mxu1 %v7187_v13  ;;  %7600 = vmatprep.subr.bf16.mxu0 %v7189_v28  ;;  %v7224_v13 = vld [vmem:[#allocation2 + $0x2f0] sm:$0xff]  ;;  %v7227_v28 = vld [vmem:[#allocation2 + $0x308] sm:$0xff] }
 0x569   :  { %7437 = vmatpush1.bf16.msra.mxu1 %v7186_v22  ;;  %7601 = vmatpush1.bf16.msra.mxu0 %v7188_v29  ;;  %v7229_v22 = vld [vmem:[#allocation2 + $0x318] sm:$0xff]  ;;  %v7226_v29 = vld [vmem:[#allocation2 + $0x300] sm:$0xff] }
 0x56a   :  { %7438 = vmatprep.subr.bf16.mxu1 %v7191_v1  ;;  %7602 = vmatprep.subr.bf16.mxu0 %v7193_v27  ;;  %v7228_v1 = vld [vmem:[#allocation2 + $0x310] sm:$0xff]  ;;  %v7231_v27 = vld [vmem:[#allocation2 + $0x328] sm:$0xff] }
 0x56d   :  { %7439 = vmatpush1.bf16.msra.mxu1 %v7190_v50  ;;  %7603 = vmatpush1.bf16.msra.mxu0 %v7192_v10  ;;  %v7233_v50 = vld [vmem:[#allocation2 + $0x338] sm:$0xff]  ;;  %v7230_v10 = vld [vmem:[#allocation2 + $0x320] sm:$0xff] }
 0x56e   :  { %7449 = vmatprep.subr.bf16.mxu1 %v7195_v20  ;;  %7613 = vmatprep.subr.bf16.mxu0 %v7197_v2  ;;  %v7232_v20 = vld [vmem:[#allocation2 + $0x330] sm:$0xff]  ;;  %v7235_v2 = vld [vmem:[#allocation2 + $0x348] sm:$0xff] }
 0x570   :  { %7441 = vmatmul.mubr.bf16.vlgmr.msra.gmra.mrb[56].mxu1 %v11855_v60  ;;  %7605 = vmatmul.mubr.bf16.vlgmr.msra.gmra.mrb[40].mxu0 %v11855_v60  ;;  %v7209_v60 = vld [vmem:[#allocation2 + $0x278] sm:$0xff] }
 0x571   :  { %7450 = vmatpush1.bf16.msra.mxu1 %v7194_v31  ;;  %7614 = vmatpush1.bf16.msra.mxu0 %v7196_v12  ;;  %v7237_v31 = vld [vmem:[#allocation2 + $0x358] sm:$0xff]  ;;  %v7234_v12 = vld [vmem:[#allocation2 + $0x340] sm:$0xff] }
 0x572   :  { %7451 = vmatprep.subr.bf16.mxu1 %v7199_v54  ;;  %7615 = vmatprep.subr.bf16.mxu0 %v7201_v33  ;;  %v7236_v54 = vld [vmem:[#allocation2 + $0x350] sm:$0xff]  ;;  %v7239_v33 = vld [vmem:[#allocation2 + $0x368] sm:$0xff] }
 0x573   :  { %7481 = vmatprep.mubr.bf16.mxu1 %v11859_v56  ;;  %7645 = vmatprep.mubr.bf16.mxu0 %v11859_v56  ;;  %v7210_v56 = vld [vmem:[#allocation2 + $0x280] sm:$0xff] }
 0x575   :  { %7452 = vmatpush1.bf16.msra.mxu1 %v7198_v7  ;;  %7616 = vmatpush1.bf16.msra.mxu0 %v7200_v24  ;;  %v7241_v7 = vld [vmem:[#allocation2 + $0x378] sm:$0xff]  ;;  %v7238_v24 = vld [vmem:[#allocation2 + $0x360] sm:$0xff] }
 0x576   :  { %7453 = vmatprep.subr.bf16.mxu1 %v7203_v0  ;;  %7617 = vmatprep.subr.bf16.mxu0 %v7205_v17  ;;  %v7240_v0 = vld [vmem:[#allocation2 + $0x370] sm:$0xff]  ;;  %v7243_v17 = vld [vmem:[#allocation2 + $0x388] sm:$0xff] }
 0x579   :  { %7454 = vmatpush1.bf16.msra.mxu1 %v7202_v6  ;;  %7618 = vmatpush1.bf16.msra.mxu0 %v7204_v25  ;;  %v7245_v6 = vld [vmem:[#allocation2 + $0x398] sm:$0xff]  ;;  %v7242_v25 = vld [vmem:[#allocation2 + $0x380] sm:$0xff] }
 0x57a   :  { %7455 = vmatprep.subr.bf16.mxu1 %v7207_v3  ;;  %7619 = vmatprep.subr.bf16.mxu0 %v7209_v60  ;;  %v7244_v3 = vld [vmem:[#allocation2 + $0x390] sm:$0xff]  ;;  %v7247_v60 = vld [vmem:[#allocation2 + $0x3a8] sm:$0xff] }
 0x57d   :  { %7456 = vmatpush1.bf16.msra.mxu1 %v7206_v5  ;;  %7620 = vmatpush1.bf16.msra.mxu0 %v7208_v18  ;;  %v7249_v5 = vld [vmem:[#allocation2 + $0x3b8] sm:$0xff]  ;;  %v7246_v18 = vld [vmem:[#allocation2 + $0x3a0] sm:$0xff] }
 0x57e   :  { %7457 = vmatprep.subr.bf16.mxu1 %v7211_v59  ;;  %7621 = vmatprep.subr.bf16.mxu0 %v7213_v63  ;;  %v7248_v59 = vld [vmem:[#allocation2 + $0x3b0] sm:$0xff]  ;;  %v7251_v63 = vld [vmem:[#allocation2 + $0x3c8] sm:$0xff] }
 0x581   :  { %7458 = vmatpush1.bf16.msra.mxu1 %v7210_v56  ;;  %7622 = vmatpush1.bf16.msra.mxu0 %v7212_v8  ;;  %v7253_v56 = vld [vmem:[#allocation2 + $0x3d8] sm:$0xff]  ;;  %v7250_v8 = vld [vmem:[#allocation2 + $0x3c0] sm:$0xff] }
 0x582   :  { %7459 = vmatprep.subr.bf16.mxu1 %v7215_v32  ;;  %7623 = vmatprep.subr.bf16.mxu0 %v7217_v53  ;;  %v7252_v32 = vld [vmem:[#allocation2 + $0x3d0] sm:$0xff]  ;;  %v7255_v53 = vld [vmem:[#allocation2 + $0x3e8] sm:$0xff] }
 0x585   :  { %7460 = vmatpush1.bf16.msra.mxu1 %v7214_v15  ;;  %7624 = vmatpush1.bf16.msra.mxu0 %v7216_v58  ;;  %v7257_v15 = vld [vmem:[#allocation2 + $0x3f8] sm:$0xff]  ;;  %v7254_v58 = vld [vmem:[#allocation2 + $0x3e0] sm:$0xff] }
 0x586   :  { %7461 = vmatprep.subr.bf16.mxu1 %v7219_v23  ;;  %7625 = vmatprep.subr.bf16.mxu0 %v7221_v19  ;;  %v7256_v23 = vld [vmem:[#allocation2 + $0x3f0] sm:$0xff]  ;;  %v7259_v19 = vld [vmem:[#allocation2 + $0x408] sm:$0xff] }
 0x589   :  { %7462 = vmatpush1.bf16.msra.mxu1 %v7218_v51  ;;  %7626 = vmatpush1.bf16.msra.mxu0 %v7220_v11  ;;  %v7261_v51 = vld [vmem:[#allocation2 + $0x418] sm:$0xff]  ;;  %v7258_v11 = vld [vmem:[#allocation2 + $0x400] sm:$0xff] }
 0x58a   :  { %7463 = vmatprep.subr.bf16.mxu1 %v7223_v62  ;;  %7627 = vmatprep.subr.bf16.mxu0 %v7225_v30  ;;  %v7260_v62 = vld [vmem:[#allocation2 + $0x410] sm:$0xff]  ;;  %v7263_v30 = vld [vmem:[#allocation2 + $0x428] sm:$0xff] }
 0x58d   :  { %7464 = vmatpush1.bf16.msra.mxu1 %v7222_v61  ;;  %7628 = vmatpush1.bf16.msra.mxu0 %v7224_v13  ;;  %v7265_v61 = vld [vmem:[#allocation2 + $0x438] sm:$0xff]  ;;  %v7262_v13 = vld [vmem:[#allocation2 + $0x420] sm:$0xff] }
 0x58e   :  { %7465 = vmatprep.subr.bf16.mxu1 %v7227_v28  ;;  %7629 = vmatprep.subr.bf16.mxu0 %v7229_v22  ;;  %v7264_v28 = vld [vmem:[#allocation2 + $0x430] sm:$0xff]  ;;  %v7267_v22 = vld [vmem:[#allocation2 + $0x448] sm:$0xff] }
 0x591   :  { %7466 = vmatpush1.bf16.msra.mxu1 %v7226_v29  ;;  %7630 = vmatpush1.bf16.msra.mxu0 %v7228_v1  ;;  %v7269_v29 = vld [vmem:[#allocation2 + $0x458] sm:$0xff]  ;;  %v7266_v1 = vld [vmem:[#allocation2 + $0x440] sm:$0xff] }
 0x592   :  { %7467 = vmatprep.subr.bf16.mxu1 %v7231_v27  ;;  %7631 = vmatprep.subr.bf16.mxu0 %v7233_v50  ;;  %v7268_v27 = vld [vmem:[#allocation2 + $0x450] sm:$0xff]  ;;  %v7271_v50 = vld [vmem:[#allocation2 + $0x468] sm:$0xff] }
 0x595   :  { %7468 = vmatpush1.bf16.msra.mxu1 %v7230_v10  ;;  %7632 = vmatpush1.bf16.msra.mxu0 %v7232_v20  ;;  %v7270_v10 = vld [vmem:[#allocation2 + $0x460] sm:$0xff]  ;;  %v7272_v20 = vld [vmem:[#allocation2 + $0x470] sm:$0xff] }
 0x596   :  { %7469 = vmatprep.subr.bf16.mxu1 %v7235_v2  ;;  %7633 = vmatprep.subr.bf16.mxu0 %v7237_v31  ;;  %v7275_v2 = vld [vmem:[#allocation2 + $0x488] sm:$0xff]  ;;  %v7277_v31 = vld [vmem:[#allocation2 + $0x498] sm:$0xff] }
 0x599   :  { %7470 = vmatpush1.bf16.msra.mxu1 %v7234_v12  ;;  %7634 = vmatpush1.bf16.msra.mxu0 %v7236_v54  ;;  %v7276_v12 = vld [vmem:[#allocation2 + $0x490] sm:$0xff]  ;;  %v7279_v54 = vld [vmem:[#allocation2 + $0x4a8] sm:$0xff] }
 0x59a   :  { %7471 = vmatprep.subr.bf16.mxu1 %v7239_v33  ;;  %7635 = vmatprep.subr.bf16.mxu0 %v7241_v7  ;;  %v7281_v33 = vld [vmem:[#allocation2 + $0x4b8] sm:$0xff]  ;;  %v7278_v7 = vld [vmem:[#allocation2 + $0x4a0] sm:$0xff] }
 0x59d   :  { %7472 = vmatpush1.bf16.msra.mxu1 %v7238_v24  ;;  %7636 = vmatpush1.bf16.msra.mxu0 %v7240_v0  ;;  %v7280_v24 = vld [vmem:[#allocation2 + $0x4b0] sm:$0xff]  ;;  %v7283_v0 = vld [vmem:[#allocation2 + $0x4c8] sm:$0xff] }
 0x59e   :  { %7473 = vmatprep.subr.bf16.mxu1 %v7243_v17  ;;  %7637 = vmatprep.subr.bf16.mxu0 %v7245_v6  ;;  %v7285_v17 = vld [vmem:[#allocation2 + $0x4d8] sm:$0xff]  ;;  %v7282_v6 = vld [vmem:[#allocation2 + $0x4c0] sm:$0xff] }
 0x5a1   :  { %7474 = vmatpush1.bf16.msra.mxu1 %v7242_v25  ;;  %7638 = vmatpush1.bf16.msra.mxu0 %v7244_v3  ;;  %v7284_v25 = vld [vmem:[#allocation2 + $0x4d0] sm:$0xff]  ;;  %v7287_v3 = vld [vmem:[#allocation2 + $0x4e8] sm:$0xff] }
 0x5a2   :  { %7475 = vmatprep.subr.bf16.mxu1 %v7247_v60  ;;  %7639 = vmatprep.subr.bf16.mxu0 %v7249_v5  ;;  %v7289_v60 = vld [vmem:[#allocation2 + $0x4f8] sm:$0xff]  ;;  %v7286_v5 = vld [vmem:[#allocation2 + $0x4e0] sm:$0xff] }
 0x5a5   :  { %7476 = vmatpush1.bf16.msra.mxu1 %v7246_v18  ;;  %7640 = vmatpush1.bf16.msra.mxu0 %v7248_v59  ;;  %v7288_v18 = vld [vmem:[#allocation2 + $0x4f0] sm:$0xff]  ;;  %v7291_v59 = vld [vmem:[#allocation2 + $0x508] sm:$0xff] }
 0x5a6   :  { %7477 = vmatprep.subr.bf16.mxu1 %v7251_v63  ;;  %7641 = vmatprep.subr.bf16.mxu0 %v7253_v56  ;;  %v7293_v63 = vld [vmem:[#allocation2 + $0x518] sm:$0xff]  ;;  %v7290_v56 = vld [vmem:[#allocation2 + $0x500] sm:$0xff] }
 0x5a9   :  { %7478 = vmatpush1.bf16.msra.mxu1 %v7250_v8  ;;  %7642 = vmatpush1.bf16.msra.mxu0 %v7252_v32  ;;  %v7292_v8 = vld [vmem:[#allocation2 + $0x510] sm:$0xff]  ;;  %v7295_v32 = vld [vmem:[#allocation2 + $0x528] sm:$0xff] }
 0x5aa   :  { %7479 = vmatprep.subr.bf16.mxu1 %v7255_v53  ;;  %7643 = vmatprep.subr.bf16.mxu0 %v7257_v15  ;;  %v7297_v53 = vld [vmem:[#allocation2 + $0x538] sm:$0xff]  ;;  %v7294_v15 = vld [vmem:[#allocation2 + $0x520] sm:$0xff] }
 0x5ad   :  { %7480 = vmatpush1.bf16.msra.mxu1 %v7254_v58  ;;  %7644 = vmatpush1.bf16.msra.mxu0 %v7256_v23  ;;  %v7296_v58 = vld [vmem:[#allocation2 + $0x530] sm:$0xff]  ;;  %v7299_v23 = vld [vmem:[#allocation2 + $0x548] sm:$0xff] }
 0x5ae   :  { %7490 = vmatprep.subr.bf16.mxu1 %v7259_v19  ;;  %7654 = vmatprep.subr.bf16.mxu0 %v7261_v51  ;;  %v7301_v19 = vld [vmem:[#allocation2 + $0x558] sm:$0xff]  ;;  %v7298_v51 = vld [vmem:[#allocation2 + $0x540] sm:$0xff] }
 0x5b0   :  { %7482 = vmatmul.mubr.bf16.vlgmr.msra.gmra.mrb[56].mxu1 %v11857_v21  ;;  %7646 = vmatmul.mubr.bf16.vlgmr.msra.gmra.mrb[40].mxu0 %v11857_v21  ;;  %v7273_v21 = vld [vmem:[#allocation2 + $0x478] sm:$0xff] }
 0x5b1   :  { %7491 = vmatpush1.bf16.msra.mxu1 %v7258_v11  ;;  %7655 = vmatpush1.bf16.msra.mxu0 %v7260_v62  ;;  %v7300_v11 = vld [vmem:[#allocation2 + $0x550] sm:$0xff]  ;;  %v7303_v62 = vld [vmem:[#allocation2 + $0x568] sm:$0xff] }
 0x5b2   :  { %7492 = vmatprep.subr.bf16.mxu1 %v7263_v30  ;;  %7656 = vmatprep.subr.bf16.mxu0 %v7265_v61  ;;  %v7305_v30 = vld [vmem:[#allocation2 + $0x578] sm:$0xff]  ;;  %v7302_v61 = vld [vmem:[#allocation2 + $0x560] sm:$0xff] }
 0x5b3   :  { %7522 = vmatprep.mubr.bf16.mxu1 %v11863_v57  ;;  %7686 = vmatprep.mubr.bf16.mxu0 %v11863_v57  ;;  %v7274_v57 = vld [vmem:[#allocation2 + $0x480] sm:$0xff] }
 0x5b5   :  { %7493 = vmatpush1.bf16.msra.mxu1 %v7262_v13  ;;  %7657 = vmatpush1.bf16.msra.mxu0 %v7264_v28  ;;  %v7304_v13 = vld [vmem:[#allocation2 + $0x570] sm:$0xff]  ;;  %v7307_v28 = vld [vmem:[#allocation2 + $0x588] sm:$0xff] }
 0x5b6   :  { %7494 = vmatprep.subr.bf16.mxu1 %v7267_v22  ;;  %7658 = vmatprep.subr.bf16.mxu0 %v7269_v29  ;;  %v7309_v22 = vld [vmem:[#allocation2 + $0x598] sm:$0xff]  ;;  %v7306_v29 = vld [vmem:[#allocation2 + $0x580] sm:$0xff] }
 0x5b9   :  { %7495 = vmatpush1.bf16.msra.mxu1 %v7266_v1  ;;  %7659 = vmatpush1.bf16.msra.mxu0 %v7268_v27  ;;  %v7308_v1 = vld [vmem:[#allocation2 + $0x590] sm:$0xff]  ;;  %v7311_v27 = vld [vmem:[#allocation2 + $0x5a8] sm:$0xff] }
 0x5ba   :  { %7496 = vmatprep.subr.bf16.mxu1 %v7271_v50  ;;  %7660 = vmatprep.subr.bf16.mxu0 %v7273_v21  ;;  %v7313_v50 = vld [vmem:[#allocation2 + $0x5b8] sm:$0xff]  ;;  %v7310_v21 = vld [vmem:[#allocation2 + $0x5a0] sm:$0xff] }
 0x5bd   :  { %7497 = vmatpush1.bf16.msra.mxu1 %v7270_v10  ;;  %7661 = vmatpush1.bf16.msra.mxu0 %v7272_v20  ;;  %v7312_v10 = vld [vmem:[#allocation2 + $0x5b0] sm:$0xff]  ;;  %v7315_v20 = vld [vmem:[#allocation2 + $0x5c8] sm:$0xff] }
 0x5be   :  { %7498 = vmatprep.subr.bf16.mxu1 %v7275_v2  ;;  %7662 = vmatprep.subr.bf16.mxu0 %v7277_v31  ;;  %v7317_v2 = vld [vmem:[#allocation2 + $0x5d8] sm:$0xff]  ;;  %v7314_v31 = vld [vmem:[#allocation2 + $0x5c0] sm:$0xff] }
 0x5c1   :  { %7499 = vmatpush1.bf16.msra.mxu1 %v7274_v57  ;;  %7663 = vmatpush1.bf16.msra.mxu0 %v7276_v12  ;;  %v7316_v57 = vld [vmem:[#allocation2 + $0x5d0] sm:$0xff]  ;;  %v7319_v12 = vld [vmem:[#allocation2 + $0x5e8] sm:$0xff] }
 0x5c2   :  { %7500 = vmatprep.subr.bf16.mxu1 %v7279_v54  ;;  %7664 = vmatprep.subr.bf16.mxu0 %v7281_v33  ;;  %v7321_v54 = vld [vmem:[#allocation2 + $0x5f8] sm:$0xff]  ;;  %v7318_v33 = vld [vmem:[#allocation2 + $0x5e0] sm:$0xff] }
 0x5c5   :  { %7501 = vmatpush1.bf16.msra.mxu1 %v7278_v7  ;;  %7665 = vmatpush1.bf16.msra.mxu0 %v7280_v24  ;;  %v7320_v7 = vld [vmem:[#allocation2 + $0x5f0] sm:$0xff]  ;;  %v7323_v24 = vld [vmem:[#allocation2 + $0x608] sm:$0xff] }
 0x5c6   :  { %7502 = vmatprep.subr.bf16.mxu1 %v7283_v0  ;;  %7666 = vmatprep.subr.bf16.mxu0 %v7285_v17  ;;  %v7325_v0 = vld [vmem:[#allocation2 + $0x618] sm:$0xff]  ;;  %v7322_v17 = vld [vmem:[#allocation2 + $0x600] sm:$0xff] }
 0x5c9   :  { %7503 = vmatpush1.bf16.msra.mxu1 %v7282_v6  ;;  %7667 = vmatpush1.bf16.msra.mxu0 %v7284_v25  ;;  %v7324_v6 = vld [vmem:[#allocation2 + $0x610] sm:$0xff]  ;;  %v7327_v25 = vld [vmem:[#allocation2 + $0x628] sm:$0xff] }
 0x5ca   :  { %7504 = vmatprep.subr.bf16.mxu1 %v7287_v3  ;;  %7668 = vmatprep.subr.bf16.mxu0 %v7289_v60  ;;  %v7329_v3 = vld [vmem:[#allocation2 + $0x638] sm:$0xff]  ;;  %v7326_v60 = vld [vmem:[#allocation2 + $0x620] sm:$0xff] }
 0x5cd   :  { %7505 = vmatpush1.bf16.msra.mxu1 %v7286_v5  ;;  %7669 = vmatpush1.bf16.msra.mxu0 %v7288_v18  ;;  %v7328_v5 = vld [vmem:[#allocation2 + $0x630] sm:$0xff]  ;;  %v7331_v18 = vld [vmem:[#allocation2 + $0x648] sm:$0xff] }
 0x5ce   :  { %7506 = vmatprep.subr.bf16.mxu1 %v7291_v59  ;;  %7670 = vmatprep.subr.bf16.mxu0 %v7293_v63  ;;  %v7333_v59 = vld [vmem:[#allocation2 + $0x658] sm:$0xff]  ;;  %v7330_v63 = vld [vmem:[#allocation2 + $0x640] sm:$0xff] }
 0x5d1   :  { %7507 = vmatpush1.bf16.msra.mxu1 %v7290_v56  ;;  %7671 = vmatpush1.bf16.msra.mxu0 %v7292_v8  ;;  %v7332_v56 = vld [vmem:[#allocation2 + $0x650] sm:$0xff]  ;;  %v7335_v8 = vld [vmem:[#allocation2 + $0x668] sm:$0xff] }
 0x5d2   :  { %7508 = vmatprep.subr.bf16.mxu1 %v7295_v32  ;;  %7672 = vmatprep.subr.bf16.mxu0 %v7297_v53  ;;  %v7334_v32 = vld [vmem:[#allocation2 + $0x660] sm:$0xff]  ;;  %v7336_v53 = vld [vmem:[#allocation2 + $0x670] sm:$0xff] }
 0x5d5   :  { %7509 = vmatpush1.bf16.msra.mxu1 %v7294_v15  ;;  %7673 = vmatpush1.bf16.msra.mxu0 %v7296_v58  ;;  %v7339_v15 = vld [vmem:[#allocation2 + $0x688] sm:$0xff]  ;;  %v7341_v58 = vld [vmem:[#allocation2 + $0x698] sm:$0xff] }
 0x5d6   :  { %7510 = vmatprep.subr.bf16.mxu1 %v7299_v23  ;;  %7674 = vmatprep.subr.bf16.mxu0 %v7301_v19  ;;  %v7340_v23 = vld [vmem:[#allocation2 + $0x690] sm:$0xff]  ;;  %v7343_v19 = vld [vmem:[#allocation2 + $0x6a8] sm:$0xff] }
 0x5d9   :  { %7511 = vmatpush1.bf16.msra.mxu1 %v7298_v51  ;;  %7675 = vmatpush1.bf16.msra.mxu0 %v7300_v11  ;;  %v7345_v51 = vld [vmem:[#allocation2 + $0x6b8] sm:$0xff]  ;;  %v7342_v11 = vld [vmem:[#allocation2 + $0x6a0] sm:$0xff] }
 0x5da   :  { %7512 = vmatprep.subr.bf16.mxu1 %v7303_v62  ;;  %7676 = vmatprep.subr.bf16.mxu0 %v7305_v30  ;;  %v7344_v62 = vld [vmem:[#allocation2 + $0x6b0] sm:$0xff]  ;;  %v7347_v30 = vld [vmem:[#allocation2 + $0x6c8] sm:$0xff] }
 0x5dd   :  { %7513 = vmatpush1.bf16.msra.mxu1 %v7302_v61  ;;  %7677 = vmatpush1.bf16.msra.mxu0 %v7304_v13  ;;  %v7349_v61 = vld [vmem:[#allocation2 + $0x6d8] sm:$0xff]  ;;  %v7346_v13 = vld [vmem:[#allocation2 + $0x6c0] sm:$0xff] }
 0x5de   :  { %7514 = vmatprep.subr.bf16.mxu1 %v7307_v28  ;;  %7678 = vmatprep.subr.bf16.mxu0 %v7309_v22  ;;  %v7348_v28 = vld [vmem:[#allocation2 + $0x6d0] sm:$0xff]  ;;  %v7351_v22 = vld [vmem:[#allocation2 + $0x6e8] sm:$0xff] }
 0x5e1   :  { %7515 = vmatpush1.bf16.msra.mxu1 %v7306_v29  ;;  %7679 = vmatpush1.bf16.msra.mxu0 %v7308_v1  ;;  %v7353_v29 = vld [vmem:[#allocation2 + $0x6f8] sm:$0xff]  ;;  %v7350_v1 = vld [vmem:[#allocation2 + $0x6e0] sm:$0xff] }
 0x5e2   :  { %7516 = vmatprep.subr.bf16.mxu1 %v7311_v27  ;;  %7680 = vmatprep.subr.bf16.mxu0 %v7313_v50  ;;  %v7352_v27 = vld [vmem:[#allocation2 + $0x6f0] sm:$0xff]  ;;  %v7355_v50 = vld [vmem:[#allocation2 + $0x708] sm:$0xff] }
 0x5e5   :  { %7517 = vmatpush1.bf16.msra.mxu1 %v7310_v21  ;;  %7681 = vmatpush1.bf16.msra.mxu0 %v7312_v10  ;;  %v7357_v21 = vld [vmem:[#allocation2 + $0x718] sm:$0xff]  ;;  %v7354_v10 = vld [vmem:[#allocation2 + $0x700] sm:$0xff] }
 0x5e6   :  { %7518 = vmatprep.subr.bf16.mxu1 %v7315_v20  ;;  %7682 = vmatprep.subr.bf16.mxu0 %v7317_v2  ;;  %v7356_v20 = vld [vmem:[#allocation2 + $0x710] sm:$0xff]  ;;  %v7359_v2 = vld [vmem:[#allocation2 + $0x728] sm:$0xff] }
 0x5e9   :  { %7519 = vmatpush1.bf16.msra.mxu1 %v7314_v31  ;;  %7683 = vmatpush1.bf16.msra.mxu0 %v7316_v57  ;;  %v7361_v31 = vld [vmem:[#allocation2 + $0x738] sm:$0xff]  ;;  %v7358_v57 = vld [vmem:[#allocation2 + $0x720] sm:$0xff] }
 0x5ea   :  { %7520 = vmatprep.subr.bf16.mxu1 %v7319_v12  ;;  %7684 = vmatprep.subr.bf16.mxu0 %v7321_v54  ;;  %v7360_v12 = vld [vmem:[#allocation2 + $0x730] sm:$0xff]  ;;  %v7363_v54 = vld [vmem:[#allocation2 + $0x748] sm:$0xff] }
 0x5ed   :  { %7521 = vmatpush1.bf16.msra.mxu1 %v7318_v33  ;;  %7685 = vmatpush1.bf16.msra.mxu0 %v7320_v7  ;;  %v7365_v33 = vld [vmem:[#allocation2 + $0x758] sm:$0xff]  ;;  %v7362_v7 = vld [vmem:[#allocation2 + $0x740] sm:$0xff] }
 0x5ee   :  { %7531 = vmatprep.subr.bf16.mxu1 %v7323_v24  ;;  %7695 = vmatprep.subr.bf16.mxu0 %v7325_v0  ;;  %v7364_v24 = vld [vmem:[#allocation2 + $0x750] sm:$0xff]  ;;  %v7367_v0 = vld [vmem:[#allocation2 + $0x768] sm:$0xff] }
 0x5f0   :  { %7523 = vmatmul.mubr.bf16.vlgmr.msra.gmra.mrb[56].mxu1 %v11861_v9  ;;  %7687 = vmatmul.mubr.bf16.vlgmr.msra.gmra.mrb[40].mxu0 %v11861_v9  ;;  %v7337_v9 = vld [vmem:[#allocation2 + $0x678] sm:$0xff] }
 0x5f1   :  { %7532 = vmatpush1.bf16.msra.mxu1 %v7322_v17  ;;  %7696 = vmatpush1.bf16.msra.mxu0 %v7324_v6  ;;  %v7369_v17 = vld [vmem:[#allocation2 + $0x778] sm:$0xff]  ;;  %v7366_v6 = vld [vmem:[#allocation2 + $0x760] sm:$0xff] }
 0x5f2   :  { %7533 = vmatprep.subr.bf16.mxu1 %v7327_v25  ;;  %7697 = vmatprep.subr.bf16.mxu0 %v7329_v3  ;;  %v7368_v25 = vld [vmem:[#allocation2 + $0x770] sm:$0xff]  ;;  %v7371_v3 = vld [vmem:[#allocation2 + $0x788] sm:$0xff] }
 0x5f3   :  { %7563 = vmatprep.mubr.bf16.mxu1 %v11867_v16  ;;  %7727 = vmatprep.mubr.bf16.mxu0 %v11867_v16  ;;  %v7338_v16 = vld [vmem:[#allocation2 + $0x680] sm:$0xff] }
 0x5f5   :  { %7534 = vmatpush1.bf16.msra.mxu1 %v7326_v60  ;;  %7698 = vmatpush1.bf16.msra.mxu0 %v7328_v5  ;;  %v7373_v60 = vld [vmem:[#allocation2 + $0x798] sm:$0xff]  ;;  %v7370_v5 = vld [vmem:[#allocation2 + $0x780] sm:$0xff] }
 0x5f6   :  { %7535 = vmatprep.subr.bf16.mxu1 %v7331_v18  ;;  %7699 = vmatprep.subr.bf16.mxu0 %v7333_v59  ;;  %v7372_v18 = vld [vmem:[#allocation2 + $0x790] sm:$0xff]  ;;  %v7375_v59 = vld [vmem:[#allocation2 + $0x7a8] sm:$0xff] }
 0x5f9   :  { %7536 = vmatpush1.bf16.msra.mxu1 %v7330_v63  ;;  %7700 = vmatpush1.bf16.msra.mxu0 %v7332_v56  ;;  %v7377_v63 = vld [vmem:[#allocation2 + $0x7b8] sm:$0xff]  ;;  %v7374_v56 = vld [vmem:[#allocation2 + $0x7a0] sm:$0xff] }
 0x5fa   :  { %7537 = vmatprep.subr.bf16.mxu1 %v7335_v8  ;;  %7701 = vmatprep.subr.bf16.mxu0 %v7337_v9  ;;  %v7376_v8 = vld [vmem:[#allocation2 + $0x7b0] sm:$0xff]  ;;  %v7379_v9 = vld [vmem:[#allocation2 + $0x7c8] sm:$0xff] }
 0x5fd   :  { %7538 = vmatpush1.bf16.msra.mxu1 %v7334_v32  ;;  %7702 = vmatpush1.bf16.msra.mxu0 %v7336_v53  ;;  %v7381_v32 = vld [vmem:[#allocation2 + $0x7d8] sm:$0xff]  ;;  %v7378_v53 = vld [vmem:[#allocation2 + $0x7c0] sm:$0xff] }
 0x5fe   :  { %7539 = vmatprep.subr.bf16.mxu1 %v7339_v15  ;;  %7703 = vmatprep.subr.bf16.mxu0 %v7341_v58  ;;  %v7380_v15 = vld [vmem:[#allocation2 + $0x7d0] sm:$0xff]  ;;  %v7383_v58 = vld [vmem:[#allocation2 + $0x7e8] sm:$0xff] }
 0x601   :  { %7540 = vmatpush1.bf16.msra.mxu1 %v7338_v16  ;;  %7704 = vmatpush1.bf16.msra.mxu0 %v7340_v23  ;;  %v7385_v16 = vld [vmem:[#allocation2 + $0x7f8] sm:$0xff]  ;;  %v7382_v23 = vld [vmem:[#allocation2 + $0x7e0] sm:$0xff] }
 0x602   :  { %7541 = vmatprep.subr.bf16.mxu1 %v7343_v19  ;;  %7705 = vmatprep.subr.bf16.mxu0 %v7345_v51  ;;  %v7384_v19 = vld [vmem:[#allocation2 + $0x7f0] sm:$0xff]  ;;  %v7769_v51 = vld [vmem:[#allocation3 + $0x8] sm:$0xff] }
 0x605   :  { %7542 = vmatpush1.bf16.msra.mxu1 %v7342_v11  ;;  %7706 = vmatpush1.bf16.msra.mxu0 %v7344_v62  ;;  %v7768_v11 = vld [vmem:[#allocation3] sm:$0xff]  ;;  %v7771_v62 = vld [vmem:[#allocation3 + $0x18] sm:$0xff] }
 0x606   :  { %7543 = vmatprep.subr.bf16.mxu1 %v7347_v30  ;;  %7707 = vmatprep.subr.bf16.mxu0 %v7349_v61  ;;  %v7770_v30 = vld [vmem:[#allocation3 + $0x10] sm:$0xff]  ;;  %v7773_v61 = vld [vmem:[#allocation3 + $0x28] sm:$0xff] }
 0x609   :  { %7544 = vmatpush1.bf16.msra.mxu1 %v7346_v13  ;;  %7708 = vmatpush1.bf16.msra.mxu0 %v7348_v28  ;;  %v7772_v13 = vld [vmem:[#allocation3 + $0x20] sm:$0xff]  ;;  %v7775_v28 = vld [vmem:[#allocation3 + $0x38] sm:$0xff] }
 0x60a   :  { %7545 = vmatprep.subr.bf16.mxu1 %v7351_v22  ;;  %7709 = vmatprep.subr.bf16.mxu0 %v7353_v29  ;;  %v7774_v22 = vld [vmem:[#allocation3 + $0x30] sm:$0xff]  ;;  %v7777_v29 = vld [vmem:[#allocation3 + $0x48] sm:$0xff] }
 0x60d   :  { %7546 = vmatpush1.bf16.msra.mxu1 %v7350_v1  ;;  %7710 = vmatpush1.bf16.msra.mxu0 %v7352_v27  ;;  %v7776_v1 = vld [vmem:[#allocation3 + $0x40] sm:$0xff]  ;;  %v7779_v27 = vld [vmem:[#allocation3 + $0x58] sm:$0xff] }
 0x60e   :  { %7547 = vmatprep.subr.bf16.mxu1 %v7355_v50  ;;  %7711 = vmatprep.subr.bf16.mxu0 %v7357_v21  ;;  %v7778_v50 = vld [vmem:[#allocation3 + $0x50] sm:$0xff]  ;;  %v7780_v21 = vld [vmem:[#allocation3 + $0x60] sm:$0xff] }
 0x611   :  { %7548 = vmatpush1.bf16.msra.mxu1 %v7354_v10  ;;  %7712 = vmatpush1.bf16.msra.mxu0 %v7356_v20  ;;  %v7783_v10 = vld [vmem:[#allocation3 + $0x78] sm:$0xff]  ;;  %v7782_v20 = vld [vmem:[#allocation3 + $0x70] sm:$0xff] }
 0x612   :  { %7549 = vmatprep.subr.bf16.mxu1 %v7359_v2  ;;  %7713 = vmatprep.subr.bf16.mxu0 %v7361_v31  ;;  %v7785_v2 = vld [vmem:[#allocation3 + $0x88] sm:$0xff]  ;;  %v7784_v31 = vld [vmem:[#allocation3 + $0x80] sm:$0xff] }
 0x615   :  { %7550 = vmatpush1.bf16.msra.mxu1 %v7358_v57  ;;  %7714 = vmatpush1.bf16.msra.mxu0 %v7360_v12  ;;  %v7787_v57 = vld [vmem:[#allocation3 + $0x98] sm:$0xff]  ;;  %v7786_v12 = vld [vmem:[#allocation3 + $0x90] sm:$0xff] }
 0x616   :  { %7551 = vmatprep.subr.bf16.mxu1 %v7363_v54  ;;  %7715 = vmatprep.subr.bf16.mxu0 %v7365_v33  ;;  %v7789_v54 = vld [vmem:[#allocation3 + $0xa8] sm:$0xff]  ;;  %v7788_v33 = vld [vmem:[#allocation3 + $0xa0] sm:$0xff] }
 0x619   :  { %7552 = vmatpush1.bf16.msra.mxu1 %v7362_v7  ;;  %7716 = vmatpush1.bf16.msra.mxu0 %v7364_v24  ;;  %v7791_v7 = vld [vmem:[#allocation3 + $0xb8] sm:$0xff]  ;;  %v7790_v24 = vld [vmem:[#allocation3 + $0xb0] sm:$0xff] }
 0x61a   :  { %7553 = vmatprep.subr.bf16.mxu1 %v7367_v0  ;;  %7717 = vmatprep.subr.bf16.mxu0 %v7369_v17  ;;  %v7793_v0 = vld [vmem:[#allocation3 + $0xc8] sm:$0xff]  ;;  %v7792_v17 = vld [vmem:[#allocation3 + $0xc0] sm:$0xff] }
 0x61d   :  { %7554 = vmatpush1.bf16.msra.mxu1 %v7366_v6  ;;  %7718 = vmatpush1.bf16.msra.mxu0 %v7368_v25  ;;  %v7795_v6 = vld [vmem:[#allocation3 + $0xd8] sm:$0xff]  ;;  %v7794_v25 = vld [vmem:[#allocation3 + $0xd0] sm:$0xff] }
 0x61e   :  { %7555 = vmatprep.subr.bf16.mxu1 %v7371_v3  ;;  %7719 = vmatprep.subr.bf16.mxu0 %v7373_v60  ;;  %v7797_v3 = vld [vmem:[#allocation3 + $0xe8] sm:$0xff]  ;;  %v7796_v60 = vld [vmem:[#allocation3 + $0xe0] sm:$0xff] }
 0x621   :  { %7556 = vmatpush1.bf16.msra.mxu1 %v7370_v5  ;;  %7720 = vmatpush1.bf16.msra.mxu0 %v7372_v18  ;;  %v7799_v5 = vld [vmem:[#allocation3 + $0xf8] sm:$0xff]  ;;  %v7798_v18 = vld [vmem:[#allocation3 + $0xf0] sm:$0xff] }
 0x622   :  { %7557 = vmatprep.subr.bf16.mxu1 %v7375_v59  ;;  %7721 = vmatprep.subr.bf16.mxu0 %v7377_v63  ;;  %v7801_v59 = vld [vmem:[#allocation3 + $0x108] sm:$0xff]  ;;  %v7386_v63 = vld [vmem:[%s11979_s9] sm:$0xf] }
 0x625   :  { %7558 = vmatpush1.bf16.msra.mxu1 %v7374_v56  ;;  %7722 = vmatpush1.bf16.msra.mxu0 %v7376_v8  ;;  %v7402_v56 = vsub.s32 3, %v11842_v4  ;;  %v7391_v8 = vrot.slane %v7386_v63, %v11845_v14 }
 0x626   :  { %7559 = vmatprep.subr.bf16.mxu1 %v7379_v9  ;;  %7723 = vmatprep.subr.bf16.mxu0 %v7381_v32  ;;  %v7395_v9 = vrot.slane %v7386_v63, %v11851_v55 }
 0x627   :  { %v7403_v32 = vrot.slane %v7386_v63, %v7402_v56  ;;  %v7811_v56 = vld [vmem:[#allocation3 + $0x158] sm:$0xff] }
 0x629   :  { %7560 = vmatpush1.bf16.msra.mxu1 %v7378_v53  ;;  %7724 = vmatpush1.bf16.msra.mxu0 %v7380_v15 }
 0x62a   :  { %7561 = vmatprep.subr.bf16.mxu1 %v7383_v58  ;;  %7725 = vmatprep.subr.bf16.mxu0 %v7385_v16 }
 0x62d   :  { %7562 = vmatpush1.bf16.msra.mxu1 %v7382_v23  ;;  %7726 = vmatpush1.bf16.msra.mxu0 %v7384_v19 }
 0x62e   :  { %7844 = vmatprep.subr.bf16.mxu1 %v7769_v51 }
 0x630   :  { %7564 = vmatmul.mubr.bf16.vlgmr.msra.gmra.mrb[56].mxu1 %v11865_v52  ;;  %7728 = vmatmul.mubr.bf16.vlgmr.msra.gmra.mrb[40].mxu0 %v11865_v52  ;;  %v7781_v52 = vld [vmem:[#allocation3 + $0x68] sm:$0xff] }
 0x631   :  { %7845 = vmatpush1.bf16.msra.mxu1 %v7768_v11 }
 0x632   :  { %7846 = vmatprep.subr.bf16.mxu1 %v7771_v62 }
 0x635   :  { %7847 = vmatpush1.bf16.msra.mxu1 %v7770_v30 }
 0x636   :  { %7848 = vmatprep.subr.bf16.mxu1 %v7773_v61 }
 0x639   :  { %7849 = vmatpush1.bf16.msra.mxu1 %v7772_v13 }
 0x63a   :  { %7850 = vmatprep.subr.bf16.mxu1 %v7775_v28 }
 0x63d   :  { %7851 = vmatpush1.bf16.msra.mxu1 %v7774_v22 }
 0x63e   :  { %7852 = vmatprep.subr.bf16.mxu1 %v7777_v29 }
 0x641   :  { %7853 = vmatpush1.bf16.msra.mxu1 %v7776_v1 }
 0x642   :  { %7854 = vmatprep.subr.bf16.mxu1 %v7779_v27 }
 0x645   :  { %7855 = vmatpush1.bf16.msra.mxu1 %v7778_v50 }
 0x646   :  { %7856 = vmatprep.subr.bf16.mxu1 %v7781_v52 }
 0x649   :  { %7857 = vmatpush1.bf16.msra.mxu1 %v7780_v21 }
 0x64a   :  { %7858 = vmatprep.subr.bf16.mxu1 %v7783_v10 }
 0x64d   :  { %7859 = vmatpush1.bf16.msra.mxu1 %v7782_v20 }
 0x64e   :  { %7860 = vmatprep.subr.bf16.mxu1 %v7785_v2 }
 0x651   :  { %7861 = vmatpush1.bf16.msra.mxu1 %v7784_v31 }
 0x652   :  { %7862 = vmatprep.subr.bf16.mxu1 %v7787_v57 }
 0x655   :  { %7863 = vmatpush1.bf16.msra.mxu1 %v7786_v12 }
 0x656   :  { %7864 = vmatprep.subr.bf16.mxu1 %v7789_v54 }
 0x659   :  { %7865 = vmatpush1.bf16.msra.mxu1 %v7788_v33 }
 0x65a   :  { %7866 = vmatprep.subr.bf16.mxu1 %v7791_v7  ;;  %v7800_v7 = vld [vmem:[#allocation3 + $0x100] sm:$0xff] }
 0x65d   :  { %7867 = vmatpush1.bf16.msra.mxu1 %v7790_v24 }
 0x65e   :  { %7868 = vmatprep.subr.bf16.mxu1 %v7793_v0  ;;  %v7803_v0 = vld [vmem:[#allocation3 + $0x118] sm:$0xff] }
 0x661   :  { %7869 = vmatpush1.bf16.msra.mxu1 %v7792_v17  ;;  %v7802_v17 = vld [vmem:[#allocation3 + $0x110] sm:$0xff] }
 0x662   :  { %7870 = vmatprep.subr.bf16.mxu1 %v7795_v6  ;;  %v7805_v6 = vld [vmem:[#allocation3 + $0x128] sm:$0xff] }
 0x665   :  { %7871 = vmatpush1.bf16.msra.mxu1 %v7794_v25  ;;  %v7804_v25 = vld [vmem:[#allocation3 + $0x120] sm:$0xff] }
 0x666   :  { %7872 = vmatprep.subr.bf16.mxu1 %v7797_v3  ;;  %v7807_v3 = vld [vmem:[#allocation3 + $0x138] sm:$0xff] }
 0x669   :  { %7873 = vmatpush1.bf16.msra.mxu1 %v7796_v60  ;;  %v7806_v60 = vld [vmem:[#allocation3 + $0x130] sm:$0xff] }
 0x66a   :  { %7874 = vmatprep.subr.bf16.mxu1 %v7799_v5  ;;  %v7809_v5 = vld [vmem:[#allocation3 + $0x148] sm:$0xff] }
 0x66d   :  { %7875 = vmatpush1.bf16.msra.mxu1 %v7798_v18  ;;  %v7398_v18 = vsub.s32 2, %v11842_v4  ;;  %v7816_v4 = vld [vmem:[#allocation3 + $0x180] sm:$0xff] }
 0x66e   :  { %7885 = vmatprep.subr.bf16.mxu1 %v7801_v59  ;;  %v7808_v59 = vld [vmem:[#allocation3 + $0x140] sm:$0xff] }
 0x703   :  { %v7565_v53 = vpop.f32.mrb[56].mxu1  ;;  %v7729_v15 = vpop.f32.mrb[40].mxu0 }
 0x704   :  { %v8704_v58 = vadd.f32 %v7565_v53, %v7391_v8  ;;  %v7567_v16 = vpop.f32.mrb[57].mxu1  ;;  %v7731_v23 = vpop.f32.mrb[41].mxu0  ;;  %v7399_v8 = vrot.slane %v7386_v63, %v7398_v18  ;;  %v7818_v63 = vld [vmem:[#allocation3 + $0x190] sm:$0xff]  ;;  %v8019_v18 = vld [vmem:[%s11984_s14 + $0x38] sm:$0xff] }
 0x705   :  { %v8705_v19 = vadd.f32 %v7567_v16, %v7395_v9  ;;  %v8707_v51 = vadd.f32 %v7731_v23, %v7403_v32  ;;  %v7569_v11 = vpop.f32.mrb[58].mxu1  ;;  %v7733_v62 = vpop.f32.mrb[42].mxu0  ;;  %v7810_v9 = vld [vmem:[#allocation3 + $0x150] sm:$0xff]  ;;  %v7813_v32 = vld [vmem:[#allocation3 + $0x168] sm:$0xff]  ;;  %v7815_v16 = vld [vmem:[#allocation3 + $0x178] sm:$0xff] }
 0x706   :  { %v8405_v30 = vmul.f32 -1.442695, %v8704_v58  ;;  %v7570_v61 = vpop.f32.mrb[59].mxu1  ;;  %v7734_v13 = vpop.f32.mrb[43].mxu0  ;;  %v8706_v53 = vadd.f32 %v7729_v15, %v7399_v8  ;;  %v7819_v11 = vld [vmem:[#allocation3 + $0x198] sm:$0xff]  ;;  %v7821_v62 = vld [vmem:[#allocation3 + $0x1a8] sm:$0xff] }
 0x707   :  { %v8406_v28 = vmul.f32 -1.442695, %v8705_v19  ;;  %v8408_v22 = vmul.f32 -1.442695, %v8707_v51  ;;  %v7823_v61 = vld [vmem:[#allocation3 + $0x1b8] sm:$0xff]  ;;  %v8021_v8 = vld [vmem:[%s11984_s14 + $0x48] sm:$0xff] }
 0x708   :  { %8996 = vpow2.f32 %v8405_v30  ;;  %v8407_v23 = vmul.f32 -1.442695, %v8706_v53  ;;  %v7820_v30 = vld [vmem:[#allocation3 + $0x1a0] sm:$0xff] }
 0x709   :  { %8998 = vpow2.f32 %v8406_v28  ;;  %v7822_v28 = vld [vmem:[#allocation3 + $0x1b0] sm:$0xff] }
 0x70a   :  { %9000 = vpow2.f32 %v8408_v22  ;;  %v7825_v22 = vld [vmem:[#allocation3 + $0x1c8] sm:$0xff] }
 0x712   :  { %v8997_v29 = vpop.eup %8996 }
 0x713   :  { %v7748_v1 = vadd.f32 1.0, %v8997_v29  ;;  %v8999_v27 = vpop.eup %8998  ;;  %v7824_v29 = vld [vmem:[#allocation3 + $0x1c0] sm:$0xff] }
 0x714   :  { %v9001_v50 = vpop.eup %9000  ;;  %v7749_v52 = vadd.f32 1.0, %v8999_v27  ;;  %v7826_v27 = vld [vmem:[#allocation3 + $0x1d0] sm:$0xff] }
 0x715   :  { %9002 = vrcp.f32 %v7748_v1  ;;  %v7751_v21 = vadd.f32 1.0, %v9001_v50  ;;  %v7827_v1 = vld [vmem:[#allocation3 + $0x1d8] sm:$0xff]  ;;  %v7829_v50 = vld [vmem:[#allocation3 + $0x1e8] sm:$0xff] }
 0x716   :  { %9004 = vrcp.f32 %v7749_v52  ;;  %v7828_v52 = vld [vmem:[#allocation3 + $0x1e0] sm:$0xff] }
 0x717   :  { %9006 = vrcp.f32 %v7751_v21 }
 0x718   :  { %9008 = vpow2.f32 %v8407_v23  ;;  %v8025_v23 = vld [vmem:[%s11984_s14 + $0x68] sm:$0xff] }
 0x71f   :  { %v9003_v10 = vpop.eup %9002 }
 0x720   :  { %v9005_v20 = vpop.eup %9004  ;;  %v7760_v2 = vmul.f32 %v9003_v10, %v8704_v58  ;;  %v7812_v58 = vld [vmem:[#allocation3 + $0x160] sm:$0xff]  ;;  %v7831_v10 = vld [vmem:[#allocation3 + $0x1f8] sm:$0xff] }
 0x721   :  { %v9007_v31 = vpop.eup %9006  ;;  %v7761_v57 = vmul.f32 %v9005_v20, %v8705_v19  ;;  %v7814_v19 = vld [vmem:[#allocation3 + $0x170] sm:$0xff] }
 0x722   :  { %v7763_v12 = vmul.f32 %v9007_v31, %v8707_v51  ;;  %v7764_v33 = vpack.c.bf16 %v7760_v2, %v7760_v2  ;;  %v7817_v51 = vld [vmem:[#allocation3 + $0x188] sm:$0xff]  ;;  %v9009_v15 = vpop.eup %9008  ;;  %v7830_v2 = vld [vmem:[#allocation3 + $0x1f0] sm:$0xff] }
 0x723   :  { %v7765_v54 = vpack.c.bf16 %v7761_v57, %v7761_v57  ;;  %v7750_v13 = vadd.f32 1.0, %v9009_v15 }
 0x724   :  { %v7767_v24 = vpack.c.bf16 %v7763_v12, %v7763_v12 }
 0x725   :  { %7876 = vmatprep.mubr.bf16.mxu1 %v7765_v54  ;;  %9010 = vrcp.f32 %v7750_v13 }
 0x726   :  { %7877 = vmatmul.mubr.bf16.vlgmr.msra.gmra.mrb[60].mxu1 %v7764_v33  ;;  %v8012_v33 = vld [vmem:[%s11984_s14] sm:$0xff] }
 0x727   :  { %7886 = vmatpush1.bf16.msra.mxu1 %v7800_v7  ;;  %7917 = vmatprep.mubr.bf16.mxu1 %v7767_v24  ;;  %v8013_v7 = vld [vmem:[%s11984_s14 + $0x8] sm:$0xff] }
 0x728   :  { %7887 = vmatprep.subr.bf16.mxu1 %v7803_v0  ;;  %v8671_v24 = vpack.c.bf16 %v8013_v7, %v8012_v33  ;;  %v9049_v0 = vmov 0.0|0.0  }
 0x72b   :  { %7888 = vmatpush1.bf16.msra.mxu1 %v7802_v17  ;;  %v8014_v17 = vld [vmem:[%s11984_s14 + $0x10] sm:$0xff] }
 0x72c   :  { %7889 = vmatprep.subr.bf16.mxu1 %v7805_v6 }
 0x72f   :  { %7890 = vmatpush1.bf16.msra.mxu1 %v7804_v25  ;;  %v9011_v21 = vpop.eup %9010  ;;  %v8016_v25 = vld [vmem:[%s11984_s14 + $0x20] sm:$0xff] }
 0x730   :  { %7891 = vmatprep.subr.bf16.mxu1 %v7807_v3  ;;  %v7762_v20 = vmul.f32 %v9011_v21, %v8706_v53  ;;  %v8017_v3 = vld [vmem:[%s11984_s14 + $0x28] sm:$0xff]  ;;  %v8023_v53 = vld [vmem:[%s11984_s14 + $0x58] sm:$0xff] }
 0x732   :  { %v7766_v31 = vpack.c.bf16 %v7762_v20, %v7762_v20 }
 0x733   :  { %7892 = vmatpush1.bf16.msra.mxu1 %v7806_v60  ;;  %v8677_v60 = vpack.c.bf16 %v8017_v3, %v8016_v25 }
 0x734   :  { %7893 = vmatprep.subr.bf16.mxu1 %v7809_v5  ;;  %v8018_v5 = vld [vmem:[%s11984_s14 + $0x30] sm:$0xff] }
 0x737   :  { %7894 = vmatpush1.bf16.msra.mxu1 %v7808_v59  ;;  %v8680_v59 = vpack.c.bf16 %v8019_v18, %v8018_v5 }
 0x738   :  { %7895 = vmatprep.subr.bf16.mxu1 %v7811_v56  ;;  %v8020_v56 = vld [vmem:[%s11984_s14 + $0x40] sm:$0xff] }
 0x73b   :  { %7896 = vmatpush1.bf16.msra.mxu1 %v7810_v9  ;;  %v8683_v9 = vpack.c.bf16 %v8021_v8, %v8020_v56 }
 0x73c   :  { %7897 = vmatprep.subr.bf16.mxu1 %v7813_v32  ;;  %v8022_v32 = vld [vmem:[%s11984_s14 + $0x50] sm:$0xff] }
 0x73f   :  { %7898 = vmatpush1.bf16.msra.mxu1 %v7812_v58  ;;  %v8686_v58 = vpack.c.bf16 %v8023_v53, %v8022_v32 }
 0x740   :  { %7899 = vmatprep.subr.bf16.mxu1 %v7815_v16  ;;  %v8024_v16 = vld [vmem:[%s11984_s14 + $0x60] sm:$0xff] }
 0x743   :  { %7900 = vmatpush1.bf16.msra.mxu1 %v7814_v19  ;;  %v8689_v19 = vpack.c.bf16 %v8025_v23, %v8024_v16 }
 0x744   :  { %7901 = vmatprep.subr.bf16.mxu1 %v7817_v51  ;;  %v8026_v51 = vld [vmem:[%s11984_s14 + $0x70] sm:$0xff] }
 0x747   :  { %7902 = vmatpush1.bf16.msra.mxu1 %v7816_v4  ;;  %v8027_v4 = vld [vmem:[%s11984_s14 + $0x78] sm:$0xff] }
 0x748   :  { %7903 = vmatprep.subr.bf16.mxu1 %v7819_v11  ;;  %v8692_v11 = vpack.c.bf16 %v8027_v4, %v8026_v51 }
 0x74b   :  { %7904 = vmatpush1.bf16.msra.mxu1 %v7818_v63 }
 0x74c   :  { %7905 = vmatprep.subr.bf16.mxu1 %v7821_v62  ;;  %v8411_v62 = vld [vmem:[%s11983_s13] ss:$0 sm:$0xff] }
 0x74f   :  { %7906 = vmatpush1.bf16.msra.mxu1 %v7820_v30 }
 0x750   :  { %7907 = vmatprep.subr.bf16.mxu1 %v7823_v61 }
 0x753   :  { %7908 = vmatpush1.bf16.msra.mxu1 %v7822_v28 }
 0x754   :  { %7909 = vmatprep.subr.bf16.mxu1 %v7825_v22 }
 0x757   :  { %7910 = vmatpush1.bf16.msra.mxu1 %v7824_v29 }
 0x758   :  { %7911 = vmatprep.subr.bf16.mxu1 %v7827_v1 }
 0x75b   :  { %7912 = vmatpush1.bf16.msra.mxu1 %v7826_v27 }
 0x75c   :  { %7913 = vmatprep.subr.bf16.mxu1 %v7829_v50 }
 0x75f   :  { %7914 = vmatpush1.bf16.msra.mxu1 %v7828_v52  ;;  %v8413_v52 = vld [vmem:[%s11985_s15] ss:$0 sm:$0xff] }
 0x760   :  { %7915 = vmatprep.subr.bf16.mxu1 %v7831_v10 }
 0x763   :  { %7916 = vmatpush1.bf16.msra.mxu1 %v7830_v2 }
 0x764   :  { %8472 = vmatprep.subr.bf16.mxu1 %v10819_v42 }
 0x766   :  { %7918 = vmatmul.mubr.bf16.vlgmr.msra.gmra.mrb[60].mxu1 %v7766_v31 }
 0x767   :  { %8473 = vmatpush3.bf16.msra.mxu1 %v10779_v34  ;;  %v7832_v34 = vld [vmem:[%s11981_s11] sm:$0x3] }
 0x768   :  { %8474 = vmatprep.subr.bf16.mxu1 %v10824_v43 }
 0x76b   :  { %8475 = vmatpush3.bf16.msra.mxu1 %v10784_v35  ;;  %v7837_v35 = vrot.slane %v7832_v34, %v11845_v14 }
 0x76c   :  { %8476 = vmatprep.subr.bf16.mxu1 %v10829_v44 }
 0x76f   :  { %8477 = vmatpush3.bf16.msra.mxu1 %v10789_v36  ;;  %v7841_v36 = vrot.slane %v7832_v34, %v11851_v55 }
 0x770   :  { %8478 = vmatprep.subr.bf16.mxu1 %v10834_v45 }
 0x773   :  { %8479 = vmatpush3.bf16.msra.mxu1 %v10794_v37 }
 0x774   :  { %8480 = vmatprep.subr.bf16.mxu1 %v10839_v46 }
 0x777   :  { %8481 = vmatpush3.bf16.msra.mxu1 %v10799_v38 }
 0x778   :  { %8482 = vmatprep.subr.bf16.mxu1 %v10844_v47 }
 0x77b   :  { %8483 = vmatpush3.bf16.msra.mxu1 %v10804_v39 }
 0x77c   :  { %8484 = vmatprep.subr.bf16.mxu1 %v10849_v48 }
 0x77f   :  { %8485 = vmatpush3.bf16.msra.mxu1 %v10809_v40 }
 0x780   :  { %8486 = vmatprep.subr.bf16.mxu1 %v10854_v49 }
 0x783   :  { %8487 = vmatpush3.bf16.msra.mxu1 %v10814_v41 }
 0x784   :  { %8670 = vmatprep.subr.bf16.mxu1 %v9049_v0 }
 0x839   :  { %v7919_v37 = vpop.f32.mrb[60].mxu1 }
 0x83a   :  { %v8708_v38 = vadd.f32 %v7919_v37, %v7837_v35  ;;  %v7921_v42 = vpop.f32.mrb[61].mxu1 }
 0x83b   :  { %v8709_v39 = vadd.f32 %v7921_v42, %v7841_v36  ;;  %v7923_v43 = vpop.f32.mrb[62].mxu1 }
 0x83c   :  { %v8409_v44 = vmul.f32 -1.442695, %v8708_v38  ;;  %v7924_v45 = vpop.f32.mrb[63].mxu1 }
 0x83d   :  { %v8410_v40 = vmul.f32 -1.442695, %v8709_v39 }
 0x83e   :  { %9012 = vpow2.f32 %v8409_v44 }
 0x83f   :  { %9014 = vpow2.f32 %v8410_v40 }
 0x848   :  { %v9013_v46 = vpop.eup %9012 }
 0x849   :  { %v9015_v41 = vpop.eup %9014  ;;  %v7932_v47 = vadd.f32 1.0, %v9013_v46 }
 0x84a   :  { %v7933_v48 = vadd.f32 1.0, %v9015_v41 }
 0x84b   :  { %9016 = vrcp.f32 %v7932_v47 }
 0x84c   :  { %9018 = vrcp.f32 %v7933_v48 }
 0x855   :  { %v9017_v49 = vpop.eup %9016 }
 0x856   :  { %v9019_v14 = vpop.eup %9018  ;;  %v7938_v57 = vmul.f32 %v9017_v49, %v8708_v38 }
 0x857   :  { %v7939_v55 = vmul.f32 %v9019_v14, %v8709_v39 }
 0x858   :  { %v7940_v54 = vpack.c.bf16 %v7938_v57, %v7938_v57 }
 0x859   :  { %v7941_v12 = vpack.c.bf16 %v7939_v55, %v7939_v55 }
 0x85b   :  { %7997 = vmatprep.mubr.bf16.mxu1 %v7941_v12 }
 0x85c   :  { %7998 = vmatmul.mubr.bf16.vlgmr.msra.gmra.mrb[64].mxu1 %v7940_v54 }
 0x85d   :  { %8661 = vmatprep.mubr.msk.f32.mxu1 %vm9047_vm4, %v9046_v26  ;;  %8672 = vmatpush3.bf16.msra.mxu1 %v8671_v24  ;;  %v8015_v26 = vld [vmem:[%s11984_s14 + $0x18] sm:$0xff] }
 0x85e   :  { %8673 = vmatprep.subr.bf16.mxu1 %v9049_v0  ;;  %v8674_v6 = vpack.c.bf16 %v8015_v26, %v8014_v17 }
 0x861   :  { %8675 = vmatpush3.bf16.msra.mxu1 %v8674_v6 }
 0x862   :  { %8676 = vmatprep.subr.bf16.mxu1 %v9049_v0 }
 0x865   :  { %8678 = vmatpush3.bf16.msra.mxu1 %v8677_v60 }
 0x866   :  { %8679 = vmatprep.subr.bf16.mxu1 %v9049_v0 }
 0x869   :  { %8681 = vmatpush3.bf16.msra.mxu1 %v8680_v59 }
 0x86a   :  { %8682 = vmatprep.subr.bf16.mxu1 %v9049_v0 }
 0x86d   :  { %8684 = vmatpush3.bf16.msra.mxu1 %v8683_v9 }
 0x86e   :  { %8685 = vmatprep.subr.bf16.mxu1 %v9049_v0 }
 0x871   :  { %8687 = vmatpush3.bf16.msra.mxu1 %v8686_v58 }
 0x872   :  { %8688 = vmatprep.subr.bf16.mxu1 %v9049_v0 }
 0x875   :  { %8690 = vmatpush3.bf16.msra.mxu1 %v8689_v19 }
 0x876   :  { %8691 = vmatprep.subr.bf16.mxu1 %v9049_v0 }
 0x879   :  { %8693 = vmatpush3.bf16.msra.mxu1 %v8692_v11 }
 0x92f   :  { %v8488_v63 = vpop.f32.mrb[64].mxu1 }
 0x930   :  { %v8489_v15 = vpop.f32.mrb[65].mxu1 }
 0x931   :  { %v8490_v30 = vadd.f32 %v8489_v15, %v8488_v63  ;;  %v8491_v61 = vpop.f32.mrb[66].mxu1 }
 0x932   :  { %v8492_v13 = vpop.f32.mrb[67].mxu1 }
 0x933   :  { %v8000_v28 = vadd.f32 %v8490_v30, %v8411_v62 }
 0x935   :  { %v8412_v22 = vmul.f32 -1.442695, %v8000_v28 }
 0x937   :  { %9020 = vpow2.f32 %v8412_v22 }
 0x941   :  { %v9021_v29 = vpop.eup %9020 }
 0x942   :  { %v8008_v1 = vadd.f32 1.0, %v9021_v29 }
 0x944   :  { %9022 = vrcp.f32 %v8008_v1 }
 0x94e   :  { %v9023_v27 = vpop.eup %9022 }
 0x94f   :  { %v8011_v50 = vmul.f32 %v9023_v27, %v8000_v28 }
 0x951   :  { %8662 = vmatmul.mubr.f32.vlgmr.msra.gmra.mrb[68].mxu1 %v8011_v50 }
 0xa24   :  { %v8101_v21 = vpop.f32.mrb[68].mxu1 }
 0xa25   :  { %v8102_v10 = vadd.f32 %v8413_v52, %v8101_v21  ;;  %v8663_v20 = vpop.f32.mrb[69].mxu1 }
 0xa27   :  { %8105 = vst [vmem:[%s11986_s16] sm:$0xff] %v8102_v10 }
 0xa28   :  { %8110 = vsyncpa [#allocation7], 1 }
 0xa29   :  { %8111 = vsyncmov [#allocation5] }
 0xa2c   :  { %s8112_s21 = vpop.sfrf %8111 }
 0xa2d   :  { %p8414_p5 = scmp.ne.s32.totalorder %s8112_s21, 0 }
 0xa2f   :  { %8116 = shalt.err (%p8414_p5)  }
 0xa30   :  { %8118 = vsyncmov [#allocation5 + $0x1] }
 0xa33   :  { %s8119_s22 = vpop.sfrf %8118 }
 0xa34   :  { %p8415_p6 = scmp.ne.s32.totalorder %s8119_s22, 0 }
 0xa36   :  { %8123 = shalt.err (%p8415_p6)  }
 0xa37   :  { %8125 = vsyncmov [#allocation5 + $0x2] }
 0xa3a   :  { %s8126_s23 = vpop.sfrf %8125 }
 0xa3b   :  { %p8416_p7 = scmp.ne.s32.totalorder %s8126_s23, 0 }
 0xa3d   :  { %8130 = shalt.err (%p8416_p7)  }

</bundles_post_ra>
